<compile_context>
chip_gen: v7x
topology: tpu7x:2x2x1
jax: 0.10.0
libtpu: 0.0.40
codegen_flags: <defaults>
</compile_context>

<pallas_src>
import functools
import math

import jax
import jax.numpy as jnp
from jax import lax
from jax.experimental import pallas as pl
from jax.experimental.pallas import tpu as pltpu

EPS = 1e-5  # nn.BatchNorm2d default eps

# Scoped-VMEM budget: per-image blocks stay < ~2 MiB even at real ResNet layer sizes,
# so 32 MiB is safe on every generation including v7x (64 MiB physical).
_VMEM_LIMIT = 32 * 1024 * 1024


def _conv3x3_parity(x_ref, w_ref, ip, jp, hp, wp, cin, cout):
    """f32 3x3-conv outputs at pixels (2*r + ip, 2*c + jp), shape (hp*wp, cout).

    x_ref : (4, hp+1, wp+1, cin) bf16 parity planes of the zero-padded image,
            plane index q = 2*(h_pad % 2) + (w_pad % 2).
    w_ref : (9, cin, cout)       bf16, tap index t = 3*dh + dw.
    """
    acc = jnp.zeros((hp * wp, cout), jnp.float32)
    for dh in range(3):
        for dw in range(3):
            u, v = ip + dh, jp + dw
            q = (u % 2) * 2 + (v % 2)          # which parity plane holds this tap
            a, b = u // 2, v // 2              # static window offset inside the plane
            xs = x_ref[q, a:a + hp, b:b + wp, :].reshape(hp * wp, cin)
            acc = acc + jnp.dot(xs, w_ref[3 * dh + dw],
                                preferred_element_type=jnp.float32)
    return acc


def _stats_kernel(x_ref, w_ref, sum_ref, ssq_ref, *, hp, wp, cin, cout):
    """Pass 1: per-image sum / sum-of-squares of the (bias-free) conv output."""
    s = jnp.zeros((1, cout), jnp.float32)
    ss = jnp.zeros((1, cout), jnp.float32)
    for ip in range(2):
        for jp in range(2):
            z = _conv3x3_parity(x_ref, w_ref, ip, jp, hp, wp, cin, cout)
            s = s + jnp.sum(z, axis=0, keepdims=True)
            ss = ss + jnp.sum(z * z, axis=0, keepdims=True)
    sum_ref[...] = s
    ssq_ref[...] = ss


def _fwd_kernel(x_ref, w_ref, scale_ref, shift_ref, out_ref, *, hp, wp, cin, cout):
    """Pass 2: conv -> folded BN affine -> ReLU -> 2x2 max pool (parity max)."""
    scale = scale_ref[...]
    shift = shift_ref[...]
    pooled = None
    for ip in range(2):
        for jp in range(2):
            z = _conv3x3_parity(x_ref, w_ref, ip, jp, hp, wp, cin, cout)
            y = jnp.maximum(z * scale + shift, 0.0)        # BN affine + ReLU (f32)
            pooled = y if pooled is None else jnp.maximum(pooled, y)
    out_ref[...] = pooled                                  # (hp*wp, cout), pooled only


@jax.jit
def conv_block_forward(x_nchw, w_hwio, bias, gamma, beta):
    n, cin, h, w = x_nchw.shape
    kh, kw, cin_w, cout = w_hwio.shape
    assert (kh, kw) == (3, 3) and cin_w == cin and h % 2 == 0 and w % 2 == 0
    hp, wp = h // 2, w // 2

    # ---- glue: one pass of XLA data movement, same byte count as the input ----
    x = jnp.transpose(x_nchw, (0, 2, 3, 1))                          # NHWC (once)
    x_pad = jnp.pad(x, ((0, 0), (1, 1), (1, 1), (0, 0)))             # (n, h+2, w+2, cin)
    x_par = x_pad.reshape(n, hp + 1, 2, wp + 1, 2, cin)
    x_par = jnp.transpose(x_par, (0, 2, 4, 1, 3, 5))                 # (n, 2, 2, hp+1, wp+1, cin)
    x_par = x_par.reshape(n * 4, hp + 1, wp + 1, cin).astype(jnp.bfloat16)
    w_taps = w_hwio.reshape(9, cin, cout).astype(jnp.bfloat16)

    cparams = pltpu.CompilerParams(
        dimension_semantics=("parallel",),     # image tiles are independent in each pass
        vmem_limit_bytes=_VMEM_LIMIT,
    )

    # ---- pass 1: global batch statistics of the conv output ----
    sums, ssqs = pl.pallas_call(
        functools.partial(_stats_kernel, hp=hp, wp=wp, cin=cin, cout=cout),
        grid=(n,),
        out_shape=(jax.ShapeDtypeStruct((n, 1, cout), jnp.float32),
                   jax.ShapeDtypeStruct((n, 1, cout), jnp.float32)),
        in_specs=[
            pl.BlockSpec((4, hp + 1, wp + 1, cin), lambda i: (i, 0, 0, 0)),
            pl.BlockSpec((9, cin, cout), lambda i: (0, 0, 0)),
        ],
        out_specs=(pl.BlockSpec((None, 1, cout), lambda i: (i, 0, 0)),
                   pl.BlockSpec((None, 1, cout), lambda i: (i, 0, 0))),
        compiler_params=cparams,
    )(x_par, w_taps)

    m_total = float(n * h * w)
    mean_z = jnp.sum(sums, axis=0) / m_total                         # (1, cout)
    var_z = jnp.maximum(jnp.sum(ssqs, axis=0) / m_total - mean_z * mean_z, 0.0)

    # Fold conv bias + train-mode BN (batch stats) + affine into (scale, shift):
    #   y = conv + b ; BN(y) = (y - mean_y) * rsqrt(var_y + eps) * gamma + beta
    # with mean_y = mean_z + b and var_y = var_z (a constant shift has no variance).
    b_row = bias.reshape(1, cout)
    mean_y = mean_z + b_row
    scale = gamma.reshape(1, cout) * lax.rsqrt(var_z + EPS)
    shift = beta.reshape(1, cout) + (b_row - mean_y) * scale

    # ---- pass 2: conv (recomputed) + BN affine + ReLU + 2x2 max pool ----
    out2d = pl.pallas_call(
        functools.partial(_fwd_kernel, hp=hp, wp=wp, cin=cin, cout=cout),
        grid=(n,),
        out_shape=jax.ShapeDtypeStruct((n, hp * wp, cout), jnp.float32),
        in_specs=[
            pl.BlockSpec((4, hp + 1, wp + 1, cin), lambda i: (i, 0, 0, 0)),
            pl.BlockSpec((9, cin, cout), lambda i: (0, 0, 0)),
            pl.BlockSpec((1, cout), lambda i: (0, 0)),
            pl.BlockSpec((1, cout), lambda i: (0, 0)),
        ],
        out_specs=pl.BlockSpec((None, hp * wp, cout), lambda i: (i, 0, 0)),
        compiler_params=cparams,
    )(x_par, w_taps, scale, shift)

    out = out2d.reshape(n, hp, wp, cout)
    return jnp.transpose(out, (0, 3, 1, 2))                          # NCHW


def conv_block_reference(x_nchw, w_hwio, bias, gamma, beta):
    """Pure-JAX f32 reference matching the PyTorch forward."""
    w_oihw = jnp.transpose(w_hwio, (3, 2, 0, 1))
    conv = lax.conv_general_dilated(
        x_nchw, w_oihw, window_strides=(1, 1), padding=((1, 1), (1, 1)),
        dimension_numbers=("NCHW", "OIHW", "NCHW"))
    conv = conv + bias[None, :, None, None]
    mean = jnp.mean(conv, axis=(0, 2, 3), keepdims=True)
    var = jnp.mean((conv - mean) ** 2, axis=(0, 2, 3), keepdims=True)
    bn = (conv - mean) * lax.rsqrt(var + EPS)
    bn = bn * gamma[None, :, None, None] + beta[None, :, None, None]
    r = jnp.maximum(bn, 0.0)
    return lax.reduce_window(r, -jnp.inf, lax.max, (1, 1, 2, 2), (1, 1, 2, 2), "VALID")


if __name__ == "__main__":
    key = jax.random.PRNGKey(0)
    k_x, k_w, k_b = jax.random.split(key, 3)

    N, Cin, H, W = 2, 4, 16, 16
    Cout = 8

    x = jax.random.normal(k_x, (N, Cin, H, W), jnp.float32)

    # init_layer(Conv2d): weight ~ N(0, sqrt(2 / (kh*kw*out_channels)))
    fan = 3 * 3 * Cout
    w_hwio = jax.random.normal(k_w, (3, 3, Cin, Cout), jnp.float32) * math.sqrt(2.0 / fan)
    bound = 1.0 / math.sqrt(Cin * 9)
    bias = jax.random.uniform(k_b, (Cout,), jnp.float32, -bound, bound)
    # BatchNorm2d affine: weight = 1, bias = 0
    gamma = jnp.ones((Cout,), jnp.float32)
    beta = jnp.zeros((Cout,), jnp.float32)

    out = jax.block_until_ready(conv_block_forward(x, w_hwio, bias, gamma, beta))
    ref = conv_block_reference(x, w_hwio, bias, gamma, beta)

    assert out.shape == (N, Cout, H // 2, W // 2), out.shape
    max_err = float(jnp.max(jnp.abs(out - ref)))
    # bf16 MXU inputs vs. f32 reference: allow ~2e-2.
    assert jnp.allclose(out, ref, rtol=2e-2, atol=2e-2), f"max abs err = {max_err}"
    print("KERNEL_OK")
</pallas_src>

<mosaic_0001>
module attributes {stable_mosaic.version = 11 : i64} {
  func.func @_stats_kernel(%arg0: i32, %arg1: memref<4x9x9x4xbf16, #tpu.memory_space<vmem>>, %arg2: memref<9x4x8xbf16, #tpu.memory_space<vmem>>, %arg3: memref<1x1x8xf32, #tpu.memory_space<vmem>>, %arg4: memref<1x1x8xf32, #tpu.memory_space<vmem>>) attributes {dimension_semantics = [#tpu.dimension_semantics<parallel>], iteration_bounds = array<i64: 2>, scalar_prefetch = 0 : i64, scratch_operands = 0 : i64, tpu.core_type = #tpu.core_type<tc>, window_params = [{transform_indices = @transform_0, window_bounds = array<i64: 4, 9, 9, 4>}, {pipeline_mode = #tpu.pipeline_mode<synchronous>, transform_indices = @transform_1, window_bounds = array<i64: 9, 4, 8>}, {transform_indices = @transform_2, window_bounds = array<i64: 1, 1, 8>}, {transform_indices = @transform_3, window_bounds = array<i64: 1, 1, 8>}]} {
    %cst = arith.constant 0.000000e+00 : f32
    %0 = vector.broadcast %cst : f32 to vector<1x8xf32>
    %cst_0 = arith.constant 0.000000e+00 : f32
    %1 = vector.broadcast %cst_0 : f32 to vector<1x8xf32>
    %cst_1 = arith.constant 0.000000e+00 : f32
    %2 = vector.broadcast %cst_1 : f32 to vector<64x8xf32>
    %c0 = arith.constant 0 : index
    %c0_2 = arith.constant 0 : index
    %c0_3 = arith.constant 0 : index
    %c0_4 = arith.constant 0 : index
    %3 = vector.load %arg1[%c0, %c0_2, %c0_3, %c0_4] : memref<4x9x9x4xbf16, #tpu.memory_space<vmem>>, vector<1x8x8x4xbf16>
    %4 = vector.shape_cast %3 : vector<1x8x8x4xbf16> to vector<8x8x4xbf16>
    %5 = vector.shape_cast %4 : vector<8x8x4xbf16> to vector<64x4xbf16>
    %c0_5 = arith.constant 0 : index
    %c0_6 = arith.constant 0 : index
    %c0_7 = arith.constant 0 : index
    %6 = vector.load %arg2[%c0_5, %c0_6, %c0_7] : memref<9x4x8xbf16, #tpu.memory_space<vmem>>, vector<1x4x8xbf16>
    %7 = vector.shape_cast %6 : vector<1x4x8xbf16> to vector<4x8xbf16>
    %cst_8 = arith.constant dense<0.000000e+00> : vector<64x8xf32>
    %8 = tpu.matmul %5, %7, %cst_8 {dimension_numbers = #tpu.dot_dimension_numbers<[1], [0], [0], [1], [0, 0, 1, 1], [], []>} : vector<64x4xbf16>, vector<4x8xbf16>, vector<64x8xf32> -> vector<64x8xf32>
    %9 = arith.addf %2, %8 : vector<64x8xf32>
    %c1 = arith.constant 1 : index
    %c0_9 = arith.constant 0 : index
    %c0_10 = arith.constant 0 : index
    %c0_11 = arith.constant 0 : index
    %10 = vector.load %arg1[%c1, %c0_9, %c0_10, %c0_11] : memref<4x9x9x4xbf16, #tpu.memory_space<vmem>>, vector<1x8x8x4xbf16>
    %11 = vector.shape_cast %10 : vector<1x8x8x4xbf16> to vector<8x8x4xbf16>
    %12 = vector.shape_cast %11 : vector<8x8x4xbf16> to vector<64x4xbf16>
    %c1_12 = arith.constant 1 : index
    %c0_13 = arith.constant 0 : index
    %c0_14 = arith.constant 0 : index
    %13 = vector.load %arg2[%c1_12, %c0_13, %c0_14] : memref<9x4x8xbf16, #tpu.memory_space<vmem>>, vector<1x4x8xbf16>
    %14 = vector.shape_cast %13 : vector<1x4x8xbf16> to vector<4x8xbf16>
    %cst_15 = arith.constant dense<0.000000e+00> : vector<64x8xf32>
    %15 = tpu.matmul %12, %14, %cst_15 {dimension_numbers = #tpu.dot_dimension_numbers<[1], [0], [0], [1], [0, 0, 1, 1], [], []>} : vector<64x4xbf16>, vector<4x8xbf16>, vector<64x8xf32> -> vector<64x8xf32>
    %16 = arith.addf %9, %15 : vector<64x8xf32>
    %c0_16 = arith.constant 0 : index
    %c0_17 = arith.constant 0 : index
    %c1_18 = arith.constant 1 : index
    %c0_19 = arith.constant 0 : index
    %17 = vector.load %arg1[%c0_16, %c0_17, %c1_18, %c0_19] : memref<4x9x9x4xbf16, #tpu.memory_space<vmem>>, vector<1x8x8x4xbf16>
    %18 = vector.shape_cast %17 : vector<1x8x8x4xbf16> to vector<8x8x4xbf16>
    %19 = vector.shape_cast %18 : vector<8x8x4xbf16> to vector<64x4xbf16>
    %c2 = arith.constant 2 : index
    %c0_20 = arith.constant 0 : index
    %c0_21 = arith.constant 0 : index
    %20 = vector.load %arg2[%c2, %c0_20, %c0_21] : memref<9x4x8xbf16, #tpu.memory_space<vmem>>, vector<1x4x8xbf16>
    %21 = vector.shape_cast %20 : vector<1x4x8xbf16> to vector<4x8xbf16>
    %cst_22 = arith.constant dense<0.000000e+00> : vector<64x8xf32>
    %22 = tpu.matmul %19, %21, %cst_22 {dimension_numbers = #tpu.dot_dimension_numbers<[1], [0], [0], [1], [0, 0, 1, 1], [], []>} : vector<64x4xbf16>, vector<4x8xbf16>, vector<64x8xf32> -> vector<64x8xf32>
    %23 = arith.addf %16, %22 : vector<64x8xf32>
    %c2_23 = arith.constant 2 : index
    %c0_24 = arith.constant 0 : index
    %c0_25 = arith.constant 0 : index
    %c0_26 = arith.constant 0 : index
    %24 = vector.load %arg1[%c2_23, %c0_24, %c0_25, %c0_26] : memref<4x9x9x4xbf16, #tpu.memory_space<vmem>>, vector<1x8x8x4xbf16>
    %25 = vector.shape_cast %24 : vector<1x8x8x4xbf16> to vector<8x8x4xbf16>
    %26 = vector.shape_cast %25 : vector<8x8x4xbf16> to vector<64x4xbf16>
    %c3 = arith.constant 3 : index
    %c0_27 = arith.constant 0 : index
    %c0_28 = arith.constant 0 : index
    %27 = vector.load %arg2[%c3, %c0_27, %c0_28] : memref<9x4x8xbf16, #tpu.memory_space<vmem>>, vector<1x4x8xbf16>
    %28 = vector.shape_cast %27 : vector<1x4x8xbf16> to vector<4x8xbf16>
    %cst_29 = arith.constant dense<0.000000e+00> : vector<64x8xf32>
    %29 = tpu.matmul %26, %28, %cst_29 {dimension_numbers = #tpu.dot_dimension_numbers<[1], [0], [0], [1], [0, 0, 1, 1], [], []>} : vector<64x4xbf16>, vector<4x8xbf16>, vector<64x8xf32> -> vector<64x8xf32>
    %30 = arith.addf %23, %29 : vector<64x8xf32>
    %c3_30 = arith.constant 3 : index
    %c0_31 = arith.constant 0 : index
    %c0_32 = arith.constant 0 : index
    %c0_33 = arith.constant 0 : index
    %31 = vector.load %arg1[%c3_30, %c0_31, %c0_32, %c0_33] : memref<4x9x9x4xbf16, #tpu.memory_space<vmem>>, vector<1x8x8x4xbf16>
    %32 = vector.shape_cast %31 : vector<1x8x8x4xbf16> to vector<8x8x4xbf16>
    %33 = vector.shape_cast %32 : vector<8x8x4xbf16> to vector<64x4xbf16>
    %c4 = arith.constant 4 : index
    %c0_34 = arith.constant 0 : index
    %c0_35 = arith.constant 0 : index
    %34 = vector.load %arg2[%c4, %c0_34, %c0_35] : memref<9x4x8xbf16, #tpu.memory_space<vmem>>, vector<1x4x8xbf16>
    %35 = vector.shape_cast %34 : vector<1x4x8xbf16> to vector<4x8xbf16>
    %cst_36 = arith.constant dense<0.000000e+00> : vector<64x8xf32>
    %36 = tpu.matmul %33, %35, %cst_36 {dimension_numbers = #tpu.dot_dimension_numbers<[1], [0], [0], [1], [0, 0, 1, 1], [], []>} : vector<64x4xbf16>, vector<4x8xbf16>, vector<64x8xf32> -> vector<64x8xf32>
    %37 = arith.addf %30, %36 : vector<64x8xf32>
    %c2_37 = arith.constant 2 : index
    %c0_38 = arith.constant 0 : index
    %c1_39 = arith.constant 1 : index
    %c0_40 = arith.constant 0 : index
    %38 = vector.load %arg1[%c2_37, %c0_38, %c1_39, %c0_40] : memref<4x9x9x4xbf16, #tpu.memory_space<vmem>>, vector<1x8x8x4xbf16>
    %39 = vector.shape_cast %38 : vector<1x8x8x4xbf16> to vector<8x8x4xbf16>
    %40 = vector.shape_cast %39 : vector<8x8x4xbf16> to vector<64x4xbf16>
    %c5 = arith.constant 5 : index
    %c0_41 = arith.constant 0 : index
    %c0_42 = arith.constant 0 : index
    %41 = vector.load %arg2[%c5, %c0_41, %c0_42] : memref<9x4x8xbf16, #tpu.memory_space<vmem>>, vector<1x4x8xbf16>
    %42 = vector.shape_cast %41 : vector<1x4x8xbf16> to vector<4x8xbf16>
    %cst_43 = arith.constant dense<0.000000e+00> : vector<64x8xf32>
    %43 = tpu.matmul %40, %42, %cst_43 {dimension_numbers = #tpu.dot_dimension_numbers<[1], [0], [0], [1], [0, 0, 1, 1], [], []>} : vector<64x4xbf16>, vector<4x8xbf16>, vector<64x8xf32> -> vector<64x8xf32>
    %44 = arith.addf %37, %43 : vector<64x8xf32>
    %c0_44 = arith.constant 0 : index
    %c1_45 = arith.constant 1 : index
    %c0_46 = arith.constant 0 : index
    %c0_47 = arith.constant 0 : index
    %45 = vector.load %arg1[%c0_44, %c1_45, %c0_46, %c0_47] : memref<4x9x9x4xbf16, #tpu.memory_space<vmem>>, vector<1x8x8x4xbf16>
    %46 = vector.shape_cast %45 : vector<1x8x8x4xbf16> to vector<8x8x4xbf16>
    %47 = vector.shape_cast %46 : vector<8x8x4xbf16> to vector<64x4xbf16>
    %c6 = arith.constant 6 : index
    %c0_48 = arith.constant 0 : index
    %c0_49 = arith.constant 0 : index
    %48 = vector.load %arg2[%c6, %c0_48, %c0_49] : memref<9x4x8xbf16, #tpu.memory_space<vmem>>, vector<1x4x8xbf16>
    %49 = vector.shape_cast %48 : vector<1x4x8xbf16> to vector<4x8xbf16>
    %cst_50 = arith.constant dense<0.000000e+00> : vector<64x8xf32>
    %50 = tpu.matmul %47, %49, %cst_50 {dimension_numbers = #tpu.dot_dimension_numbers<[1], [0], [0], [1], [0, 0, 1, 1], [], []>} : vector<64x4xbf16>, vector<4x8xbf16>, vector<64x8xf32> -> vector<64x8xf32>
    %51 = arith.addf %44, %50 : vector<64x8xf32>
    %c1_51 = arith.constant 1 : index
    %c1_52 = arith.constant 1 : index
    %c0_53 = arith.constant 0 : index
    %c0_54 = arith.constant 0 : index
    %52 = vector.load %arg1[%c1_51, %c1_52, %c0_53, %c0_54] : memref<4x9x9x4xbf16, #tpu.memory_space<vmem>>, vector<1x8x8x4xbf16>
    %53 = vector.shape_cast %52 : vector<1x8x8x4xbf16> to vector<8x8x4xbf16>
    %54 = vector.shape_cast %53 : vector<8x8x4xbf16> to vector<64x4xbf16>
    %c7 = arith.constant 7 : index
    %c0_55 = arith.constant 0 : index
    %c0_56 = arith.constant 0 : index
    %55 = vector.load %arg2[%c7, %c0_55, %c0_56] : memref<9x4x8xbf16, #tpu.memory_space<vmem>>, vector<1x4x8xbf16>
    %56 = vector.shape_cast %55 : vector<1x4x8xbf16> to vector<4x8xbf16>
    %cst_57 = arith.constant dense<0.000000e+00> : vector<64x8xf32>
    %57 = tpu.matmul %54, %56, %cst_57 {dimension_numbers = #tpu.dot_dimension_numbers<[1], [0], [0], [1], [0, 0, 1, 1], [], []>} : vector<64x4xbf16>, vector<4x8xbf16>, vector<64x8xf32> -> vector<64x8xf32>
    %58 = arith.addf %51, %57 : vector<64x8xf32>
    %c0_58 = arith.constant 0 : index
    %c1_59 = arith.constant 1 : index
    %c1_60 = arith.constant 1 : index
    %c0_61 = arith.constant 0 : index
    %59 = vector.load %arg1[%c0_58, %c1_59, %c1_60, %c0_61] : memref<4x9x9x4xbf16, #tpu.memory_space<vmem>>, vector<1x8x8x4xbf16>
    %60 = vector.shape_cast %59 : vector<1x8x8x4xbf16> to vector<8x8x4xbf16>
    %61 = vector.shape_cast %60 : vector<8x8x4xbf16> to vector<64x4xbf16>
    %c8 = arith.constant 8 : index
    %c0_62 = arith.constant 0 : index
    %c0_63 = arith.constant 0 : index
    %62 = vector.load %arg2[%c8, %c0_62, %c0_63] : memref<9x4x8xbf16, #tpu.memory_space<vmem>>, vector<1x4x8xbf16>
    %63 = vector.shape_cast %62 : vector<1x4x8xbf16> to vector<4x8xbf16>
    %cst_64 = arith.constant dense<0.000000e+00> : vector<64x8xf32>
    %64 = tpu.matmul %61, %63, %cst_64 {dimension_numbers = #tpu.dot_dimension_numbers<[1], [0], [0], [1], [0, 0, 1, 1], [], []>} : vector<64x4xbf16>, vector<4x8xbf16>, vector<64x8xf32> -> vector<64x8xf32>
    %65 = arith.addf %58, %64 : vector<64x8xf32>
    %cst_65 = arith.constant dense<0.000000e+00> : vector<8xf32>
    %66 = vector.multi_reduction <add>, %65, %cst_65 [0] : vector<64x8xf32> to vector<8xf32>
    %67 = vector.shape_cast %66 : vector<8xf32> to vector<1x8xf32>
    %68 = arith.addf %0, %67 : vector<1x8xf32>
    %69 = arith.mulf %65, %65 : vector<64x8xf32>
    %cst_66 = arith.constant dense<0.000000e+00> : vector<8xf32>
    %70 = vector.multi_reduction <add>, %69, %cst_66 [0] : vector<64x8xf32> to vector<8xf32>
    %71 = vector.shape_cast %70 : vector<8xf32> to vector<1x8xf32>
    %72 = arith.addf %1, %71 : vector<1x8xf32>
    %cst_67 = arith.constant 0.000000e+00 : f32
    %73 = vector.broadcast %cst_67 : f32 to vector<64x8xf32>
    %c1_68 = arith.constant 1 : index
    %c0_69 = arith.constant 0 : index
    %c0_70 = arith.constant 0 : index
    %c0_71 = arith.constant 0 : index
    %74 = vector.load %arg1[%c1_68, %c0_69, %c0_70, %c0_71] : memref<4x9x9x4xbf16, #tpu.memory_space<vmem>>, vector<1x8x8x4xbf16>
    %75 = vector.shape_cast %74 : vector<1x8x8x4xbf16> to vector<8x8x4xbf16>
    %76 = vector.shape_cast %75 : vector<8x8x4xbf16> to vector<64x4xbf16>
    %c0_72 = arith.constant 0 : index
    %c0_73 = arith.constant 0 : index
    %c0_74 = arith.constant 0 : index
    %77 = vector.load %arg2[%c0_72, %c0_73, %c0_74] : memref<9x4x8xbf16, #tpu.memory_space<vmem>>, vector<1x4x8xbf16>
    %78 = vector.shape_cast %77 : vector<1x4x8xbf16> to vector<4x8xbf16>
    %cst_75 = arith.constant dense<0.000000e+00> : vector<64x8xf32>
    %79 = tpu.matmul %76, %78, %cst_75 {dimension_numbers = #tpu.dot_dimension_numbers<[1], [0], [0], [1], [0, 0, 1, 1], [], []>} : vector<64x4xbf16>, vector<4x8xbf16>, vector<64x8xf32> -> vector<64x8xf32>
    %80 = arith.addf %73, %79 : vector<64x8xf32>
    %c0_76 = arith.constant 0 : index
    %c0_77 = arith.constant 0 : index
    %c1_78 = arith.constant 1 : index
    %c0_79 = arith.constant 0 : index
    %81 = vector.load %arg1[%c0_76, %c0_77, %c1_78, %c0_79] : memref<4x9x9x4xbf16, #tpu.memory_space<vmem>>, vector<1x8x8x4xbf16>
    %82 = vector.shape_cast %81 : vector<1x8x8x4xbf16> to vector<8x8x4xbf16>
    %83 = vector.shape_cast %82 : vector<8x8x4xbf16> to vector<64x4xbf16>
    %c1_80 = arith.constant 1 : index
    %c0_81 = arith.constant 0 : index
    %c0_82 = arith.constant 0 : index
    %84 = vector.load %arg2[%c1_80, %c0_81, %c0_82] : memref<9x4x8xbf16, #tpu.memory_space<vmem>>, vector<1x4x8xbf16>
    %85 = vector.shape_cast %84 : vector<1x4x8xbf16> to vector<4x8xbf16>
    %cst_83 = arith.constant dense<0.000000e+00> : vector<64x8xf32>
    %86 = tpu.matmul %83, %85, %cst_83 {dimension_numbers = #tpu.dot_dimension_numbers<[1], [0], [0], [1], [0, 0, 1, 1], [], []>} : vector<64x4xbf16>, vector<4x8xbf16>, vector<64x8xf32> -> vector<64x8xf32>
    %87 = arith.addf %80, %86 : vector<64x8xf32>
    %c1_84 = arith.constant 1 : index
    %c0_85 = arith.constant 0 : index
    %c1_86 = arith.constant 1 : index
    %c0_87 = arith.constant 0 : index
    %88 = vector.load %arg1[%c1_84, %c0_85, %c1_86, %c0_87] : memref<4x9x9x4xbf16, #tpu.memory_space<vmem>>, vector<1x8x8x4xbf16>
    %89 = vector.shape_cast %88 : vector<1x8x8x4xbf16> to vector<8x8x4xbf16>
    %90 = vector.shape_cast %89 : vector<8x8x4xbf16> to vector<64x4xbf16>
    %c2_88 = arith.constant 2 : index
    %c0_89 = arith.constant 0 : index
    %c0_90 = arith.constant 0 : index
    %91 = vector.load %arg2[%c2_88, %c0_89, %c0_90] : memref<9x4x8xbf16, #tpu.memory_space<vmem>>, vector<1x4x8xbf16>
    %92 = vector.shape_cast %91 : vector<1x4x8xbf16> to vector<4x8xbf16>
    %cst_91 = arith.constant dense<0.000000e+00> : vector<64x8xf32>
    %93 = tpu.matmul %90, %92, %cst_91 {dimension_numbers = #tpu.dot_dimension_numbers<[1], [0], [0], [1], [0, 0, 1, 1], [], []>} : vector<64x4xbf16>, vector<4x8xbf16>, vector<64x8xf32> -> vector<64x8xf32>
    %94 = arith.addf %87, %93 : vector<64x8xf32>
    %c3_92 = arith.constant 3 : index
    %c0_93 = arith.constant 0 : index
    %c0_94 = arith.constant 0 : index
    %c0_95 = arith.constant 0 : index
    %95 = vector.load %arg1[%c3_92, %c0_93, %c0_94, %c0_95] : memref<4x9x9x4xbf16, #tpu.memory_space<vmem>>, vector<1x8x8x4xbf16>
    %96 = vector.shape_cast %95 : vector<1x8x8x4xbf16> to vector<8x8x4xbf16>
    %97 = vector.shape_cast %96 : vector<8x8x4xbf16> to vector<64x4xbf16>
    %c3_96 = arith.constant 3 : index
    %c0_97 = arith.constant 0 : index
    %c0_98 = arith.constant 0 : index
    %98 = vector.load %arg2[%c3_96, %c0_97, %c0_98] : memref<9x4x8xbf16, #tpu.memory_space<vmem>>, vector<1x4x8xbf16>
    %99 = vector.shape_cast %98 : vector<1x4x8xbf16> to vector<4x8xbf16>
    %cst_99 = arith.constant dense<0.000000e+00> : vector<64x8xf32>
    %100 = tpu.matmul %97, %99, %cst_99 {dimension_numbers = #tpu.dot_dimension_numbers<[1], [0], [0], [1], [0, 0, 1, 1], [], []>} : vector<64x4xbf16>, vector<4x8xbf16>, vector<64x8xf32> -> vector<64x8xf32>
    %101 = arith.addf %94, %100 : vector<64x8xf32>
    %c2_100 = arith.constant 2 : index
    %c0_101 = arith.constant 0 : index
    %c1_102 = arith.constant 1 : index
    %c0_103 = arith.constant 0 : index
    %102 = vector.load %arg1[%c2_100, %c0_101, %c1_102, %c0_103] : memref<4x9x9x4xbf16, #tpu.memory_space<vmem>>, vector<1x8x8x4xbf16>
    %103 = vector.shape_cast %102 : vector<1x8x8x4xbf16> to vector<8x8x4xbf16>
    %104 = vector.shape_cast %103 : vector<8x8x4xbf16> to vector<64x4xbf16>
    %c4_104 = arith.constant 4 : index
    %c0_105 = arith.constant 0 : index
    %c0_106 = arith.constant 0 : index
    %105 = vector.load %arg2[%c4_104, %c0_105, %c0_106] : memref<9x4x8xbf16, #tpu.memory_space<vmem>>, vector<1x4x8xbf16>
    %106 = vector.shape_cast %105 : vector<1x4x8xbf16> to vector<4x8xbf16>
    %cst_107 = arith.constant dense<0.000000e+00> : vector<64x8xf32>
    %107 = tpu.matmul %104, %106, %cst_107 {dimension_numbers = #tpu.dot_dimension_numbers<[1], [0], [0], [1], [0, 0, 1, 1], [], []>} : vector<64x4xbf16>, vector<4x8xbf16>, vector<64x8xf32> -> vector<64x8xf32>
    %108 = arith.addf %101, %107 : vector<64x8xf32>
    %c3_108 = arith.constant 3 : index
    %c0_109 = arith.constant 0 : index
    %c1_110 = arith.constant 1 : index
    %c0_111 = arith.constant 0 : index
    %109 = vector.load %arg1[%c3_108, %c0_109, %c1_110, %c0_111] : memref<4x9x9x4xbf16, #tpu.memory_space<vmem>>, vector<1x8x8x4xbf16>
    %110 = vector.shape_cast %109 : vector<1x8x8x4xbf16> to vector<8x8x4xbf16>
    %111 = vector.shape_cast %110 : vector<8x8x4xbf16> to vector<64x4xbf16>
    %c5_112 = arith.constant 5 : index
    %c0_113 = arith.constant 0 : index
    %c0_114 = arith.constant 0 : index
    %112 = vector.load %arg2[%c5_112, %c0_113, %c0_114] : memref<9x4x8xbf16, #tpu.memory_space<vmem>>, vector<1x4x8xbf16>
    %113 = vector.shape_cast %112 : vector<1x4x8xbf16> to vector<4x8xbf16>
    %cst_115 = arith.constant dense<0.000000e+00> : vector<64x8xf32>
    %114 = tpu.matmul %111, %113, %cst_115 {dimension_numbers = #tpu.dot_dimension_numbers<[1], [0], [0], [1], [0, 0, 1, 1], [], []>} : vector<64x4xbf16>, vector<4x8xbf16>, vector<64x8xf32> -> vector<64x8xf32>
    %115 = arith.addf %108, %114 : vector<64x8xf32>
    %c1_116 = arith.constant 1 : index
    %c1_117 = arith.constant 1 : index
    %c0_118 = arith.constant 0 : index
    %c0_119 = arith.constant 0 : index
    %116 = vector.load %arg1[%c1_116, %c1_117, %c0_118, %c0_119] : memref<4x9x9x4xbf16, #tpu.memory_space<vmem>>, vector<1x8x8x4xbf16>
    %117 = vector.shape_cast %116 : vector<1x8x8x4xbf16> to vector<8x8x4xbf16>
    %118 = vector.shape_cast %117 : vector<8x8x4xbf16> to vector<64x4xbf16>
    %c6_120 = arith.constant 6 : index
    %c0_121 = arith.constant 0 : index
    %c0_122 = arith.constant 0 : index
    %119 = vector.load %arg2[%c6_120, %c0_121, %c0_122] : memref<9x4x8xbf16, #tpu.memory_space<vmem>>, vector<1x4x8xbf16>
    %120 = vector.shape_cast %119 : vector<1x4x8xbf16> to vector<4x8xbf16>
    %cst_123 = arith.constant dense<0.000000e+00> : vector<64x8xf32>
    %121 = tpu.matmul %118, %120, %cst_123 {dimension_numbers = #tpu.dot_dimension_numbers<[1], [0], [0], [1], [0, 0, 1, 1], [], []>} : vector<64x4xbf16>, vector<4x8xbf16>, vector<64x8xf32> -> vector<64x8xf32>
    %122 = arith.addf %115, %121 : vector<64x8xf32>
    %c0_124 = arith.constant 0 : index
    %c1_125 = arith.constant 1 : index
    %c1_126 = arith.constant 1 : index
    %c0_127 = arith.constant 0 : index
    %123 = vector.load %arg1[%c0_124, %c1_125, %c1_126, %c0_127] : memref<4x9x9x4xbf16, #tpu.memory_space<vmem>>, vector<1x8x8x4xbf16>
    %124 = vector.shape_cast %123 : vector<1x8x8x4xbf16> to vector<8x8x4xbf16>
    %125 = vector.shape_cast %124 : vector<8x8x4xbf16> to vector<64x4xbf16>
    %c7_128 = arith.constant 7 : index
    %c0_129 = arith.constant 0 : index
    %c0_130 = arith.constant 0 : index
    %126 = vector.load %arg2[%c7_128, %c0_129, %c0_130] : memref<9x4x8xbf16, #tpu.memory_space<vmem>>, vector<1x4x8xbf16>
    %127 = vector.shape_cast %126 : vector<1x4x8xbf16> to vector<4x8xbf16>
    %cst_131 = arith.constant dense<0.000000e+00> : vector<64x8xf32>
    %128 = tpu.matmul %125, %127, %cst_131 {dimension_numbers = #tpu.dot_dimension_numbers<[1], [0], [0], [1], [0, 0, 1, 1], [], []>} : vector<64x4xbf16>, vector<4x8xbf16>, vector<64x8xf32> -> vector<64x8xf32>
    %129 = arith.addf %122, %128 : vector<64x8xf32>
    %c1_132 = arith.constant 1 : index
    %c1_133 = arith.constant 1 : index
    %c1_134 = arith.constant 1 : index
    %c0_135 = arith.constant 0 : index
    %130 = vector.load %arg1[%c1_132, %c1_133, %c1_134, %c0_135] : memref<4x9x9x4xbf16, #tpu.memory_space<vmem>>, vector<1x8x8x4xbf16>
    %131 = vector.shape_cast %130 : vector<1x8x8x4xbf16> to vector<8x8x4xbf16>
    %132 = vector.shape_cast %131 : vector<8x8x4xbf16> to vector<64x4xbf16>
    %c8_136 = arith.constant 8 : index
    %c0_137 = arith.constant 0 : index
    %c0_138 = arith.constant 0 : index
    %133 = vector.load %arg2[%c8_136, %c0_137, %c0_138] : memref<9x4x8xbf16, #tpu.memory_space<vmem>>, vector<1x4x8xbf16>
    %134 = vector.shape_cast %133 : vector<1x4x8xbf16> to vector<4x8xbf16>
    %cst_139 = arith.constant dense<0.000000e+00> : vector<64x8xf32>
    %135 = tpu.matmul %132, %134, %cst_139 {dimension_numbers = #tpu.dot_dimension_numbers<[1], [0], [0], [1], [0, 0, 1, 1], [], []>} : vector<64x4xbf16>, vector<4x8xbf16>, vector<64x8xf32> -> vector<64x8xf32>
    %136 = arith.addf %129, %135 : vector<64x8xf32>
    %cst_140 = arith.constant dense<0.000000e+00> : vector<8xf32>
    %137 = vector.multi_reduction <add>, %136, %cst_140 [0] : vector<64x8xf32> to vector<8xf32>
    %138 = vector.shape_cast %137 : vector<8xf32> to vector<1x8xf32>
    %139 = arith.addf %68, %138 : vector<1x8xf32>
    %140 = arith.mulf %136, %136 : vector<64x8xf32>
    %cst_141 = arith.constant dense<0.000000e+00> : vector<8xf32>
    %141 = vector.multi_reduction <add>, %140, %cst_141 [0] : vector<64x8xf32> to vector<8xf32>
    %142 = vector.shape_cast %141 : vector<8xf32> to vector<1x8xf32>
    %143 = arith.addf %72, %142 : vector<1x8xf32>
    %cst_142 = arith.constant 0.000000e+00 : f32
    %144 = vector.broadcast %cst_142 : f32 to vector<64x8xf32>
    %c2_143 = arith.constant 2 : index
    %c0_144 = arith.constant 0 : index
    %c0_145 = arith.constant 0 : index
    %c0_146 = arith.constant 0 : index
    %145 = vector.load %arg1[%c2_143, %c0_144, %c0_145, %c0_146] : memref<4x9x9x4xbf16, #tpu.memory_space<vmem>>, vector<1x8x8x4xbf16>
    %146 = vector.shape_cast %145 : vector<1x8x8x4xbf16> to vector<8x8x4xbf16>
    %147 = vector.shape_cast %146 : vector<8x8x4xbf16> to vector<64x4xbf16>
    %c0_147 = arith.constant 0 : index
    %c0_148 = arith.constant 0 : index
    %c0_149 = arith.constant 0 : index
    %148 = vector.load %arg2[%c0_147, %c0_148, %c0_149] : memref<9x4x8xbf16, #tpu.memory_space<vmem>>, vector<1x4x8xbf16>
    %149 = vector.shape_cast %148 : vector<1x4x8xbf16> to vector<4x8xbf16>
    %cst_150 = arith.constant dense<0.000000e+00> : vector<64x8xf32>
    %150 = tpu.matmul %147, %149, %cst_150 {dimension_numbers = #tpu.dot_dimension_numbers<[1], [0], [0], [1], [0, 0, 1, 1], [], []>} : vector<64x4xbf16>, vector<4x8xbf16>, vector<64x8xf32> -> vector<64x8xf32>
    %151 = arith.addf %144, %150 : vector<64x8xf32>
    %c3_151 = arith.constant 3 : index
    %c0_152 = arith.constant 0 : index
    %c0_153 = arith.constant 0 : index
    %c0_154 = arith.constant 0 : index
    %152 = vector.load %arg1[%c3_151, %c0_152, %c0_153, %c0_154] : memref<4x9x9x4xbf16, #tpu.memory_space<vmem>>, vector<1x8x8x4xbf16>
    %153 = vector.shape_cast %152 : vector<1x8x8x4xbf16> to vector<8x8x4xbf16>
    %154 = vector.shape_cast %153 : vector<8x8x4xbf16> to vector<64x4xbf16>
    %c1_155 = arith.constant 1 : index
    %c0_156 = arith.constant 0 : index
    %c0_157 = arith.constant 0 : index
    %155 = vector.load %arg2[%c1_155, %c0_156, %c0_157] : memref<9x4x8xbf16, #tpu.memory_space<vmem>>, vector<1x4x8xbf16>
    %156 = vector.shape_cast %155 : vector<1x4x8xbf16> to vector<4x8xbf16>
    %cst_158 = arith.constant dense<0.000000e+00> : vector<64x8xf32>
    %157 = tpu.matmul %154, %156, %cst_158 {dimension_numbers = #tpu.dot_dimension_numbers<[1], [0], [0], [1], [0, 0, 1, 1], [], []>} : vector<64x4xbf16>, vector<4x8xbf16>, vector<64x8xf32> -> vector<64x8xf32>
    %158 = arith.addf %151, %157 : vector<64x8xf32>
    %c2_159 = arith.constant 2 : index
    %c0_160 = arith.constant 0 : index
    %c1_161 = arith.constant 1 : index
    %c0_162 = arith.constant 0 : index
    %159 = vector.load %arg1[%c2_159, %c0_160, %c1_161, %c0_162] : memref<4x9x9x4xbf16, #tpu.memory_space<vmem>>, vector<1x8x8x4xbf16>
    %160 = vector.shape_cast %159 : vector<1x8x8x4xbf16> to vector<8x8x4xbf16>
    %161 = vector.shape_cast %160 : vector<8x8x4xbf16> to vector<64x4xbf16>
    %c2_163 = arith.constant 2 : index
    %c0_164 = arith.constant 0 : index
    %c0_165 = arith.constant 0 : index
    %162 = vector.load %arg2[%c2_163, %c0_164, %c0_165] : memref<9x4x8xbf16, #tpu.memory_space<vmem>>, vector<1x4x8xbf16>
    %163 = vector.shape_cast %162 : vector<1x4x8xbf16> to vector<4x8xbf16>
    %cst_166 = arith.constant dense<0.000000e+00> : vector<64x8xf32>
    %164 = tpu.matmul %161, %163, %cst_166 {dimension_numbers = #tpu.dot_dimension_numbers<[1], [0], [0], [1], [0, 0, 1, 1], [], []>} : vector<64x4xbf16>, vector<4x8xbf16>, vector<64x8xf32> -> vector<64x8xf32>
    %165 = arith.addf %158, %164 : vector<64x8xf32>
    %c0_167 = arith.constant 0 : index
    %c1_168 = arith.constant 1 : index
    %c0_169 = arith.constant 0 : index
    %c0_170 = arith.constant 0 : index
    %166 = vector.load %arg1[%c0_167, %c1_168, %c0_169, %c0_170] : memref<4x9x9x4xbf16, #tpu.memory_space<vmem>>, vector<1x8x8x4xbf16>
    %167 = vector.shape_cast %166 : vector<1x8x8x4xbf16> to vector<8x8x4xbf16>
    %168 = vector.shape_cast %167 : vector<8x8x4xbf16> to vector<64x4xbf16>
    %c3_171 = arith.constant 3 : index
    %c0_172 = arith.constant 0 : index
    %c0_173 = arith.constant 0 : index
    %169 = vector.load %arg2[%c3_171, %c0_172, %c0_173] : memref<9x4x8xbf16, #tpu.memory_space<vmem>>, vector<1x4x8xbf16>
    %170 = vector.shape_cast %169 : vector<1x4x8xbf16> to vector<4x8xbf16>
    %cst_174 = arith.constant dense<0.000000e+00> : vector<64x8xf32>
    %171 = tpu.matmul %168, %170, %cst_174 {dimension_numbers = #tpu.dot_dimension_numbers<[1], [0], [0], [1], [0, 0, 1, 1], [], []>} : vector<64x4xbf16>, vector<4x8xbf16>, vector<64x8xf32> -> vector<64x8xf32>
    %172 = arith.addf %165, %171 : vector<64x8xf32>
    %c1_175 = arith.constant 1 : index
    %c1_176 = arith.constant 1 : index
    %c0_177 = arith.constant 0 : index
    %c0_178 = arith.constant 0 : index
    %173 = vector.load %arg1[%c1_175, %c1_176, %c0_177, %c0_178] : memref<4x9x9x4xbf16, #tpu.memory_space<vmem>>, vector<1x8x8x4xbf16>
    %174 = vector.shape_cast %173 : vector<1x8x8x4xbf16> to vector<8x8x4xbf16>
    %175 = vector.shape_cast %174 : vector<8x8x4xbf16> to vector<64x4xbf16>
    %c4_179 = arith.constant 4 : index
    %c0_180 = arith.constant 0 : index
    %c0_181 = arith.constant 0 : index
    %176 = vector.load %arg2[%c4_179, %c0_180, %c0_181] : memref<9x4x8xbf16, #tpu.memory_space<vmem>>, vector<1x4x8xbf16>
    %177 = vector.shape_cast %176 : vector<1x4x8xbf16> to vector<4x8xbf16>
    %cst_182 = arith.constant dense<0.000000e+00> : vector<64x8xf32>
    %178 = tpu.matmul %175, %177, %cst_182 {dimension_numbers = #tpu.dot_dimension_numbers<[1], [0], [0], [1], [0, 0, 1, 1], [], []>} : vector<64x4xbf16>, vector<4x8xbf16>, vector<64x8xf32> -> vector<64x8xf32>
    %179 = arith.addf %172, %178 : vector<64x8xf32>
    %c0_183 = arith.constant 0 : index
    %c1_184 = arith.constant 1 : index
    %c1_185 = arith.constant 1 : index
    %c0_186 = arith.constant 0 : index
    %180 = vector.load %arg1[%c0_183, %c1_184, %c1_185, %c0_186] : memref<4x9x9x4xbf16, #tpu.memory_space<vmem>>, vector<1x8x8x4xbf16>
    %181 = vector.shape_cast %180 : vector<1x8x8x4xbf16> to vector<8x8x4xbf16>
    %182 = vector.shape_cast %181 : vector<8x8x4xbf16> to vector<64x4xbf16>
    %c5_187 = arith.constant 5 : index
    %c0_188 = arith.constant 0 : index
    %c0_189 = arith.constant 0 : index
    %183 = vector.load %arg2[%c5_187, %c0_188, %c0_189] : memref<9x4x8xbf16, #tpu.memory_space<vmem>>, vector<1x4x8xbf16>
    %184 = vector.shape_cast %183 : vector<1x4x8xbf16> to vector<4x8xbf16>
    %cst_190 = arith.constant dense<0.000000e+00> : vector<64x8xf32>
    %185 = tpu.matmul %182, %184, %cst_190 {dimension_numbers = #tpu.dot_dimension_numbers<[1], [0], [0], [1], [0, 0, 1, 1], [], []>} : vector<64x4xbf16>, vector<4x8xbf16>, vector<64x8xf32> -> vector<64x8xf32>
    %186 = arith.addf %179, %185 : vector<64x8xf32>
    %c2_191 = arith.constant 2 : index
    %c1_192 = arith.constant 1 : index
    %c0_193 = arith.constant 0 : index
    %c0_194 = arith.constant 0 : index
    %187 = vector.load %arg1[%c2_191, %c1_192, %c0_193, %c0_194] : memref<4x9x9x4xbf16, #tpu.memory_space<vmem>>, vector<1x8x8x4xbf16>
    %188 = vector.shape_cast %187 : vector<1x8x8x4xbf16> to vector<8x8x4xbf16>
    %189 = vector.shape_cast %188 : vector<8x8x4xbf16> to vector<64x4xbf16>
    %c6_195 = arith.constant 6 : index
    %c0_196 = arith.constant 0 : index
    %c0_197 = arith.constant 0 : index
    %190 = vector.load %arg2[%c6_195, %c0_196, %c0_197] : memref<9x4x8xbf16, #tpu.memory_space<vmem>>, vector<1x4x8xbf16>
    %191 = vector.shape_cast %190 : vector<1x4x8xbf16> to vector<4x8xbf16>
    %cst_198 = arith.constant dense<0.000000e+00> : vector<64x8xf32>
    %192 = tpu.matmul %189, %191, %cst_198 {dimension_numbers = #tpu.dot_dimension_numbers<[1], [0], [0], [1], [0, 0, 1, 1], [], []>} : vector<64x4xbf16>, vector<4x8xbf16>, vector<64x8xf32> -> vector<64x8xf32>
    %193 = arith.addf %186, %192 : vector<64x8xf32>
    %c3_199 = arith.constant 3 : index
    %c1_200 = arith.constant 1 : index
    %c0_201 = arith.constant 0 : index
    %c0_202 = arith.constant 0 : index
    %194 = vector.load %arg1[%c3_199, %c1_200, %c0_201, %c0_202] : memref<4x9x9x4xbf16, #tpu.memory_space<vmem>>, vector<1x8x8x4xbf16>
    %195 = vector.shape_cast %194 : vector<1x8x8x4xbf16> to vector<8x8x4xbf16>
    %196 = vector.shape_cast %195 : vector<8x8x4xbf16> to vector<64x4xbf16>
    %c7_203 = arith.constant 7 : index
    %c0_204 = arith.constant 0 : index
    %c0_205 = arith.constant 0 : index
    %197 = vector.load %arg2[%c7_203, %c0_204, %c0_205] : memref<9x4x8xbf16, #tpu.memory_space<vmem>>, vector<1x4x8xbf16>
    %198 = vector.shape_cast %197 : vector<1x4x8xbf16> to vector<4x8xbf16>
    %cst_206 = arith.constant dense<0.000000e+00> : vector<64x8xf32>
    %199 = tpu.matmul %196, %198, %cst_206 {dimension_numbers = #tpu.dot_dimension_numbers<[1], [0], [0], [1], [0, 0, 1, 1], [], []>} : vector<64x4xbf16>, vector<4x8xbf16>, vector<64x8xf32> -> vector<64x8xf32>
    %200 = arith.addf %193, %199 : vector<64x8xf32>
    %c2_207 = arith.constant 2 : index
    %c1_208 = arith.constant 1 : index
    %c1_209 = arith.constant 1 : index
    %c0_210 = arith.constant 0 : index
    %201 = vector.load %arg1[%c2_207, %c1_208, %c1_209, %c0_210] : memref<4x9x9x4xbf16, #tpu.memory_space<vmem>>, vector<1x8x8x4xbf16>
    %202 = vector.shape_cast %201 : vector<1x8x8x4xbf16> to vector<8x8x4xbf16>
    %203 = vector.shape_cast %202 : vector<8x8x4xbf16> to vector<64x4xbf16>
    %c8_211 = arith.constant 8 : index
    %c0_212 = arith.constant 0 : index
    %c0_213 = arith.constant 0 : index
    %204 = vector.load %arg2[%c8_211, %c0_212, %c0_213] : memref<9x4x8xbf16, #tpu.memory_space<vmem>>, vector<1x4x8xbf16>
    %205 = vector.shape_cast %204 : vector<1x4x8xbf16> to vector<4x8xbf16>
    %cst_214 = arith.constant dense<0.000000e+00> : vector<64x8xf32>
    %206 = tpu.matmul %203, %205, %cst_214 {dimension_numbers = #tpu.dot_dimension_numbers<[1], [0], [0], [1], [0, 0, 1, 1], [], []>} : vector<64x4xbf16>, vector<4x8xbf16>, vector<64x8xf32> -> vector<64x8xf32>
    %207 = arith.addf %200, %206 : vector<64x8xf32>
    %cst_215 = arith.constant dense<0.000000e+00> : vector<8xf32>
    %208 = vector.multi_reduction <add>, %207, %cst_215 [0] : vector<64x8xf32> to vector<8xf32>
    %209 = vector.shape_cast %208 : vector<8xf32> to vector<1x8xf32>
    %210 = arith.addf %139, %209 : vector<1x8xf32>
    %211 = arith.mulf %207, %207 : vector<64x8xf32>
    %cst_216 = arith.constant dense<0.000000e+00> : vector<8xf32>
    %212 = vector.multi_reduction <add>, %211, %cst_216 [0] : vector<64x8xf32> to vector<8xf32>
    %213 = vector.shape_cast %212 : vector<8xf32> to vector<1x8xf32>
    %214 = arith.addf %143, %213 : vector<1x8xf32>
    %cst_217 = arith.constant 0.000000e+00 : f32
    %215 = vector.broadcast %cst_217 : f32 to vector<64x8xf32>
    %c3_218 = arith.constant 3 : index
    %c0_219 = arith.constant 0 : index
    %c0_220 = arith.constant 0 : index
    %c0_221 = arith.constant 0 : index
    %216 = vector.load %arg1[%c3_218, %c0_219, %c0_220, %c0_221] : memref<4x9x9x4xbf16, #tpu.memory_space<vmem>>, vector<1x8x8x4xbf16>
    %217 = vector.shape_cast %216 : vector<1x8x8x4xbf16> to vector<8x8x4xbf16>
    %218 = vector.shape_cast %217 : vector<8x8x4xbf16> to vector<64x4xbf16>
    %c0_222 = arith.constant 0 : index
    %c0_223 = arith.constant 0 : index
    %c0_224 = arith.constant 0 : index
    %219 = vector.load %arg2[%c0_222, %c0_223, %c0_224] : memref<9x4x8xbf16, #tpu.memory_space<vmem>>, vector<1x4x8xbf16>
    %220 = vector.shape_cast %219 : vector<1x4x8xbf16> to vector<4x8xbf16>
    %cst_225 = arith.constant dense<0.000000e+00> : vector<64x8xf32>
    %221 = tpu.matmul %218, %220, %cst_225 {dimension_numbers = #tpu.dot_dimension_numbers<[1], [0], [0], [1], [0, 0, 1, 1], [], []>} : vector<64x4xbf16>, vector<4x8xbf16>, vector<64x8xf32> -> vector<64x8xf32>
    %222 = arith.addf %215, %221 : vector<64x8xf32>
    %c2_226 = arith.constant 2 : index
    %c0_227 = arith.constant 0 : index
    %c1_228 = arith.constant 1 : index
    %c0_229 = arith.constant 0 : index
    %223 = vector.load %arg1[%c2_226, %c0_227, %c1_228, %c0_229] : memref<4x9x9x4xbf16, #tpu.memory_space<vmem>>, vector<1x8x8x4xbf16>
    %224 = vector.shape_cast %223 : vector<1x8x8x4xbf16> to vector<8x8x4xbf16>
    %225 = vector.shape_cast %224 : vector<8x8x4xbf16> to vector<64x4xbf16>
    %c1_230 = arith.constant 1 : index
    %c0_231 = arith.constant 0 : index
    %c0_232 = arith.constant 0 : index
    %226 = vector.load %arg2[%c1_230, %c0_231, %c0_232] : memref<9x4x8xbf16, #tpu.memory_space<vmem>>, vector<1x4x8xbf16>
    %227 = vector.shape_cast %226 : vector<1x4x8xbf16> to vector<4x8xbf16>
    %cst_233 = arith.constant dense<0.000000e+00> : vector<64x8xf32>
    %228 = tpu.matmul %225, %227, %cst_233 {dimension_numbers = #tpu.dot_dimension_numbers<[1], [0], [0], [1], [0, 0, 1, 1], [], []>} : vector<64x4xbf16>, vector<4x8xbf16>, vector<64x8xf32> -> vector<64x8xf32>
    %229 = arith.addf %222, %228 : vector<64x8xf32>
    %c3_234 = arith.constant 3 : index
    %c0_235 = arith.constant 0 : index
    %c1_236 = arith.constant 1 : index
    %c0_237 = arith.constant 0 : index
    %230 = vector.load %arg1[%c3_234, %c0_235, %c1_236, %c0_237] : memref<4x9x9x4xbf16, #tpu.memory_space<vmem>>, vector<1x8x8x4xbf16>
    %231 = vector.shape_cast %230 : vector<1x8x8x4xbf16> to vector<8x8x4xbf16>
    %232 = vector.shape_cast %231 : vector<8x8x4xbf16> to vector<64x4xbf16>
    %c2_238 = arith.constant 2 : index
    %c0_239 = arith.constant 0 : index
    %c0_240 = arith.constant 0 : index
    %233 = vector.load %arg2[%c2_238, %c0_239, %c0_240] : memref<9x4x8xbf16, #tpu.memory_space<vmem>>, vector<1x4x8xbf16>
    %234 = vector.shape_cast %233 : vector<1x4x8xbf16> to vector<4x8xbf16>
    %cst_241 = arith.constant dense<0.000000e+00> : vector<64x8xf32>
    %235 = tpu.matmul %232, %234, %cst_241 {dimension_numbers = #tpu.dot_dimension_numbers<[1], [0], [0], [1], [0, 0, 1, 1], [], []>} : vector<64x4xbf16>, vector<4x8xbf16>, vector<64x8xf32> -> vector<64x8xf32>
    %236 = arith.addf %229, %235 : vector<64x8xf32>
    %c1_242 = arith.constant 1 : index
    %c1_243 = arith.constant 1 : index
    %c0_244 = arith.constant 0 : index
    %c0_245 = arith.constant 0 : index
    %237 = vector.load %arg1[%c1_242, %c1_243, %c0_244, %c0_245] : memref<4x9x9x4xbf16, #tpu.memory_space<vmem>>, vector<1x8x8x4xbf16>
    %238 = vector.shape_cast %237 : vector<1x8x8x4xbf16> to vector<8x8x4xbf16>
    %239 = vector.shape_cast %238 : vector<8x8x4xbf16> to vector<64x4xbf16>
    %c3_246 = arith.constant 3 : index
    %c0_247 = arith.constant 0 : index
    %c0_248 = arith.constant 0 : index
    %240 = vector.load %arg2[%c3_246, %c0_247, %c0_248] : memref<9x4x8xbf16, #tpu.memory_space<vmem>>, vector<1x4x8xbf16>
    %241 = vector.shape_cast %240 : vector<1x4x8xbf16> to vector<4x8xbf16>
    %cst_249 = arith.constant dense<0.000000e+00> : vector<64x8xf32>
    %242 = tpu.matmul %239, %241, %cst_249 {dimension_numbers = #tpu.dot_dimension_numbers<[1], [0], [0], [1], [0, 0, 1, 1], [], []>} : vector<64x4xbf16>, vector<4x8xbf16>, vector<64x8xf32> -> vector<64x8xf32>
    %243 = arith.addf %236, %242 : vector<64x8xf32>
    %c0_250 = arith.constant 0 : index
    %c1_251 = arith.constant 1 : index
    %c1_252 = arith.constant 1 : index
    %c0_253 = arith.constant 0 : index
    %244 = vector.load %arg1[%c0_250, %c1_251, %c1_252, %c0_253] : memref<4x9x9x4xbf16, #tpu.memory_space<vmem>>, vector<1x8x8x4xbf16>
    %245 = vector.shape_cast %244 : vector<1x8x8x4xbf16> to vector<8x8x4xbf16>
    %246 = vector.shape_cast %245 : vector<8x8x4xbf16> to vector<64x4xbf16>
    %c4_254 = arith.constant 4 : index
    %c0_255 = arith.constant 0 : index
    %c0_256 = arith.constant 0 : index
    %247 = vector.load %arg2[%c4_254, %c0_255, %c0_256] : memref<9x4x8xbf16, #tpu.memory_space<vmem>>, vector<1x4x8xbf16>
    %248 = vector.shape_cast %247 : vector<1x4x8xbf16> to vector<4x8xbf16>
    %cst_257 = arith.constant dense<0.000000e+00> : vector<64x8xf32>
    %249 = tpu.matmul %246, %248, %cst_257 {dimension_numbers = #tpu.dot_dimension_numbers<[1], [0], [0], [1], [0, 0, 1, 1], [], []>} : vector<64x4xbf16>, vector<4x8xbf16>, vector<64x8xf32> -> vector<64x8xf32>
    %250 = arith.addf %243, %249 : vector<64x8xf32>
    %c1_258 = arith.constant 1 : index
    %c1_259 = arith.constant 1 : index
    %c1_260 = arith.constant 1 : index
    %c0_261 = arith.constant 0 : index
    %251 = vector.load %arg1[%c1_258, %c1_259, %c1_260, %c0_261] : memref<4x9x9x4xbf16, #tpu.memory_space<vmem>>, vector<1x8x8x4xbf16>
    %252 = vector.shape_cast %251 : vector<1x8x8x4xbf16> to vector<8x8x4xbf16>
    %253 = vector.shape_cast %252 : vector<8x8x4xbf16> to vector<64x4xbf16>
    %c5_262 = arith.constant 5 : index
    %c0_263 = arith.constant 0 : index
    %c0_264 = arith.constant 0 : index
    %254 = vector.load %arg2[%c5_262, %c0_263, %c0_264] : memref<9x4x8xbf16, #tpu.memory_space<vmem>>, vector<1x4x8xbf16>
    %255 = vector.shape_cast %254 : vector<1x4x8xbf16> to vector<4x8xbf16>
    %cst_265 = arith.constant dense<0.000000e+00> : vector<64x8xf32>
    %256 = tpu.matmul %253, %255, %cst_265 {dimension_numbers = #tpu.dot_dimension_numbers<[1], [0], [0], [1], [0, 0, 1, 1], [], []>} : vector<64x4xbf16>, vector<4x8xbf16>, vector<64x8xf32> -> vector<64x8xf32>
    %257 = arith.addf %250, %256 : vector<64x8xf32>
    %c3_266 = arith.constant 3 : index
    %c1_267 = arith.constant 1 : index
    %c0_268 = arith.constant 0 : index
    %c0_269 = arith.constant 0 : index
    %258 = vector.load %arg1[%c3_266, %c1_267, %c0_268, %c0_269] : memref<4x9x9x4xbf16, #tpu.memory_space<vmem>>, vector<1x8x8x4xbf16>
    %259 = vector.shape_cast %258 : vector<1x8x8x4xbf16> to vector<8x8x4xbf16>
    %260 = vector.shape_cast %259 : vector<8x8x4xbf16> to vector<64x4xbf16>
    %c6_270 = arith.constant 6 : index
    %c0_271 = arith.constant 0 : index
    %c0_272 = arith.constant 0 : index
    %261 = vector.load %arg2[%c6_270, %c0_271, %c0_272] : memref<9x4x8xbf16, #tpu.memory_space<vmem>>, vector<1x4x8xbf16>
    %262 = vector.shape_cast %261 : vector<1x4x8xbf16> to vector<4x8xbf16>
    %cst_273 = arith.constant dense<0.000000e+00> : vector<64x8xf32>
    %263 = tpu.matmul %260, %262, %cst_273 {dimension_numbers = #tpu.dot_dimension_numbers<[1], [0], [0], [1], [0, 0, 1, 1], [], []>} : vector<64x4xbf16>, vector<4x8xbf16>, vector<64x8xf32> -> vector<64x8xf32>
    %264 = arith.addf %257, %263 : vector<64x8xf32>
    %c2_274 = arith.constant 2 : index
    %c1_275 = arith.constant 1 : index
    %c1_276 = arith.constant 1 : index
    %c0_277 = arith.constant 0 : index
    %265 = vector.load %arg1[%c2_274, %c1_275, %c1_276, %c0_277] : memref<4x9x9x4xbf16, #tpu.memory_space<vmem>>, vector<1x8x8x4xbf16>
    %266 = vector.shape_cast %265 : vector<1x8x8x4xbf16> to vector<8x8x4xbf16>
    %267 = vector.shape_cast %266 : vector<8x8x4xbf16> to vector<64x4xbf16>
    %c7_278 = arith.constant 7 : index
    %c0_279 = arith.constant 0 : index
    %c0_280 = arith.constant 0 : index
    %268 = vector.load %arg2[%c7_278, %c0_279, %c0_280] : memref<9x4x8xbf16, #tpu.memory_space<vmem>>, vector<1x4x8xbf16>
    %269 = vector.shape_cast %268 : vector<1x4x8xbf16> to vector<4x8xbf16>
    %cst_281 = arith.constant dense<0.000000e+00> : vector<64x8xf32>
    %270 = tpu.matmul %267, %269, %cst_281 {dimension_numbers = #tpu.dot_dimension_numbers<[1], [0], [0], [1], [0, 0, 1, 1], [], []>} : vector<64x4xbf16>, vector<4x8xbf16>, vector<64x8xf32> -> vector<64x8xf32>
    %271 = arith.addf %264, %270 : vector<64x8xf32>
    %c3_282 = arith.constant 3 : index
    %c1_283 = arith.constant 1 : index
    %c1_284 = arith.constant 1 : index
    %c0_285 = arith.constant 0 : index
    %272 = vector.load %arg1[%c3_282, %c1_283, %c1_284, %c0_285] : memref<4x9x9x4xbf16, #tpu.memory_space<vmem>>, vector<1x8x8x4xbf16>
    %273 = vector.shape_cast %272 : vector<1x8x8x4xbf16> to vector<8x8x4xbf16>
    %274 = vector.shape_cast %273 : vector<8x8x4xbf16> to vector<64x4xbf16>
    %c8_286 = arith.constant 8 : index
    %c0_287 = arith.constant 0 : index
    %c0_288 = arith.constant 0 : index
    %275 = vector.load %arg2[%c8_286, %c0_287, %c0_288] : memref<9x4x8xbf16, #tpu.memory_space<vmem>>, vector<1x4x8xbf16>
    %276 = vector.shape_cast %275 : vector<1x4x8xbf16> to vector<4x8xbf16>
    %cst_289 = arith.constant dense<0.000000e+00> : vector<64x8xf32>
    %277 = tpu.matmul %274, %276, %cst_289 {dimension_numbers = #tpu.dot_dimension_numbers<[1], [0], [0], [1], [0, 0, 1, 1], [], []>} : vector<64x4xbf16>, vector<4x8xbf16>, vector<64x8xf32> -> vector<64x8xf32>
    %278 = arith.addf %271, %277 : vector<64x8xf32>
    %cst_290 = arith.constant dense<0.000000e+00> : vector<8xf32>
    %279 = vector.multi_reduction <add>, %278, %cst_290 [0] : vector<64x8xf32> to vector<8xf32>
    %280 = vector.shape_cast %279 : vector<8xf32> to vector<1x8xf32>
    %281 = arith.addf %210, %280 : vector<1x8xf32>
    %282 = arith.mulf %278, %278 : vector<64x8xf32>
    %cst_291 = arith.constant dense<0.000000e+00> : vector<8xf32>
    %283 = vector.multi_reduction <add>, %282, %cst_291 [0] : vector<64x8xf32> to vector<8xf32>
    %284 = vector.shape_cast %283 : vector<8xf32> to vector<1x8xf32>
    %285 = arith.addf %214, %284 : vector<1x8xf32>
    %c0_292 = arith.constant 0 : index
    %c0_293 = arith.constant 0 : index
    %c0_294 = arith.constant 0 : index
    %286 = vector.load %arg3[%c0_292, %c0_293, %c0_294] : memref<1x1x8xf32, #tpu.memory_space<vmem>>, vector<1x1x8xf32>
    %287 = vector.shape_cast %286 : vector<1x1x8xf32> to vector<1x8xf32>
    %288 = vector.shape_cast %281 : vector<1x8xf32> to vector<1x1x8xf32>
    tpu.vector_store %arg3[%c0_292, %c0_293, %c0_294], %288 {strides = array<i32>} : memref<1x1x8xf32, #tpu.memory_space<vmem>>, vector<1x1x8xf32>,
    %c0_295 = arith.constant 0 : index
    %c0_296 = arith.constant 0 : index
    %c0_297 = arith.constant 0 : index
    %289 = vector.load %arg4[%c0_295, %c0_296, %c0_297] : memref<1x1x8xf32, #tpu.memory_space<vmem>>, vector<1x1x8xf32>
    %290 = vector.shape_cast %289 : vector<1x1x8xf32> to vector<1x8xf32>
    %291 = vector.shape_cast %285 : vector<1x8xf32> to vector<1x1x8xf32>
    tpu.vector_store %arg4[%c0_295, %c0_296, %c0_297], %291 {strides = array<i32>} : memref<1x1x8xf32, #tpu.memory_space<vmem>>, vector<1x1x8xf32>,
    return
  }
  func.func @transform_0(%arg0: i32) -> (i32, i32, i32, i32) {
    %c0_i32 = arith.constant 0 : i32
    %c0_i32_0 = arith.constant 0 : i32
    %c0_i32_1 = arith.constant 0 : i32
    %c0_i32_2 = arith.constant 0 : i32
    return %arg0, %c0_i32, %c0_i32_0, %c0_i32_1 : i32, i32, i32, i32
  }
  func.func @transform_1(%arg0: i32) -> (i32, i32, i32) {
    %c0_i32 = arith.constant 0 : i32
    %c0_i32_0 = arith.constant 0 : i32
    %c0_i32_1 = arith.constant 0 : i32
    %c0_i32_2 = arith.constant 0 : i32
    return %c0_i32, %c0_i32_0, %c0_i32_1 : i32, i32, i32
  }
  func.func @transform_2(%arg0: i32) -> (i32, i32, i32) {
    %c0_i32 = arith.constant 0 : i32
    %c0_i32_0 = arith.constant 0 : i32
    %c0_i32_1 = arith.constant 0 : i32
    return %arg0, %c0_i32, %c0_i32_0 : i32, i32, i32
  }
  func.func @transform_3(%arg0: i32) -> (i32, i32, i32) {
    %c0_i32 = arith.constant 0 : i32
    %c0_i32_0 = arith.constant 0 : i32
    %c0_i32_1 = arith.constant 0 : i32
    return %arg0, %c0_i32, %c0_i32_0 : i32, i32, i32
  }
}

module attributes {stable_mosaic.version = 11 : i64} {
  func.func @_fwd_kernel(%arg0: i32, %arg1: memref<4x9x9x4xbf16, #tpu.memory_space<vmem>>, %arg2: memref<9x4x8xbf16, #tpu.memory_space<vmem>>, %arg3: memref<1x8xf32, #tpu.memory_space<vmem>>, %arg4: memref<1x8xf32, #tpu.memory_space<vmem>>, %arg5: memref<1x64x8xf32, #tpu.memory_space<vmem>>) attributes {dimension_semantics = [#tpu.dimension_semantics<parallel>], iteration_bounds = array<i64: 2>, scalar_prefetch = 0 : i64, scratch_operands = 0 : i64, tpu.core_type = #tpu.core_type<tc>, window_params = [{transform_indices = @transform_0, window_bounds = array<i64: 4, 9, 9, 4>}, {pipeline_mode = #tpu.pipeline_mode<synchronous>, transform_indices = @transform_1, window_bounds = array<i64: 9, 4, 8>}, {pipeline_mode = #tpu.pipeline_mode<synchronous>, transform_indices = @transform_2, window_bounds = array<i64: 1, 8>}, {pipeline_mode = #tpu.pipeline_mode<synchronous>, transform_indices = @transform_3, window_bounds = array<i64: 1, 8>}, {transform_indices = @transform_4, window_bounds = array<i64: 1, 64, 8>}]} {
    %c0 = arith.constant 0 : index
    %c0_0 = arith.constant 0 : index
    %0 = vector.load %arg3[%c0, %c0_0] : memref<1x8xf32, #tpu.memory_space<vmem>>, vector<1x8xf32>
    %c0_1 = arith.constant 0 : index
    %c0_2 = arith.constant 0 : index
    %1 = vector.load %arg4[%c0_1, %c0_2] : memref<1x8xf32, #tpu.memory_space<vmem>>, vector<1x8xf32>
    %cst = arith.constant 0.000000e+00 : f32
    %2 = vector.broadcast %cst : f32 to vector<64x8xf32>
    %c0_3 = arith.constant 0 : index
    %c0_4 = arith.constant 0 : index
    %c0_5 = arith.constant 0 : index
    %c0_6 = arith.constant 0 : index
    %3 = vector.load %arg1[%c0_3, %c0_4, %c0_5, %c0_6] : memref<4x9x9x4xbf16, #tpu.memory_space<vmem>>, vector<1x8x8x4xbf16>
    %4 = vector.shape_cast %3 : vector<1x8x8x4xbf16> to vector<8x8x4xbf16>
    %5 = vector.shape_cast %4 : vector<8x8x4xbf16> to vector<64x4xbf16>
    %c0_7 = arith.constant 0 : index
    %c0_8 = arith.constant 0 : index
    %c0_9 = arith.constant 0 : index
    %6 = vector.load %arg2[%c0_7, %c0_8, %c0_9] : memref<9x4x8xbf16, #tpu.memory_space<vmem>>, vector<1x4x8xbf16>
    %7 = vector.shape_cast %6 : vector<1x4x8xbf16> to vector<4x8xbf16>
    %cst_10 = arith.constant dense<0.000000e+00> : vector<64x8xf32>
    %8 = tpu.matmul %5, %7, %cst_10 {dimension_numbers = #tpu.dot_dimension_numbers<[1], [0], [0], [1], [0, 0, 1, 1], [], []>} : vector<64x4xbf16>, vector<4x8xbf16>, vector<64x8xf32> -> vector<64x8xf32>
    %9 = arith.addf %2, %8 : vector<64x8xf32>
    %c1 = arith.constant 1 : index
    %c0_11 = arith.constant 0 : index
    %c0_12 = arith.constant 0 : index
    %c0_13 = arith.constant 0 : index
    %10 = vector.load %arg1[%c1, %c0_11, %c0_12, %c0_13] : memref<4x9x9x4xbf16, #tpu.memory_space<vmem>>, vector<1x8x8x4xbf16>
    %11 = vector.shape_cast %10 : vector<1x8x8x4xbf16> to vector<8x8x4xbf16>
    %12 = vector.shape_cast %11 : vector<8x8x4xbf16> to vector<64x4xbf16>
    %c1_14 = arith.constant 1 : index
    %c0_15 = arith.constant 0 : index
    %c0_16 = arith.constant 0 : index
    %13 = vector.load %arg2[%c1_14, %c0_15, %c0_16] : memref<9x4x8xbf16, #tpu.memory_space<vmem>>, vector<1x4x8xbf16>
    %14 = vector.shape_cast %13 : vector<1x4x8xbf16> to vector<4x8xbf16>
    %cst_17 = arith.constant dense<0.000000e+00> : vector<64x8xf32>
    %15 = tpu.matmul %12, %14, %cst_17 {dimension_numbers = #tpu.dot_dimension_numbers<[1], [0], [0], [1], [0, 0, 1, 1], [], []>} : vector<64x4xbf16>, vector<4x8xbf16>, vector<64x8xf32> -> vector<64x8xf32>
    %16 = arith.addf %9, %15 : vector<64x8xf32>
    %c0_18 = arith.constant 0 : index
    %c0_19 = arith.constant 0 : index
    %c1_20 = arith.constant 1 : index
    %c0_21 = arith.constant 0 : index
    %17 = vector.load %arg1[%c0_18, %c0_19, %c1_20, %c0_21] : memref<4x9x9x4xbf16, #tpu.memory_space<vmem>>, vector<1x8x8x4xbf16>
    %18 = vector.shape_cast %17 : vector<1x8x8x4xbf16> to vector<8x8x4xbf16>
    %19 = vector.shape_cast %18 : vector<8x8x4xbf16> to vector<64x4xbf16>
    %c2 = arith.constant 2 : index
    %c0_22 = arith.constant 0 : index
    %c0_23 = arith.constant 0 : index
    %20 = vector.load %arg2[%c2, %c0_22, %c0_23] : memref<9x4x8xbf16, #tpu.memory_space<vmem>>, vector<1x4x8xbf16>
    %21 = vector.shape_cast %20 : vector<1x4x8xbf16> to vector<4x8xbf16>
    %cst_24 = arith.constant dense<0.000000e+00> : vector<64x8xf32>
    %22 = tpu.matmul %19, %21, %cst_24 {dimension_numbers = #tpu.dot_dimension_numbers<[1], [0], [0], [1], [0, 0, 1, 1], [], []>} : vector<64x4xbf16>, vector<4x8xbf16>, vector<64x8xf32> -> vector<64x8xf32>
    %23 = arith.addf %16, %22 : vector<64x8xf32>
    %c2_25 = arith.constant 2 : index
    %c0_26 = arith.constant 0 : index
    %c0_27 = arith.constant 0 : index
    %c0_28 = arith.constant 0 : index
    %24 = vector.load %arg1[%c2_25, %c0_26, %c0_27, %c0_28] : memref<4x9x9x4xbf16, #tpu.memory_space<vmem>>, vector<1x8x8x4xbf16>
    %25 = vector.shape_cast %24 : vector<1x8x8x4xbf16> to vector<8x8x4xbf16>
    %26 = vector.shape_cast %25 : vector<8x8x4xbf16> to vector<64x4xbf16>
    %c3 = arith.constant 3 : index
    %c0_29 = arith.constant 0 : index
    %c0_30 = arith.constant 0 : index
    %27 = vector.load %arg2[%c3, %c0_29, %c0_30] : memref<9x4x8xbf16, #tpu.memory_space<vmem>>, vector<1x4x8xbf16>
    %28 = vector.shape_cast %27 : vector<1x4x8xbf16> to vector<4x8xbf16>
    %cst_31 = arith.constant dense<0.000000e+00> : vector<64x8xf32>
    %29 = tpu.matmul %26, %28, %cst_31 {dimension_numbers = #tpu.dot_dimension_numbers<[1], [0], [0], [1], [0, 0, 1, 1], [], []>} : vector<64x4xbf16>, vector<4x8xbf16>, vector<64x8xf32> -> vector<64x8xf32>
    %30 = arith.addf %23, %29 : vector<64x8xf32>
    %c3_32 = arith.constant 3 : index
    %c0_33 = arith.constant 0 : index
    %c0_34 = arith.constant 0 : index
    %c0_35 = arith.constant 0 : index
    %31 = vector.load %arg1[%c3_32, %c0_33, %c0_34, %c0_35] : memref<4x9x9x4xbf16, #tpu.memory_space<vmem>>, vector<1x8x8x4xbf16>
    %32 = vector.shape_cast %31 : vector<1x8x8x4xbf16> to vector<8x8x4xbf16>
    %33 = vector.shape_cast %32 : vector<8x8x4xbf16> to vector<64x4xbf16>
    %c4 = arith.constant 4 : index
    %c0_36 = arith.constant 0 : index
    %c0_37 = arith.constant 0 : index
    %34 = vector.load %arg2[%c4, %c0_36, %c0_37] : memref<9x4x8xbf16, #tpu.memory_space<vmem>>, vector<1x4x8xbf16>
    %35 = vector.shape_cast %34 : vector<1x4x8xbf16> to vector<4x8xbf16>
    %cst_38 = arith.constant dense<0.000000e+00> : vector<64x8xf32>
    %36 = tpu.matmul %33, %35, %cst_38 {dimension_numbers = #tpu.dot_dimension_numbers<[1], [0], [0], [1], [0, 0, 1, 1], [], []>} : vector<64x4xbf16>, vector<4x8xbf16>, vector<64x8xf32> -> vector<64x8xf32>
    %37 = arith.addf %30, %36 : vector<64x8xf32>
    %c2_39 = arith.constant 2 : index
    %c0_40 = arith.constant 0 : index
    %c1_41 = arith.constant 1 : index
    %c0_42 = arith.constant 0 : index
    %38 = vector.load %arg1[%c2_39, %c0_40, %c1_41, %c0_42] : memref<4x9x9x4xbf16, #tpu.memory_space<vmem>>, vector<1x8x8x4xbf16>
    %39 = vector.shape_cast %38 : vector<1x8x8x4xbf16> to vector<8x8x4xbf16>
    %40 = vector.shape_cast %39 : vector<8x8x4xbf16> to vector<64x4xbf16>
    %c5 = arith.constant 5 : index
    %c0_43 = arith.constant 0 : index
    %c0_44 = arith.constant 0 : index
    %41 = vector.load %arg2[%c5, %c0_43, %c0_44] : memref<9x4x8xbf16, #tpu.memory_space<vmem>>, vector<1x4x8xbf16>
    %42 = vector.shape_cast %41 : vector<1x4x8xbf16> to vector<4x8xbf16>
    %cst_45 = arith.constant dense<0.000000e+00> : vector<64x8xf32>
    %43 = tpu.matmul %40, %42, %cst_45 {dimension_numbers = #tpu.dot_dimension_numbers<[1], [0], [0], [1], [0, 0, 1, 1], [], []>} : vector<64x4xbf16>, vector<4x8xbf16>, vector<64x8xf32> -> vector<64x8xf32>
    %44 = arith.addf %37, %43 : vector<64x8xf32>
    %c0_46 = arith.constant 0 : index
    %c1_47 = arith.constant 1 : index
    %c0_48 = arith.constant 0 : index
    %c0_49 = arith.constant 0 : index
    %45 = vector.load %arg1[%c0_46, %c1_47, %c0_48, %c0_49] : memref<4x9x9x4xbf16, #tpu.memory_space<vmem>>, vector<1x8x8x4xbf16>
    %46 = vector.shape_cast %45 : vector<1x8x8x4xbf16> to vector<8x8x4xbf16>
    %47 = vector.shape_cast %46 : vector<8x8x4xbf16> to vector<64x4xbf16>
    %c6 = arith.constant 6 : index
    %c0_50 = arith.constant 0 : index
    %c0_51 = arith.constant 0 : index
    %48 = vector.load %arg2[%c6, %c0_50, %c0_51] : memref<9x4x8xbf16, #tpu.memory_space<vmem>>, vector<1x4x8xbf16>
    %49 = vector.shape_cast %48 : vector<1x4x8xbf16> to vector<4x8xbf16>
    %cst_52 = arith.constant dense<0.000000e+00> : vector<64x8xf32>
    %50 = tpu.matmul %47, %49, %cst_52 {dimension_numbers = #tpu.dot_dimension_numbers<[1], [0], [0], [1], [0, 0, 1, 1], [], []>} : vector<64x4xbf16>, vector<4x8xbf16>, vector<64x8xf32> -> vector<64x8xf32>
    %51 = arith.addf %44, %50 : vector<64x8xf32>
    %c1_53 = arith.constant 1 : index
    %c1_54 = arith.constant 1 : index
    %c0_55 = arith.constant 0 : index
    %c0_56 = arith.constant 0 : index
    %52 = vector.load %arg1[%c1_53, %c1_54, %c0_55, %c0_56] : memref<4x9x9x4xbf16, #tpu.memory_space<vmem>>, vector<1x8x8x4xbf16>
    %53 = vector.shape_cast %52 : vector<1x8x8x4xbf16> to vector<8x8x4xbf16>
    %54 = vector.shape_cast %53 : vector<8x8x4xbf16> to vector<64x4xbf16>
    %c7 = arith.constant 7 : index
    %c0_57 = arith.constant 0 : index
    %c0_58 = arith.constant 0 : index
    %55 = vector.load %arg2[%c7, %c0_57, %c0_58] : memref<9x4x8xbf16, #tpu.memory_space<vmem>>, vector<1x4x8xbf16>
    %56 = vector.shape_cast %55 : vector<1x4x8xbf16> to vector<4x8xbf16>
    %cst_59 = arith.constant dense<0.000000e+00> : vector<64x8xf32>
    %57 = tpu.matmul %54, %56, %cst_59 {dimension_numbers = #tpu.dot_dimension_numbers<[1], [0], [0], [1], [0, 0, 1, 1], [], []>} : vector<64x4xbf16>, vector<4x8xbf16>, vector<64x8xf32> -> vector<64x8xf32>
    %58 = arith.addf %51, %57 : vector<64x8xf32>
    %c0_60 = arith.constant 0 : index
    %c1_61 = arith.constant 1 : index
    %c1_62 = arith.constant 1 : index
    %c0_63 = arith.constant 0 : index
    %59 = vector.load %arg1[%c0_60, %c1_61, %c1_62, %c0_63] : memref<4x9x9x4xbf16, #tpu.memory_space<vmem>>, vector<1x8x8x4xbf16>
    %60 = vector.shape_cast %59 : vector<1x8x8x4xbf16> to vector<8x8x4xbf16>
    %61 = vector.shape_cast %60 : vector<8x8x4xbf16> to vector<64x4xbf16>
    %c8 = arith.constant 8 : index
    %c0_64 = arith.constant 0 : index
    %c0_65 = arith.constant 0 : index
    %62 = vector.load %arg2[%c8, %c0_64, %c0_65] : memref<9x4x8xbf16, #tpu.memory_space<vmem>>, vector<1x4x8xbf16>
    %63 = vector.shape_cast %62 : vector<1x4x8xbf16> to vector<4x8xbf16>
    %cst_66 = arith.constant dense<0.000000e+00> : vector<64x8xf32>
    %64 = tpu.matmul %61, %63, %cst_66 {dimension_numbers = #tpu.dot_dimension_numbers<[1], [0], [0], [1], [0, 0, 1, 1], [], []>} : vector<64x4xbf16>, vector<4x8xbf16>, vector<64x8xf32> -> vector<64x8xf32>
    %65 = arith.addf %58, %64 : vector<64x8xf32>
    %66 = vector.broadcast %0 : vector<1x8xf32> to vector<64x8xf32>
    %67 = arith.mulf %65, %66 : vector<64x8xf32>
    %68 = vector.broadcast %1 : vector<1x8xf32> to vector<64x8xf32>
    %69 = arith.addf %67, %68 : vector<64x8xf32>
    %cst_67 = arith.constant 0.000000e+00 : f32
    %70 = vector.broadcast %cst_67 : f32 to vector<64x8xf32>
    %71 = arith.maximumf %69, %70 : vector<64x8xf32>
    %cst_68 = arith.constant 0.000000e+00 : f32
    %72 = vector.broadcast %cst_68 : f32 to vector<64x8xf32>
    %c1_69 = arith.constant 1 : index
    %c0_70 = arith.constant 0 : index
    %c0_71 = arith.constant 0 : index
    %c0_72 = arith.constant 0 : index
    %73 = vector.load %arg1[%c1_69, %c0_70, %c0_71, %c0_72] : memref<4x9x9x4xbf16, #tpu.memory_space<vmem>>, vector<1x8x8x4xbf16>
    %74 = vector.shape_cast %73 : vector<1x8x8x4xbf16> to vector<8x8x4xbf16>
    %75 = vector.shape_cast %74 : vector<8x8x4xbf16> to vector<64x4xbf16>
    %c0_73 = arith.constant 0 : index
    %c0_74 = arith.constant 0 : index
    %c0_75 = arith.constant 0 : index
    %76 = vector.load %arg2[%c0_73, %c0_74, %c0_75] : memref<9x4x8xbf16, #tpu.memory_space<vmem>>, vector<1x4x8xbf16>
    %77 = vector.shape_cast %76 : vector<1x4x8xbf16> to vector<4x8xbf16>
    %cst_76 = arith.constant dense<0.000000e+00> : vector<64x8xf32>
    %78 = tpu.matmul %75, %77, %cst_76 {dimension_numbers = #tpu.dot_dimension_numbers<[1], [0], [0], [1], [0, 0, 1, 1], [], []>} : vector<64x4xbf16>, vector<4x8xbf16>, vector<64x8xf32> -> vector<64x8xf32>
    %79 = arith.addf %72, %78 : vector<64x8xf32>
    %c0_77 = arith.constant 0 : index
    %c0_78 = arith.constant 0 : index
    %c1_79 = arith.constant 1 : index
    %c0_80 = arith.constant 0 : index
    %80 = vector.load %arg1[%c0_77, %c0_78, %c1_79, %c0_80] : memref<4x9x9x4xbf16, #tpu.memory_space<vmem>>, vector<1x8x8x4xbf16>
    %81 = vector.shape_cast %80 : vector<1x8x8x4xbf16> to vector<8x8x4xbf16>
    %82 = vector.shape_cast %81 : vector<8x8x4xbf16> to vector<64x4xbf16>
    %c1_81 = arith.constant 1 : index
    %c0_82 = arith.constant 0 : index
    %c0_83 = arith.constant 0 : index
    %83 = vector.load %arg2[%c1_81, %c0_82, %c0_83] : memref<9x4x8xbf16, #tpu.memory_space<vmem>>, vector<1x4x8xbf16>
    %84 = vector.shape_cast %83 : vector<1x4x8xbf16> to vector<4x8xbf16>
    %cst_84 = arith.constant dense<0.000000e+00> : vector<64x8xf32>
    %85 = tpu.matmul %82, %84, %cst_84 {dimension_numbers = #tpu.dot_dimension_numbers<[1], [0], [0], [1], [0, 0, 1, 1], [], []>} : vector<64x4xbf16>, vector<4x8xbf16>, vector<64x8xf32> -> vector<64x8xf32>
    %86 = arith.addf %79, %85 : vector<64x8xf32>
    %c1_85 = arith.constant 1 : index
    %c0_86 = arith.constant 0 : index
    %c1_87 = arith.constant 1 : index
    %c0_88 = arith.constant 0 : index
    %87 = vector.load %arg1[%c1_85, %c0_86, %c1_87, %c0_88] : memref<4x9x9x4xbf16, #tpu.memory_space<vmem>>, vector<1x8x8x4xbf16>
    %88 = vector.shape_cast %87 : vector<1x8x8x4xbf16> to vector<8x8x4xbf16>
    %89 = vector.shape_cast %88 : vector<8x8x4xbf16> to vector<64x4xbf16>
    %c2_89 = arith.constant 2 : index
    %c0_90 = arith.constant 0 : index
    %c0_91 = arith.constant 0 : index
    %90 = vector.load %arg2[%c2_89, %c0_90, %c0_91] : memref<9x4x8xbf16, #tpu.memory_space<vmem>>, vector<1x4x8xbf16>
    %91 = vector.shape_cast %90 : vector<1x4x8xbf16> to vector<4x8xbf16>
    %cst_92 = arith.constant dense<0.000000e+00> : vector<64x8xf32>
    %92 = tpu.matmul %89, %91, %cst_92 {dimension_numbers = #tpu.dot_dimension_numbers<[1], [0], [0], [1], [0, 0, 1, 1], [], []>} : vector<64x4xbf16>, vector<4x8xbf16>, vector<64x8xf32> -> vector<64x8xf32>
    %93 = arith.addf %86, %92 : vector<64x8xf32>
    %c3_93 = arith.constant 3 : index
    %c0_94 = arith.constant 0 : index
    %c0_95 = arith.constant 0 : index
    %c0_96 = arith.constant 0 : index
    %94 = vector.load %arg1[%c3_93, %c0_94, %c0_95, %c0_96] : memref<4x9x9x4xbf16, #tpu.memory_space<vmem>>, vector<1x8x8x4xbf16>
    %95 = vector.shape_cast %94 : vector<1x8x8x4xbf16> to vector<8x8x4xbf16>
    %96 = vector.shape_cast %95 : vector<8x8x4xbf16> to vector<64x4xbf16>
    %c3_97 = arith.constant 3 : index
    %c0_98 = arith.constant 0 : index
    %c0_99 = arith.constant 0 : index
    %97 = vector.load %arg2[%c3_97, %c0_98, %c0_99] : memref<9x4x8xbf16, #tpu.memory_space<vmem>>, vector<1x4x8xbf16>
    %98 = vector.shape_cast %97 : vector<1x4x8xbf16> to vector<4x8xbf16>
    %cst_100 = arith.constant dense<0.000000e+00> : vector<64x8xf32>
    %99 = tpu.matmul %96, %98, %cst_100 {dimension_numbers = #tpu.dot_dimension_numbers<[1], [0], [0], [1], [0, 0, 1, 1], [], []>} : vector<64x4xbf16>, vector<4x8xbf16>, vector<64x8xf32> -> vector<64x8xf32>
    %100 = arith.addf %93, %99 : vector<64x8xf32>
    %c2_101 = arith.constant 2 : index
    %c0_102 = arith.constant 0 : index
    %c1_103 = arith.constant 1 : index
    %c0_104 = arith.constant 0 : index
    %101 = vector.load %arg1[%c2_101, %c0_102, %c1_103, %c0_104] : memref<4x9x9x4xbf16, #tpu.memory_space<vmem>>, vector<1x8x8x4xbf16>
    %102 = vector.shape_cast %101 : vector<1x8x8x4xbf16> to vector<8x8x4xbf16>
    %103 = vector.shape_cast %102 : vector<8x8x4xbf16> to vector<64x4xbf16>
    %c4_105 = arith.constant 4 : index
    %c0_106 = arith.constant 0 : index
    %c0_107 = arith.constant 0 : index
    %104 = vector.load %arg2[%c4_105, %c0_106, %c0_107] : memref<9x4x8xbf16, #tpu.memory_space<vmem>>, vector<1x4x8xbf16>
    %105 = vector.shape_cast %104 : vector<1x4x8xbf16> to vector<4x8xbf16>
    %cst_108 = arith.constant dense<0.000000e+00> : vector<64x8xf32>
    %106 = tpu.matmul %103, %105, %cst_108 {dimension_numbers = #tpu.dot_dimension_numbers<[1], [0], [0], [1], [0, 0, 1, 1], [], []>} : vector<64x4xbf16>, vector<4x8xbf16>, vector<64x8xf32> -> vector<64x8xf32>
    %107 = arith.addf %100, %106 : vector<64x8xf32>
    %c3_109 = arith.constant 3 : index
    %c0_110 = arith.constant 0 : index
    %c1_111 = arith.constant 1 : index
    %c0_112 = arith.constant 0 : index
    %108 = vector.load %arg1[%c3_109, %c0_110, %c1_111, %c0_112] : memref<4x9x9x4xbf16, #tpu.memory_space<vmem>>, vector<1x8x8x4xbf16>
    %109 = vector.shape_cast %108 : vector<1x8x8x4xbf16> to vector<8x8x4xbf16>
    %110 = vector.shape_cast %109 : vector<8x8x4xbf16> to vector<64x4xbf16>
    %c5_113 = arith.constant 5 : index
    %c0_114 = arith.constant 0 : index
    %c0_115 = arith.constant 0 : index
    %111 = vector.load %arg2[%c5_113, %c0_114, %c0_115] : memref<9x4x8xbf16, #tpu.memory_space<vmem>>, vector<1x4x8xbf16>
    %112 = vector.shape_cast %111 : vector<1x4x8xbf16> to vector<4x8xbf16>
    %cst_116 = arith.constant dense<0.000000e+00> : vector<64x8xf32>
    %113 = tpu.matmul %110, %112, %cst_116 {dimension_numbers = #tpu.dot_dimension_numbers<[1], [0], [0], [1], [0, 0, 1, 1], [], []>} : vector<64x4xbf16>, vector<4x8xbf16>, vector<64x8xf32> -> vector<64x8xf32>
    %114 = arith.addf %107, %113 : vector<64x8xf32>
    %c1_117 = arith.constant 1 : index
    %c1_118 = arith.constant 1 : index
    %c0_119 = arith.constant 0 : index
    %c0_120 = arith.constant 0 : index
    %115 = vector.load %arg1[%c1_117, %c1_118, %c0_119, %c0_120] : memref<4x9x9x4xbf16, #tpu.memory_space<vmem>>, vector<1x8x8x4xbf16>
    %116 = vector.shape_cast %115 : vector<1x8x8x4xbf16> to vector<8x8x4xbf16>
    %117 = vector.shape_cast %116 : vector<8x8x4xbf16> to vector<64x4xbf16>
    %c6_121 = arith.constant 6 : index
    %c0_122 = arith.constant 0 : index
    %c0_123 = arith.constant 0 : index
    %118 = vector.load %arg2[%c6_121, %c0_122, %c0_123] : memref<9x4x8xbf16, #tpu.memory_space<vmem>>, vector<1x4x8xbf16>
    %119 = vector.shape_cast %118 : vector<1x4x8xbf16> to vector<4x8xbf16>
    %cst_124 = arith.constant dense<0.000000e+00> : vector<64x8xf32>
    %120 = tpu.matmul %117, %119, %cst_124 {dimension_numbers = #tpu.dot_dimension_numbers<[1], [0], [0], [1], [0, 0, 1, 1], [], []>} : vector<64x4xbf16>, vector<4x8xbf16>, vector<64x8xf32> -> vector<64x8xf32>
    %121 = arith.addf %114, %120 : vector<64x8xf32>
    %c0_125 = arith.constant 0 : index
    %c1_126 = arith.constant 1 : index
    %c1_127 = arith.constant 1 : index
    %c0_128 = arith.constant 0 : index
    %122 = vector.load %arg1[%c0_125, %c1_126, %c1_127, %c0_128] : memref<4x9x9x4xbf16, #tpu.memory_space<vmem>>, vector<1x8x8x4xbf16>
    %123 = vector.shape_cast %122 : vector<1x8x8x4xbf16> to vector<8x8x4xbf16>
    %124 = vector.shape_cast %123 : vector<8x8x4xbf16> to vector<64x4xbf16>
    %c7_129 = arith.constant 7 : index
    %c0_130 = arith.constant 0 : index
    %c0_131 = arith.constant 0 : index
    %125 = vector.load %arg2[%c7_129, %c0_130, %c0_131] : memref<9x4x8xbf16, #tpu.memory_space<vmem>>, vector<1x4x8xbf16>
    %126 = vector.shape_cast %125 : vector<1x4x8xbf16> to vector<4x8xbf16>
    %cst_132 = arith.constant dense<0.000000e+00> : vector<64x8xf32>
    %127 = tpu.matmul %124, %126, %cst_132 {dimension_numbers = #tpu.dot_dimension_numbers<[1], [0], [0], [1], [0, 0, 1, 1], [], []>} : vector<64x4xbf16>, vector<4x8xbf16>, vector<64x8xf32> -> vector<64x8xf32>
    %128 = arith.addf %121, %127 : vector<64x8xf32>
    %c1_133 = arith.constant 1 : index
    %c1_134 = arith.constant 1 : index
    %c1_135 = arith.constant 1 : index
    %c0_136 = arith.constant 0 : index
    %129 = vector.load %arg1[%c1_133, %c1_134, %c1_135, %c0_136] : memref<4x9x9x4xbf16, #tpu.memory_space<vmem>>, vector<1x8x8x4xbf16>
    %130 = vector.shape_cast %129 : vector<1x8x8x4xbf16> to vector<8x8x4xbf16>
    %131 = vector.shape_cast %130 : vector<8x8x4xbf16> to vector<64x4xbf16>
    %c8_137 = arith.constant 8 : index
    %c0_138 = arith.constant 0 : index
    %c0_139 = arith.constant 0 : index
    %132 = vector.load %arg2[%c8_137, %c0_138, %c0_139] : memref<9x4x8xbf16, #tpu.memory_space<vmem>>, vector<1x4x8xbf16>
    %133 = vector.shape_cast %132 : vector<1x4x8xbf16> to vector<4x8xbf16>
    %cst_140 = arith.constant dense<0.000000e+00> : vector<64x8xf32>
    %134 = tpu.matmul %131, %133, %cst_140 {dimension_numbers = #tpu.dot_dimension_numbers<[1], [0], [0], [1], [0, 0, 1, 1], [], []>} : vector<64x4xbf16>, vector<4x8xbf16>, vector<64x8xf32> -> vector<64x8xf32>
    %135 = arith.addf %128, %134 : vector<64x8xf32>
    %136 = vector.broadcast %0 : vector<1x8xf32> to vector<64x8xf32>
    %137 = arith.mulf %135, %136 : vector<64x8xf32>
    %138 = vector.broadcast %1 : vector<1x8xf32> to vector<64x8xf32>
    %139 = arith.addf %137, %138 : vector<64x8xf32>
    %cst_141 = arith.constant 0.000000e+00 : f32
    %140 = vector.broadcast %cst_141 : f32 to vector<64x8xf32>
    %141 = arith.maximumf %139, %140 : vector<64x8xf32>
    %142 = arith.maximumf %71, %141 : vector<64x8xf32>
    %cst_142 = arith.constant 0.000000e+00 : f32
    %143 = vector.broadcast %cst_142 : f32 to vector<64x8xf32>
    %c2_143 = arith.constant 2 : index
    %c0_144 = arith.constant 0 : index
    %c0_145 = arith.constant 0 : index
    %c0_146 = arith.constant 0 : index
    %144 = vector.load %arg1[%c2_143, %c0_144, %c0_145, %c0_146] : memref<4x9x9x4xbf16, #tpu.memory_space<vmem>>, vector<1x8x8x4xbf16>
    %145 = vector.shape_cast %144 : vector<1x8x8x4xbf16> to vector<8x8x4xbf16>
    %146 = vector.shape_cast %145 : vector<8x8x4xbf16> to vector<64x4xbf16>
    %c0_147 = arith.constant 0 : index
    %c0_148 = arith.constant 0 : index
    %c0_149 = arith.constant 0 : index
    %147 = vector.load %arg2[%c0_147, %c0_148, %c0_149] : memref<9x4x8xbf16, #tpu.memory_space<vmem>>, vector<1x4x8xbf16>
    %148 = vector.shape_cast %147 : vector<1x4x8xbf16> to vector<4x8xbf16>
    %cst_150 = arith.constant dense<0.000000e+00> : vector<64x8xf32>
    %149 = tpu.matmul %146, %148, %cst_150 {dimension_numbers = #tpu.dot_dimension_numbers<[1], [0], [0], [1], [0, 0, 1, 1], [], []>} : vector<64x4xbf16>, vector<4x8xbf16>, vector<64x8xf32> -> vector<64x8xf32>
    %150 = arith.addf %143, %149 : vector<64x8xf32>
    %c3_151 = arith.constant 3 : index
    %c0_152 = arith.constant 0 : index
    %c0_153 = arith.constant 0 : index
    %c0_154 = arith.constant 0 : index
    %151 = vector.load %arg1[%c3_151, %c0_152, %c0_153, %c0_154] : memref<4x9x9x4xbf16, #tpu.memory_space<vmem>>, vector<1x8x8x4xbf16>
    %152 = vector.shape_cast %151 : vector<1x8x8x4xbf16> to vector<8x8x4xbf16>
    %153 = vector.shape_cast %152 : vector<8x8x4xbf16> to vector<64x4xbf16>
    %c1_155 = arith.constant 1 : index
    %c0_156 = arith.constant 0 : index
    %c0_157 = arith.constant 0 : index
    %154 = vector.load %arg2[%c1_155, %c0_156, %c0_157] : memref<9x4x8xbf16, #tpu.memory_space<vmem>>, vector<1x4x8xbf16>
    %155 = vector.shape_cast %154 : vector<1x4x8xbf16> to vector<4x8xbf16>
    %cst_158 = arith.constant dense<0.000000e+00> : vector<64x8xf32>
    %156 = tpu.matmul %153, %155, %cst_158 {dimension_numbers = #tpu.dot_dimension_numbers<[1], [0], [0], [1], [0, 0, 1, 1], [], []>} : vector<64x4xbf16>, vector<4x8xbf16>, vector<64x8xf32> -> vector<64x8xf32>
    %157 = arith.addf %150, %156 : vector<64x8xf32>
    %c2_159 = arith.constant 2 : index
    %c0_160 = arith.constant 0 : index
    %c1_161 = arith.constant 1 : index
    %c0_162 = arith.constant 0 : index
    %158 = vector.load %arg1[%c2_159, %c0_160, %c1_161, %c0_162] : memref<4x9x9x4xbf16, #tpu.memory_space<vmem>>, vector<1x8x8x4xbf16>
    %159 = vector.shape_cast %158 : vector<1x8x8x4xbf16> to vector<8x8x4xbf16>
    %160 = vector.shape_cast %159 : vector<8x8x4xbf16> to vector<64x4xbf16>
    %c2_163 = arith.constant 2 : index
    %c0_164 = arith.constant 0 : index
    %c0_165 = arith.constant 0 : index
    %161 = vector.load %arg2[%c2_163, %c0_164, %c0_165] : memref<9x4x8xbf16, #tpu.memory_space<vmem>>, vector<1x4x8xbf16>
    %162 = vector.shape_cast %161 : vector<1x4x8xbf16> to vector<4x8xbf16>
    %cst_166 = arith.constant dense<0.000000e+00> : vector<64x8xf32>
    %163 = tpu.matmul %160, %162, %cst_166 {dimension_numbers = #tpu.dot_dimension_numbers<[1], [0], [0], [1], [0, 0, 1, 1], [], []>} : vector<64x4xbf16>, vector<4x8xbf16>, vector<64x8xf32> -> vector<64x8xf32>
    %164 = arith.addf %157, %163 : vector<64x8xf32>
    %c0_167 = arith.constant 0 : index
    %c1_168 = arith.constant 1 : index
    %c0_169 = arith.constant 0 : index
    %c0_170 = arith.constant 0 : index
    %165 = vector.load %arg1[%c0_167, %c1_168, %c0_169, %c0_170] : memref<4x9x9x4xbf16, #tpu.memory_space<vmem>>, vector<1x8x8x4xbf16>
    %166 = vector.shape_cast %165 : vector<1x8x8x4xbf16> to vector<8x8x4xbf16>
    %167 = vector.shape_cast %166 : vector<8x8x4xbf16> to vector<64x4xbf16>
    %c3_171 = arith.constant 3 : index
    %c0_172 = arith.constant 0 : index
    %c0_173 = arith.constant 0 : index
    %168 = vector.load %arg2[%c3_171, %c0_172, %c0_173] : memref<9x4x8xbf16, #tpu.memory_space<vmem>>, vector<1x4x8xbf16>
    %169 = vector.shape_cast %168 : vector<1x4x8xbf16> to vector<4x8xbf16>
    %cst_174 = arith.constant dense<0.000000e+00> : vector<64x8xf32>
    %170 = tpu.matmul %167, %169, %cst_174 {dimension_numbers = #tpu.dot_dimension_numbers<[1], [0], [0], [1], [0, 0, 1, 1], [], []>} : vector<64x4xbf16>, vector<4x8xbf16>, vector<64x8xf32> -> vector<64x8xf32>
    %171 = arith.addf %164, %170 : vector<64x8xf32>
    %c1_175 = arith.constant 1 : index
    %c1_176 = arith.constant 1 : index
    %c0_177 = arith.constant 0 : index
    %c0_178 = arith.constant 0 : index
    %172 = vector.load %arg1[%c1_175, %c1_176, %c0_177, %c0_178] : memref<4x9x9x4xbf16, #tpu.memory_space<vmem>>, vector<1x8x8x4xbf16>
    %173 = vector.shape_cast %172 : vector<1x8x8x4xbf16> to vector<8x8x4xbf16>
    %174 = vector.shape_cast %173 : vector<8x8x4xbf16> to vector<64x4xbf16>
    %c4_179 = arith.constant 4 : index
    %c0_180 = arith.constant 0 : index
    %c0_181 = arith.constant 0 : index
    %175 = vector.load %arg2[%c4_179, %c0_180, %c0_181] : memref<9x4x8xbf16, #tpu.memory_space<vmem>>, vector<1x4x8xbf16>
    %176 = vector.shape_cast %175 : vector<1x4x8xbf16> to vector<4x8xbf16>
    %cst_182 = arith.constant dense<0.000000e+00> : vector<64x8xf32>
    %177 = tpu.matmul %174, %176, %cst_182 {dimension_numbers = #tpu.dot_dimension_numbers<[1], [0], [0], [1], [0, 0, 1, 1], [], []>} : vector<64x4xbf16>, vector<4x8xbf16>, vector<64x8xf32> -> vector<64x8xf32>
    %178 = arith.addf %171, %177 : vector<64x8xf32>
    %c0_183 = arith.constant 0 : index
    %c1_184 = arith.constant 1 : index
    %c1_185 = arith.constant 1 : index
    %c0_186 = arith.constant 0 : index
    %179 = vector.load %arg1[%c0_183, %c1_184, %c1_185, %c0_186] : memref<4x9x9x4xbf16, #tpu.memory_space<vmem>>, vector<1x8x8x4xbf16>
    %180 = vector.shape_cast %179 : vector<1x8x8x4xbf16> to vector<8x8x4xbf16>
    %181 = vector.shape_cast %180 : vector<8x8x4xbf16> to vector<64x4xbf16>
    %c5_187 = arith.constant 5 : index
    %c0_188 = arith.constant 0 : index
    %c0_189 = arith.constant 0 : index
    %182 = vector.load %arg2[%c5_187, %c0_188, %c0_189] : memref<9x4x8xbf16, #tpu.memory_space<vmem>>, vector<1x4x8xbf16>
    %183 = vector.shape_cast %182 : vector<1x4x8xbf16> to vector<4x8xbf16>
    %cst_190 = arith.constant dense<0.000000e+00> : vector<64x8xf32>
    %184 = tpu.matmul %181, %183, %cst_190 {dimension_numbers = #tpu.dot_dimension_numbers<[1], [0], [0], [1], [0, 0, 1, 1], [], []>} : vector<64x4xbf16>, vector<4x8xbf16>, vector<64x8xf32> -> vector<64x8xf32>
    %185 = arith.addf %178, %184 : vector<64x8xf32>
    %c2_191 = arith.constant 2 : index
    %c1_192 = arith.constant 1 : index
    %c0_193 = arith.constant 0 : index
    %c0_194 = arith.constant 0 : index
    %186 = vector.load %arg1[%c2_191, %c1_192, %c0_193, %c0_194] : memref<4x9x9x4xbf16, #tpu.memory_space<vmem>>, vector<1x8x8x4xbf16>
    %187 = vector.shape_cast %186 : vector<1x8x8x4xbf16> to vector<8x8x4xbf16>
    %188 = vector.shape_cast %187 : vector<8x8x4xbf16> to vector<64x4xbf16>
    %c6_195 = arith.constant 6 : index
    %c0_196 = arith.constant 0 : index
    %c0_197 = arith.constant 0 : index
    %189 = vector.load %arg2[%c6_195, %c0_196, %c0_197] : memref<9x4x8xbf16, #tpu.memory_space<vmem>>, vector<1x4x8xbf16>
    %190 = vector.shape_cast %189 : vector<1x4x8xbf16> to vector<4x8xbf16>
    %cst_198 = arith.constant dense<0.000000e+00> : vector<64x8xf32>
    %191 = tpu.matmul %188, %190, %cst_198 {dimension_numbers = #tpu.dot_dimension_numbers<[1], [0], [0], [1], [0, 0, 1, 1], [], []>} : vector<64x4xbf16>, vector<4x8xbf16>, vector<64x8xf32> -> vector<64x8xf32>
    %192 = arith.addf %185, %191 : vector<64x8xf32>
    %c3_199 = arith.constant 3 : index
    %c1_200 = arith.constant 1 : index
    %c0_201 = arith.constant 0 : index
    %c0_202 = arith.constant 0 : index
    %193 = vector.load %arg1[%c3_199, %c1_200, %c0_201, %c0_202] : memref<4x9x9x4xbf16, #tpu.memory_space<vmem>>, vector<1x8x8x4xbf16>
    %194 = vector.shape_cast %193 : vector<1x8x8x4xbf16> to vector<8x8x4xbf16>
    %195 = vector.shape_cast %194 : vector<8x8x4xbf16> to vector<64x4xbf16>
    %c7_203 = arith.constant 7 : index
    %c0_204 = arith.constant 0 : index
    %c0_205 = arith.constant 0 : index
    %196 = vector.load %arg2[%c7_203, %c0_204, %c0_205] : memref<9x4x8xbf16, #tpu.memory_space<vmem>>, vector<1x4x8xbf16>
    %197 = vector.shape_cast %196 : vector<1x4x8xbf16> to vector<4x8xbf16>
    %cst_206 = arith.constant dense<0.000000e+00> : vector<64x8xf32>
    %198 = tpu.matmul %195, %197, %cst_206 {dimension_numbers = #tpu.dot_dimension_numbers<[1], [0], [0], [1], [0, 0, 1, 1], [], []>} : vector<64x4xbf16>, vector<4x8xbf16>, vector<64x8xf32> -> vector<64x8xf32>
    %199 = arith.addf %192, %198 : vector<64x8xf32>
    %c2_207 = arith.constant 2 : index
    %c1_208 = arith.constant 1 : index
    %c1_209 = arith.constant 1 : index
    %c0_210 = arith.constant 0 : index
    %200 = vector.load %arg1[%c2_207, %c1_208, %c1_209, %c0_210] : memref<4x9x9x4xbf16, #tpu.memory_space<vmem>>, vector<1x8x8x4xbf16>
    %201 = vector.shape_cast %200 : vector<1x8x8x4xbf16> to vector<8x8x4xbf16>
    %202 = vector.shape_cast %201 : vector<8x8x4xbf16> to vector<64x4xbf16>
    %c8_211 = arith.constant 8 : index
    %c0_212 = arith.constant 0 : index
    %c0_213 = arith.constant 0 : index
    %203 = vector.load %arg2[%c8_211, %c0_212, %c0_213] : memref<9x4x8xbf16, #tpu.memory_space<vmem>>, vector<1x4x8xbf16>
    %204 = vector.shape_cast %203 : vector<1x4x8xbf16> to vector<4x8xbf16>
    %cst_214 = arith.constant dense<0.000000e+00> : vector<64x8xf32>
    %205 = tpu.matmul %202, %204, %cst_214 {dimension_numbers = #tpu.dot_dimension_numbers<[1], [0], [0], [1], [0, 0, 1, 1], [], []>} : vector<64x4xbf16>, vector<4x8xbf16>, vector<64x8xf32> -> vector<64x8xf32>
    %206 = arith.addf %199, %205 : vector<64x8xf32>
    %207 = vector.broadcast %0 : vector<1x8xf32> to vector<64x8xf32>
    %208 = arith.mulf %206, %207 : vector<64x8xf32>
    %209 = vector.broadcast %1 : vector<1x8xf32> to vector<64x8xf32>
    %210 = arith.addf %208, %209 : vector<64x8xf32>
    %cst_215 = arith.constant 0.000000e+00 : f32
    %211 = vector.broadcast %cst_215 : f32 to vector<64x8xf32>
    %212 = arith.maximumf %210, %211 : vector<64x8xf32>
    %213 = arith.maximumf %142, %212 : vector<64x8xf32>
    %cst_216 = arith.constant 0.000000e+00 : f32
    %214 = vector.broadcast %cst_216 : f32 to vector<64x8xf32>
    %c3_217 = arith.constant 3 : index
    %c0_218 = arith.constant 0 : index
    %c0_219 = arith.constant 0 : index
    %c0_220 = arith.constant 0 : index
    %215 = vector.load %arg1[%c3_217, %c0_218, %c0_219, %c0_220] : memref<4x9x9x4xbf16, #tpu.memory_space<vmem>>, vector<1x8x8x4xbf16>
    %216 = vector.shape_cast %215 : vector<1x8x8x4xbf16> to vector<8x8x4xbf16>
    %217 = vector.shape_cast %216 : vector<8x8x4xbf16> to vector<64x4xbf16>
    %c0_221 = arith.constant 0 : index
    %c0_222 = arith.constant 0 : index
    %c0_223 = arith.constant 0 : index
    %218 = vector.load %arg2[%c0_221, %c0_222, %c0_223] : memref<9x4x8xbf16, #tpu.memory_space<vmem>>, vector<1x4x8xbf16>
    %219 = vector.shape_cast %218 : vector<1x4x8xbf16> to vector<4x8xbf16>
    %cst_224 = arith.constant dense<0.000000e+00> : vector<64x8xf32>
    %220 = tpu.matmul %217, %219, %cst_224 {dimension_numbers = #tpu.dot_dimension_numbers<[1], [0], [0], [1], [0, 0, 1, 1], [], []>} : vector<64x4xbf16>, vector<4x8xbf16>, vector<64x8xf32> -> vector<64x8xf32>
    %221 = arith.addf %214, %220 : vector<64x8xf32>
    %c2_225 = arith.constant 2 : index
    %c0_226 = arith.constant 0 : index
    %c1_227 = arith.constant 1 : index
    %c0_228 = arith.constant 0 : index
    %222 = vector.load %arg1[%c2_225, %c0_226, %c1_227, %c0_228] : memref<4x9x9x4xbf16, #tpu.memory_space<vmem>>, vector<1x8x8x4xbf16>
    %223 = vector.shape_cast %222 : vector<1x8x8x4xbf16> to vector<8x8x4xbf16>
    %224 = vector.shape_cast %223 : vector<8x8x4xbf16> to vector<64x4xbf16>
    %c1_229 = arith.constant 1 : index
    %c0_230 = arith.constant 0 : index
    %c0_231 = arith.constant 0 : index
    %225 = vector.load %arg2[%c1_229, %c0_230, %c0_231] : memref<9x4x8xbf16, #tpu.memory_space<vmem>>, vector<1x4x8xbf16>
    %226 = vector.shape_cast %225 : vector<1x4x8xbf16> to vector<4x8xbf16>
    %cst_232 = arith.constant dense<0.000000e+00> : vector<64x8xf32>
    %227 = tpu.matmul %224, %226, %cst_232 {dimension_numbers = #tpu.dot_dimension_numbers<[1], [0], [0], [1], [0, 0, 1, 1], [], []>} : vector<64x4xbf16>, vector<4x8xbf16>, vector<64x8xf32> -> vector<64x8xf32>
    %228 = arith.addf %221, %227 : vector<64x8xf32>
    %c3_233 = arith.constant 3 : index
    %c0_234 = arith.constant 0 : index
    %c1_235 = arith.constant 1 : index
    %c0_236 = arith.constant 0 : index
    %229 = vector.load %arg1[%c3_233, %c0_234, %c1_235, %c0_236] : memref<4x9x9x4xbf16, #tpu.memory_space<vmem>>, vector<1x8x8x4xbf16>
    %230 = vector.shape_cast %229 : vector<1x8x8x4xbf16> to vector<8x8x4xbf16>
    %231 = vector.shape_cast %230 : vector<8x8x4xbf16> to vector<64x4xbf16>
    %c2_237 = arith.constant 2 : index
    %c0_238 = arith.constant 0 : index
    %c0_239 = arith.constant 0 : index
    %232 = vector.load %arg2[%c2_237, %c0_238, %c0_239] : memref<9x4x8xbf16, #tpu.memory_space<vmem>>, vector<1x4x8xbf16>
    %233 = vector.shape_cast %232 : vector<1x4x8xbf16> to vector<4x8xbf16>
    %cst_240 = arith.constant dense<0.000000e+00> : vector<64x8xf32>
    %234 = tpu.matmul %231, %233, %cst_240 {dimension_numbers = #tpu.dot_dimension_numbers<[1], [0], [0], [1], [0, 0, 1, 1], [], []>} : vector<64x4xbf16>, vector<4x8xbf16>, vector<64x8xf32> -> vector<64x8xf32>
    %235 = arith.addf %228, %234 : vector<64x8xf32>
    %c1_241 = arith.constant 1 : index
    %c1_242 = arith.constant 1 : index
    %c0_243 = arith.constant 0 : index
    %c0_244 = arith.constant 0 : index
    %236 = vector.load %arg1[%c1_241, %c1_242, %c0_243, %c0_244] : memref<4x9x9x4xbf16, #tpu.memory_space<vmem>>, vector<1x8x8x4xbf16>
    %237 = vector.shape_cast %236 : vector<1x8x8x4xbf16> to vector<8x8x4xbf16>
    %238 = vector.shape_cast %237 : vector<8x8x4xbf16> to vector<64x4xbf16>
    %c3_245 = arith.constant 3 : index
    %c0_246 = arith.constant 0 : index
    %c0_247 = arith.constant 0 : index
    %239 = vector.load %arg2[%c3_245, %c0_246, %c0_247] : memref<9x4x8xbf16, #tpu.memory_space<vmem>>, vector<1x4x8xbf16>
    %240 = vector.shape_cast %239 : vector<1x4x8xbf16> to vector<4x8xbf16>
    %cst_248 = arith.constant dense<0.000000e+00> : vector<64x8xf32>
    %241 = tpu.matmul %238, %240, %cst_248 {dimension_numbers = #tpu.dot_dimension_numbers<[1], [0], [0], [1], [0, 0, 1, 1], [], []>} : vector<64x4xbf16>, vector<4x8xbf16>, vector<64x8xf32> -> vector<64x8xf32>
    %242 = arith.addf %235, %241 : vector<64x8xf32>
    %c0_249 = arith.constant 0 : index
    %c1_250 = arith.constant 1 : index
    %c1_251 = arith.constant 1 : index
    %c0_252 = arith.constant 0 : index
    %243 = vector.load %arg1[%c0_249, %c1_250, %c1_251, %c0_252] : memref<4x9x9x4xbf16, #tpu.memory_space<vmem>>, vector<1x8x8x4xbf16>
    %244 = vector.shape_cast %243 : vector<1x8x8x4xbf16> to vector<8x8x4xbf16>
    %245 = vector.shape_cast %244 : vector<8x8x4xbf16> to vector<64x4xbf16>
    %c4_253 = arith.constant 4 : index
    %c0_254 = arith.constant 0 : index
    %c0_255 = arith.constant 0 : index
    %246 = vector.load %arg2[%c4_253, %c0_254, %c0_255] : memref<9x4x8xbf16, #tpu.memory_space<vmem>>, vector<1x4x8xbf16>
    %247 = vector.shape_cast %246 : vector<1x4x8xbf16> to vector<4x8xbf16>
    %cst_256 = arith.constant dense<0.000000e+00> : vector<64x8xf32>
    %248 = tpu.matmul %245, %247, %cst_256 {dimension_numbers = #tpu.dot_dimension_numbers<[1], [0], [0], [1], [0, 0, 1, 1], [], []>} : vector<64x4xbf16>, vector<4x8xbf16>, vector<64x8xf32> -> vector<64x8xf32>
    %249 = arith.addf %242, %248 : vector<64x8xf32>
    %c1_257 = arith.constant 1 : index
    %c1_258 = arith.constant 1 : index
    %c1_259 = arith.constant 1 : index
    %c0_260 = arith.constant 0 : index
    %250 = vector.load %arg1[%c1_257, %c1_258, %c1_259, %c0_260] : memref<4x9x9x4xbf16, #tpu.memory_space<vmem>>, vector<1x8x8x4xbf16>
    %251 = vector.shape_cast %250 : vector<1x8x8x4xbf16> to vector<8x8x4xbf16>
    %252 = vector.shape_cast %251 : vector<8x8x4xbf16> to vector<64x4xbf16>
    %c5_261 = arith.constant 5 : index
    %c0_262 = arith.constant 0 : index
    %c0_263 = arith.constant 0 : index
    %253 = vector.load %arg2[%c5_261, %c0_262, %c0_263] : memref<9x4x8xbf16, #tpu.memory_space<vmem>>, vector<1x4x8xbf16>
    %254 = vector.shape_cast %253 : vector<1x4x8xbf16> to vector<4x8xbf16>
    %cst_264 = arith.constant dense<0.000000e+00> : vector<64x8xf32>
    %255 = tpu.matmul %252, %254, %cst_264 {dimension_numbers = #tpu.dot_dimension_numbers<[1], [0], [0], [1], [0, 0, 1, 1], [], []>} : vector<64x4xbf16>, vector<4x8xbf16>, vector<64x8xf32> -> vector<64x8xf32>
    %256 = arith.addf %249, %255 : vector<64x8xf32>
    %c3_265 = arith.constant 3 : index
    %c1_266 = arith.constant 1 : index
    %c0_267 = arith.constant 0 : index
    %c0_268 = arith.constant 0 : index
    %257 = vector.load %arg1[%c3_265, %c1_266, %c0_267, %c0_268] : memref<4x9x9x4xbf16, #tpu.memory_space<vmem>>, vector<1x8x8x4xbf16>
    %258 = vector.shape_cast %257 : vector<1x8x8x4xbf16> to vector<8x8x4xbf16>
    %259 = vector.shape_cast %258 : vector<8x8x4xbf16> to vector<64x4xbf16>
    %c6_269 = arith.constant 6 : index
    %c0_270 = arith.constant 0 : index
    %c0_271 = arith.constant 0 : index
    %260 = vector.load %arg2[%c6_269, %c0_270, %c0_271] : memref<9x4x8xbf16, #tpu.memory_space<vmem>>, vector<1x4x8xbf16>
    %261 = vector.shape_cast %260 : vector<1x4x8xbf16> to vector<4x8xbf16>
    %cst_272 = arith.constant dense<0.000000e+00> : vector<64x8xf32>
    %262 = tpu.matmul %259, %261, %cst_272 {dimension_numbers = #tpu.dot_dimension_numbers<[1], [0], [0], [1], [0, 0, 1, 1], [], []>} : vector<64x4xbf16>, vector<4x8xbf16>, vector<64x8xf32> -> vector<64x8xf32>
    %263 = arith.addf %256, %262 : vector<64x8xf32>
    %c2_273 = arith.constant 2 : index
    %c1_274 = arith.constant 1 : index
    %c1_275 = arith.constant 1 : index
    %c0_276 = arith.constant 0 : index
    %264 = vector.load %arg1[%c2_273, %c1_274, %c1_275, %c0_276] : memref<4x9x9x4xbf16, #tpu.memory_space<vmem>>, vector<1x8x8x4xbf16>
    %265 = vector.shape_cast %264 : vector<1x8x8x4xbf16> to vector<8x8x4xbf16>
    %266 = vector.shape_cast %265 : vector<8x8x4xbf16> to vector<64x4xbf16>
    %c7_277 = arith.constant 7 : index
    %c0_278 = arith.constant 0 : index
    %c0_279 = arith.constant 0 : index
    %267 = vector.load %arg2[%c7_277, %c0_278, %c0_279] : memref<9x4x8xbf16, #tpu.memory_space<vmem>>, vector<1x4x8xbf16>
    %268 = vector.shape_cast %267 : vector<1x4x8xbf16> to vector<4x8xbf16>
    %cst_280 = arith.constant dense<0.000000e+00> : vector<64x8xf32>
    %269 = tpu.matmul %266, %268, %cst_280 {dimension_numbers = #tpu.dot_dimension_numbers<[1], [0], [0], [1], [0, 0, 1, 1], [], []>} : vector<64x4xbf16>, vector<4x8xbf16>, vector<64x8xf32> -> vector<64x8xf32>
    %270 = arith.addf %263, %269 : vector<64x8xf32>
    %c3_281 = arith.constant 3 : index
    %c1_282 = arith.constant 1 : index
    %c1_283 = arith.constant 1 : index
    %c0_284 = arith.constant 0 : index
    %271 = vector.load %arg1[%c3_281, %c1_282, %c1_283, %c0_284] : memref<4x9x9x4xbf16, #tpu.memory_space<vmem>>, vector<1x8x8x4xbf16>
    %272 = vector.shape_cast %271 : vector<1x8x8x4xbf16> to vector<8x8x4xbf16>
    %273 = vector.shape_cast %272 : vector<8x8x4xbf16> to vector<64x4xbf16>
    %c8_285 = arith.constant 8 : index
    %c0_286 = arith.constant 0 : index
    %c0_287 = arith.constant 0 : index
    %274 = vector.load %arg2[%c8_285, %c0_286, %c0_287] : memref<9x4x8xbf16, #tpu.memory_space<vmem>>, vector<1x4x8xbf16>
    %275 = vector.shape_cast %274 : vector<1x4x8xbf16> to vector<4x8xbf16>
    %cst_288 = arith.constant dense<0.000000e+00> : vector<64x8xf32>
    %276 = tpu.matmul %273, %275, %cst_288 {dimension_numbers = #tpu.dot_dimension_numbers<[1], [0], [0], [1], [0, 0, 1, 1], [], []>} : vector<64x4xbf16>, vector<4x8xbf16>, vector<64x8xf32> -> vector<64x8xf32>
    %277 = arith.addf %270, %276 : vector<64x8xf32>
    %278 = vector.broadcast %0 : vector<1x8xf32> to vector<64x8xf32>
    %279 = arith.mulf %277, %278 : vector<64x8xf32>
    %280 = vector.broadcast %1 : vector<1x8xf32> to vector<64x8xf32>
    %281 = arith.addf %279, %280 : vector<64x8xf32>
    %cst_289 = arith.constant 0.000000e+00 : f32
    %282 = vector.broadcast %cst_289 : f32 to vector<64x8xf32>
    %283 = arith.maximumf %281, %282 : vector<64x8xf32>
    %284 = arith.maximumf %213, %283 : vector<64x8xf32>
    %c0_290 = arith.constant 0 : index
    %c0_291 = arith.constant 0 : index
    %c0_292 = arith.constant 0 : index
    %285 = vector.load %arg5[%c0_290, %c0_291, %c0_292] : memref<1x64x8xf32, #tpu.memory_space<vmem>>, vector<1x64x8xf32>
    %286 = vector.shape_cast %285 : vector<1x64x8xf32> to vector<64x8xf32>
    %287 = vector.shape_cast %284 : vector<64x8xf32> to vector<1x64x8xf32>
    tpu.vector_store %arg5[%c0_290, %c0_291, %c0_292], %287 {strides = array<i32>} : memref<1x64x8xf32, #tpu.memory_space<vmem>>, vector<1x64x8xf32>,
    return
  }
  func.func @transform_0(%arg0: i32) -> (i32, i32, i32, i32) {
    %c0_i32 = arith.constant 0 : i32
    %c0_i32_0 = arith.constant 0 : i32
    %c0_i32_1 = arith.constant 0 : i32
    %c0_i32_2 = arith.constant 0 : i32
    return %arg0, %c0_i32, %c0_i32_0, %c0_i32_1 : i32, i32, i32, i32
  }
  func.func @transform_1(%arg0: i32) -> (i32, i32, i32) {
    %c0_i32 = arith.constant 0 : i32
    %c0_i32_0 = arith.constant 0 : i32
    %c0_i32_1 = arith.constant 0 : i32
    %c0_i32_2 = arith.constant 0 : i32
    return %c0_i32, %c0_i32_0, %c0_i32_1 : i32, i32, i32
  }
  func.func @transform_2(%arg0: i32) -> (i32, i32) {
    %c0_i32 = arith.constant 0 : i32
    %c0_i32_0 = arith.constant 0 : i32
    %c0_i32_1 = arith.constant 0 : i32
    return %c0_i32, %c0_i32_0 : i32, i32
  }
  func.func @transform_3(%arg0: i32) -> (i32, i32) {
    %c0_i32 = arith.constant 0 : i32
    %c0_i32_0 = arith.constant 0 : i32
    %c0_i32_1 = arith.constant 0 : i32
    return %c0_i32, %c0_i32_0 : i32, i32
  }
  func.func @transform_4(%arg0: i32) -> (i32, i32, i32) {
    %c0_i32 = arith.constant 0 : i32
    %c0_i32_0 = arith.constant 0 : i32
    %c0_i32_1 = arith.constant 0 : i32
    return %arg0, %c0_i32, %c0_i32_0 : i32, i32, i32
  }
}

</mosaic_0001>

<bundles_post_ra>
// kernel: conv_block_forward.2
= control target key start
LH: loop header
LB: loop body
LE: loop exit
PB: predicated region body
PF: predicated region fallthrough
CT: control target
= control target key end

     0   :  { %s5926_s12 = smov 0   ;;  %s6868_s0 = inlined_call_operand.vmem [shape: bf16[8,9,9,4], index: 0, kind: input, shape index: {}]   ;;  %s6869_s1 = inlined_call_operand.vmem [shape: bf16[9,4,8], index: 1, kind: input, shape index: {}]   ;;  %s6870_s2 = inlined_call_operand.vmem [shape: f32[2,1,8], index: 2, kind: output, shape index: {0}]   ;;  %s6871_s3 = inlined_call_operand.vmem [shape: f32[2,1,8], index: 3, kind: output, shape index: {1}]  }
   0x1 LB: > { %s5932_s13 = sadd.s32 4294967295, %s5904_s12   ;;  %p4626_p0 = scmp.ge.s32.totalorder %s5904_s12, 1  ;;  %s5904_s12 = sphi %s5926_s12, %s14_s12  }
   0x2   : > { %p142_p1 = scmp.lt.s32.totalorder %s5904_s12, 3 }
   0x4   : > { %p143_p2 = pnand %p4626_p0, %p142_p1 }
   0x6   : > { %146 = sbr.rel (%p143_p2) target bundleno = 559 (0x22f), region = 28 }
   0xd   : > { %v4637_v0 = vld [vmem:[%s6869_s1 + $0x2] sm:$0x3]  ;;  %vm235_vm0 = vcmask 1041408   ;;  %s4627_s16 = sshll.u32 %s5932_s13, 2  ;;  %v190_v2 = vld [vmem:[%s6869_s1] sm:$0x3] }
   0xe   : > { %5811 = vmatprep.subr.msk.bf16.mxu0 %vm235_vm0, %v4637_v0  ;;  %v5942_v1 = vsel %vm235_vm0, %v4637_v0, 0  ;;  %p169_p3 = scmp.lt.s32.totalorder %s4627_s16, 7  ;;  %5820 = vmatprep.subr.msk.bf16.mxu1 %vm235_vm0, %v4637_v0  ;;  %vm222_vm1 = vcmask 31744   ;;  %v5958_v3 = vsel %vm235_vm0, %v190_v2, 0  ;;  %vm420_vm2 = vsmask.f32 3328 }
   0xf   : > { %5196 = vmatpush3.bf16.msra.mxu0 %v5942_v1  ;;  %5286 = vmatpush3.bf16.msra.mxu1 %v5942_v1  ;;  %vm421_vm3 = vsmask.f32 7440  ;;  %v5963_v4 = vld [vmem:[%s6869_s1 + $0x4] sm:$0x3]  ;;  %vm1573_vm5 = vcmask 64512   ;;  %p175_p4 = scmp.lt.s32.totalorder %s5932_s13, 1 }
  0x10   : > { %s6894_s16 = smov (!%p169_p3, %s4627_s16), 7  ;;  %5812 = vmatprep.subr.msk.bf16.mxu0 %vm235_vm0, %v190_v2  ;;  %5821 = vmatprep.subr.msk.bf16.mxu1 %vm235_vm0, %v190_v2  ;;  %v5980_v8 = vsel %vm235_vm0, %v5963_v4, 0  ;;  %vm6000_vm4 = vmor %vm420_vm2, %vm421_vm3  ;;  %vm4547_vm6 = vcmask 57344  }
  0x11   : > { %s5847_s19 = smul.u32 72, %s6894_s16  ;;  %s6896_s13 = smov (!%p175_p4, %s5932_s13), 1 }
  0x12   : > { %s177_s28 = scalar_lea.vmem %s6870_s2, %s6896_s13  ;;  %s180_s4 = scalar_lea.vmem %s6871_s3, %s6896_s13 }
  0x13   : > { %s5955_s22 = scalar_lea.vmem %s6868_s0, %s5847_s19 }
  0x14   : > { %v5966_v5 = vld [vmem:[%s5955_s22 + $0x48] ss:$8 sps:$4 sm:$0xff]   ;;  %v5969_v6 = vld [vmem:[%s5955_s22 + $0x58] ss:$8 sps:$4 sm:$0xff]   ;;  %v405_v10 = vld [vmem:[%s5955_s22 + $0x4] sm:$0x1] }
  0x15   : > { %5197 = vmatprep.mubr.msk.bf16.mxu0 %vm222_vm1, %v5966_v5  ;;  %v5974_v7 = vld [vmem:[%s5955_s22 + $0x68] ss:$8 sps:$4 sm:$0xff]   ;;  %v404_v9 = vld [vmem:[%s5955_s22] sm:$0xf]  ;;  %v407_v13 = vld [vmem:[%s5955_s22 + $0xc] sm:$0x1] }
  0x16   : > { %5198 = vmatmul.mubr.msk.bf16.vlgmr.msra.gmra.mrb[0].mxu0 %vm222_vm1, %v5969_v6  ;;  %v406_v11 = vld [vmem:[%s5955_s22 + $0x8] sm:$0xf]  ;;  %v5989_v12 = vld [vmem:[%s5955_s22 + $0x78] ss:$8 sps:$4 sm:$0xff]   ;;  %v424_v14 = vshrl.u32 %v404_v9, 16  ;;  %v427_v15 = vshll.u32 %v404_v9, 16 }
  0x17   : > { %5201 = vmatprep.mubr.msk.bf16.mxu0 %vm222_vm1, %v5974_v7  ;;  %5206 = vmatpush3.bf16.msra.mxu0 %v5958_v3  ;;  %v433_v16 = vshll.u32 %v405_v10, 16  ;;  %v438_v17 = vshrl.u32 %v406_v11, 16  ;;  %v441_v18 = vshll.u32 %v406_v11, 16  ;;  %v447_v19 = vshll.u32 %v407_v13, 16  ;;  %v408_v20 = vld [vmem:[%s5955_s22 + $0x10] sm:$0xf] }
  0x18   : > { %5813 = vmatprep.subr.msk.bf16.mxu0 %vm235_vm0, %v5963_v4  ;;  %v409_v21 = vld [vmem:[%s5955_s22 + $0x14] sm:$0x1]  ;;  %v426_v22 = vrot.slane %v424_v14, 4  ;;  %v429_v23 = vrot.slane %v427_v15, 5  ;;  %v410_v26 = vld [vmem:[%s5955_s22 + $0x18] sm:$0xf] }
  0x19   : > { %v435_v24 = vrot.slane %v433_v16, 5  ;;  %v440_v25 = vrot.slane %v438_v17, 4  ;;  %v443_v27 = vrot.slane %v441_v18, 5  ;;  %v449_v28 = vrot.slane %v447_v19, 5  ;;  %v411_v29 = vld [vmem:[%s5955_s22 + $0x1c] sm:$0x1] }
  0x1a   : > { %v452_v30 = vshrl.u32 %v408_v20, 16  ;;  %v455_v31 = vshll.u32 %v408_v20, 16  ;;  %v430_v32 = vor.u32 %v429_v23, %v426_v22  ;;  %v461_v33 = vshll.u32 %v409_v21, 16  ;;  %v5860_v45 = vld [vmem:[%s5955_s22] ss:$8 sps:$4 sm:$0xff]  }
  0x1b   : > { %v466_v34 = vshrl.u32 %v410_v26, 16  ;;  %v469_v35 = vshll.u32 %v410_v26, 16  ;;  %v444_v37 = vor.u32 %v443_v27, %v440_v25  ;;  %v475_v40 = vshll.u32 %v411_v29, 16  ;;  %v5861_v51 = vld [vmem:[%s5955_s22 + $0x10] ss:$8 sps:$4 sm:$0xff]  }
  0x1c   : > { %v454_v38 = vrot.slane %v452_v30, 4  ;;  %v457_v39 = vrot.slane %v455_v31, 5  ;;  %v431_v41 = vrot.slane %v430_v32, 4  ;;  %v463_v42 = vrot.slane %v461_v33, 5  ;;  %v412_v52 = vld [vmem:[%s5955_s22 + $0x20] sm:$0xf] }
  0x1d   : > { %v468_v43 = vrot.slane %v466_v34, 4  ;;  %v471_v44 = vrot.slane %v469_v35, 5  ;;  %v445_v46 = vrot.slane %v444_v37, 4  ;;  %v477_v48 = vrot.slane %v475_v40, 5  ;;  %v413_v53 = vld [vmem:[%s5955_s22 + $0x24] sm:$0x1] }
  0x1e   : > { %5202 = vmatmul.mubr.msk.bf16.gmra.mrb[4].mxu0 %vm222_vm1, %v5989_v12  ;;  %v458_v47 = vor.u32 %v457_v39, %v454_v38  ;;  %v436_v49 = vsel %vm6000_vm4, %v431_v41, %v435_v24  ;;  %v414_v56 = vld [vmem:[%s5955_s22 + $0x28] sm:$0xf]  ;;  %v415_v57 = vld [vmem:[%s5955_s22 + $0x2c] sm:$0x1]  ;;  %v480_v58 = vshrl.u32 %v412_v52, 16  ;;  %v483_v61 = vshll.u32 %v412_v52, 16 }
  0x1f   : > { %v472_v50 = vor.u32 %v471_v44, %v468_v43  ;;  %5207 = vmatprep.mubr.msk.bf16.mxu0 %vm222_vm1, %v5860_v45  ;;  %v450_v54 = vsel %vm6000_vm4, %v445_v46, %v449_v28  ;;  %v489_v62 = vshll.u32 %v413_v53, 16  ;;  %v416_v63 = vld [vmem:[%s5955_s22 + $0x30] sm:$0xf]  ;;  %v494_v9 = vshrl.u32 %v414_v56, 16  ;;  %v417_v11 = vld [vmem:[%s5955_s22 + $0x34] sm:$0x1] }
  0x20   : > { %v459_v55 = vrot.slane %v458_v47, 4  ;;  %v6017_v59 = vcombine.low %v436_v49, %v450_v54  ;;  %v482_v2 = vrot.slane %v480_v58, 4  ;;  %v497_v10 = vshll.u32 %v414_v56, 16  ;;  %v6026_v13 = vld [vmem:[%s6869_s1 + $0x6] sm:$0x3] }
  0x21   : > { %v473_v60 = vrot.slane %v472_v50, 4  ;;  %v485_v15 = vrot.slane %v483_v61, 5  ;;  %v491_v16 = vrot.slane %v489_v62, 5  ;;  %v503_v17 = vshll.u32 %v415_v57, 16  ;;  %v418_v18 = vld [vmem:[%s5955_s22 + $0x38] sm:$0xf] }
  0x22   : > { %v464_v0 = vsel %vm6000_vm4, %v459_v55, %v463_v42  ;;  %5287 = vmatprep.mubr.msk.bf16.mxu1 %vm222_vm1, %v6017_v59  ;;  %v496_v20 = vrot.slane %v494_v9, 4  ;;  %v499_v21 = vrot.slane %v497_v10, 5  ;;  %v419_v22 = vld [vmem:[%s5955_s22 + $0x3c] sm:$0x1]  ;;  %v508_v23 = vshrl.u32 %v416_v63, 16 }
  0x23   : > { %v478_v14 = vsel %vm6000_vm4, %v473_v60, %v477_v48  ;;  %v486_v24 = vor.u32 %v485_v15, %v482_v2  ;;  %v505_v25 = vrot.slane %v503_v17, 5  ;;  %v511_v26 = vshll.u32 %v416_v63, 16  ;;  %v5862_v35 = vld [vmem:[%s5955_s22 + $0x20] ss:$8 sps:$4 sm:$0xff]   ;;  %v5863_v43 = vld [vmem:[%s5955_s22 + $0x30] ss:$8 sps:$4 sm:$0xff]  }
  0x24   : > { %v6033_v19 = vcombine.low %v464_v0, %v478_v14  ;;  %v517_v27 = vshll.u32 %v417_v11, 16  ;;  %v500_v28 = vor.u32 %v499_v21, %v496_v20  ;;  %v510_v29 = vrot.slane %v508_v23, 4  ;;  %v4789_v47 = vld [vmem:[%s5955_s22 + $0x48] sm:$0xf]  ;;  %v4791_v48 = vld [vmem:[%s5955_s22 + $0x50] sm:$0xf] }
  0x25   : > { %v522_v30 = vshrl.u32 %v418_v18, 16  ;;  %v525_v31 = vshll.u32 %v418_v18, 16  ;;  %v487_v32 = vrot.slane %v486_v24, 4  ;;  %v513_v33 = vrot.slane %v511_v26, 5  ;;  %v4792_v54 = vld [vmem:[%s5955_s22 + $0x54] sm:$0x1] }
  0x26   : > { %5208 = vmatmul.mubr.msk.bf16.vlgmr.msra.gmra.mrb[0].mxu0 %vm222_vm1, %v5861_v51  ;;  %5288 = vmatmul.mubr.msk.bf16.vlgmr.msra.gmra.mrb[0].mxu1 %vm222_vm1, %v6033_v19  ;;  %v531_v34 = vshll.u32 %v419_v22, 16  ;;  %v501_v37 = vrot.slane %v500_v28, 4  ;;  %v519_v42 = vrot.slane %v517_v27, 5  ;;  %v1773_v51 = vshrl.u32 %v4789_v47, 16  ;;  %v4793_v61 = vld [vmem:[%s5955_s22 + $0x58] sm:$0xf] }
  0x27   : > { %5216 = vmatpush3.bf16.msra.mxu0 %v5980_v8  ;;  %5296 = vmatpush3.bf16.msra.mxu1 %v5958_v3  ;;  %v524_v38 = vrot.slane %v522_v30, 4  ;;  %v527_v39 = vrot.slane %v525_v31, 5  ;;  %v492_v40 = vsel %vm6000_vm4, %v487_v32, %v491_v16  ;;  %v514_v41 = vor.u32 %v513_v33, %v510_v29  ;;  %v4795_v14 = vld [vmem:[%s5955_s22 + $0x60] sm:$0xf]  ;;  %v4794_v15 = vld [vmem:[%s5955_s22 + $0x5c] sm:$0x1] }
  0x28   : > { %5814 = vmatprep.subr.msk.bf16.mxu0 %vm235_vm0, %v6026_v13  ;;  %5822 = vmatprep.subr.msk.bf16.mxu1 %vm235_vm0, %v5963_v4  ;;  %v506_v44 = vsel %vm6000_vm4, %v501_v37, %v505_v25  ;;  %v533_v46 = vrot.slane %v531_v34, 5  ;;  %v4790_v4 = vld [vmem:[%s5955_s22 + $0x4c] sm:$0x1]  ;;  %v1776_v52 = vshll.u32 %v4789_v47, 16  ;;  %v1787_v55 = vshrl.u32 %v4791_v48, 16 }
  0x29   : > { %5211 = vmatprep.mubr.msk.bf16.mxu0 %vm222_vm1, %v5862_v35  ;;  %v528_v45 = vor.u32 %v527_v39, %v524_v38  ;;  %v4657_v49 = vcombine.low %v492_v40, %v506_v44  ;;  %v515_v50 = vrot.slane %v514_v41, 4  ;;  %v1790_v56 = vshll.u32 %v4791_v48, 16  ;;  %v4796_v18 = vld [vmem:[%s5955_s22 + $0x64] sm:$0x1]  ;;  %v6081_v23 = vld [vmem:[%s6869_s1 + $0x8] sm:$0x3] }
  0x2a   : > { %v1775_v58 = vrot.slane %v1773_v51, 4  ;;  %v1778_v60 = vrot.slane %v1776_v52, 5  ;;  %v1789_v63 = vrot.slane %v1787_v55, 4  ;;  %v1782_v10 = vshll.u32 %v4790_v4, 16  ;;  %v4799_v30 = vld [vmem:[%s5955_s22 + $0x70] sm:$0xf] }
  0x2b   : > { %v529_v53 = vrot.slane %v528_v45, 4  ;;  %5291 = vmatprep.mubr.msk.bf16.mxu1 %vm222_vm1, %v4657_v49  ;;  %v520_v57 = vsel %vm6000_vm4, %v515_v50, %v519_v42  ;;  %v1792_v0 = vrot.slane %v1790_v56, 5  ;;  %v1796_v11 = vshll.u32 %v4792_v54, 16  ;;  %v4801_v40 = vld [vmem:[%s5955_s22 + $0x78] sm:$0xf] }
  0x2c   : > { %v1779_v9 = vor.u32 %v1778_v60, %v1775_v58  ;;  %v1801_v16 = vshrl.u32 %v4793_v61, 16  ;;  %v1804_v20 = vshll.u32 %v4793_v61, 16  ;;  %v1815_v21 = vshrl.u32 %v4795_v14, 16  ;;  %v4798_v41 = vld [vmem:[%s5955_s22 + $0x6c] sm:$0x1] }
  0x2d   : > { %v534_v62 = vsel %vm6000_vm4, %v529_v53, %v533_v46  ;;  %v1793_v17 = vor.u32 %v1792_v0, %v1789_v63  ;;  %v1818_v22 = vshll.u32 %v4795_v14, 16  ;;  %v1784_v25 = vrot.slane %v1782_v10, 5  ;;  %v4800_v42 = vld [vmem:[%s5955_s22 + $0x74] sm:$0x1]  ;;  %v5864_v46 = vld [vmem:[%s5955_s22 + $0x90] ss:$8 sps:$4 sm:$0xff]  }
  0x2e   : > { %5212 = vmatmul.mubr.msk.bf16.gmra.mrb[4].mxu0 %vm222_vm1, %v5863_v43  ;;  %v6065_v2 = vcombine.low %v520_v57, %v534_v62  ;;  %v1780_v24 = vrot.slane %v1779_v9, 4  ;;  %v1798_v26 = vrot.slane %v1796_v11, 5  ;;  %v1810_v27 = vshll.u32 %v4794_v15, 16  ;;  %v4802_v61 = vld [vmem:[%s5955_s22 + $0x7c] sm:$0x1] }
  0x2f   : > { %5217 = vmatprep.mubr.msk.bf16.mxu0 %vm222_vm1, %v6017_v59  ;;  %v6076_v59 = vsel %vm235_vm0, %v6026_v13, 0  ;;  %v1803_v28 = vrot.slane %v1801_v16, 4  ;;  %v1824_v29 = vshll.u32 %v4796_v18, 16  ;;  %v1794_v31 = vrot.slane %v1793_v17, 4  ;;  %v4804_v62 = vld [vmem:[%s5955_s22 + $0x84] sm:$0x1] }
  0x30   : > { %5292 = vmatmul.mubr.msk.bf16.gmra.mrb[4].mxu1 %vm222_vm1, %v6065_v2  ;;  %v1806_v32 = vrot.slane %v1804_v20, 5  ;;  %v1817_v35 = vrot.slane %v1815_v21, 4  ;;  %v1820_v37 = vrot.slane %v1818_v22, 5  ;;  %v1843_v38 = vshrl.u32 %v4799_v30, 16 }
  0x31   : > { %5297 = vmatprep.mubr.msk.bf16.mxu1 %vm222_vm1, %v5966_v5  ;;  %v4797_v5 = vld [vmem:[%s5955_s22 + $0x68] sm:$0xf]  ;;  %v1846_v39 = vshll.u32 %v4799_v30, 16  ;;  %v1812_v45 = vrot.slane %v1810_v27, 5  ;;  %v1799_v50 = vsel %vm6000_vm4, %v1794_v31, %v1798_v26  ;;  %v1826_v51 = vrot.slane %v1824_v29, 5 }
  0x32   : > { %v1829_v33 = vshrl.u32 %v4797_v5, 16  ;;  %v1832_v34 = vshll.u32 %v4797_v5, 16  ;;  %v1845_v47 = vrot.slane %v1843_v38, 4  ;;  %v1807_v4 = vor.u32 %v1806_v32, %v1803_v28  ;;  %v5866_v26 = vld [vmem:[%s5955_s22 + $0xb0] ss:$8 sps:$4 sm:$0xff]  }
  0x33   : > { %v1848_v48 = vrot.slane %v1846_v39, 5  ;;  %v1857_v52 = vshrl.u32 %v4801_v40, 16  ;;  %v1821_v53 = vor.u32 %v1820_v37, %v1817_v35  ;;  %v1838_v54 = vshll.u32 %v4798_v41, 16  ;;  %v6132_v29 = vld [vmem:[%s6869_s1 + $0xa] sm:$0x3] }
  0x34   : > { %v1831_v43 = vrot.slane %v1829_v33, 4  ;;  %v1834_v44 = vrot.slane %v1832_v34, 5  ;;  %v1852_v55 = vshll.u32 %v4800_v42, 16  ;;  %v1860_v56 = vshll.u32 %v4801_v40, 16  ;;  %v4697_v33 = vld [vmem:[%s5955_s22 + $0x90] sm:$0xf] }
  0x35   : > { %v1849_v57 = vor.u32 %v1848_v48, %v1845_v47  ;;  %v1859_v63 = vrot.slane %v1857_v52, 4  ;;  %v1808_v11 = vrot.slane %v1807_v4, 4  ;;  %v1822_v14 = vrot.slane %v1821_v53, 4  ;;  %v4699_v35 = vld [vmem:[%s5955_s22 + $0x98] sm:$0xf] }
  0x36   : > { %5218 = vmatmul.mubr.msk.bf16.vlgmr.msra.gmra.mrb[0].mxu0 %vm222_vm1, %v6033_v19  ;;  %v1785_v19 = vsel %vm6000_vm4, %v1780_v24, %v1784_v25  ;;  %v1862_v0 = vrot.slane %v1860_v56, 5  ;;  %v1854_v15 = vrot.slane %v1852_v55, 5  ;;  %v1866_v20 = vshll.u32 %v4802_v61, 16  ;;  %v4701_v38 = vld [vmem:[%s5955_s22 + $0xa0] sm:$0xf] }
  0x37   : > { %5221 = vmatprep.mubr.msk.bf16.mxu0 %vm222_vm1, %v4657_v49  ;;  %5226 = vmatpush3.bf16.msra.mxu0 %v6076_v59  ;;  %v4803_v49 = vld [vmem:[%s5955_s22 + $0x80] sm:$0xf]  ;;  %v1850_v17 = vrot.slane %v1849_v57, 4  ;;  %v1880_v22 = vshll.u32 %v4804_v62, 16  ;;  %v1813_v24 = vsel %vm6000_vm4, %v1808_v11, %v1812_v45  ;;  %v1827_v25 = vsel %vm6000_vm4, %v1822_v14, %v1826_v51  ;;  %v4703_v39 = vld [vmem:[%s5955_s22 + $0xa8] sm:$0xf] }
  0x38   : > { %5815 = vmatprep.subr.msk.bf16.mxu0 %vm235_vm0, %v6081_v23  ;;  %5298 = vmatmul.mubr.msk.bf16.vlgmr.msra.gmra.mrb[0].mxu1 %vm222_vm1, %v5969_v6  ;;  %v1835_v6 = vor.u32 %v1834_v44, %v1831_v43  ;;  %v1871_v58 = vshrl.u32 %v4803_v49, 16  ;;  %v1874_v60 = vshll.u32 %v4803_v49, 16  ;;  %v1863_v18 = vor.u32 %v1862_v0, %v1859_v63  ;;  %v6148_v44 = vld [vmem:[%s5955_s22 + $0xc0] ss:$8 sps:$4 sm:$0xff]   ;;  %v4698_v51 = vld [vmem:[%s5955_s22 + $0x94] sm:$0x1] }
  0x39   : > { %5306 = vmatpush3.bf16.msra.mxu1 %v5980_v8  ;;  %5301 = vmatprep.mubr.msk.bf16.mxu1 %vm222_vm1, %v5974_v7  ;;  %v4805_v7 = vcombine.low %v1785_v19, %v1799_v50  ;;  %v1855_v28 = vsel %vm6000_vm4, %v1850_v17, %v1854_v15  ;;  %v1868_v30 = vrot.slane %v1866_v20, 5  ;;  %v1882_v32 = vrot.slane %v1880_v22, 5  ;;  %v4705_v50 = vld [vmem:[%s5955_s22 + $0xb0] sm:$0xf]  ;;  %v6155_v4 = vld [vmem:[%s5955_s22 + $0xd8] ss:$8 sps:$4 sm:$0xff]  }
  0x3a   : > { %5823 = vmatprep.subr.msk.bf16.mxu1 %vm235_vm0, %v6026_v13  ;;  %v1873_v9 = vrot.slane %v1871_v58, 4  ;;  %v1876_v10 = vrot.slane %v1874_v60, 5  ;;  %v1840_v13 = vrot.slane %v1838_v54, 5  ;;  %v1836_v16 = vrot.slane %v1835_v6, 4  ;;  %v4700_v52 = vld [vmem:[%s5955_s22 + $0x9c] sm:$0x1] }
  0x3b   : > { %v1864_v5 = vrot.slane %v1863_v18, 4  ;;  %v4806_v34 = vcombine.low %v1813_v24, %v1827_v25  ;;  %v892_v40 = vshrl.u32 %v4697_v33, 16  ;;  %v895_v41 = vshll.u32 %v4697_v33, 16  ;;  %v4702_v56 = vld [vmem:[%s5955_s22 + $0xa4] sm:$0x1] }
  0x3c   : > { %v1877_v21 = vor.u32 %v1876_v10, %v1873_v9  ;;  %v1841_v27 = vsel %vm6000_vm4, %v1836_v16, %v1840_v13  ;;  %v906_v19 = vshrl.u32 %v4699_v35, 16  ;;  %v909_v45 = vshll.u32 %v4699_v35, 16  ;;  %v4707_v6 = vld [vmem:[%s5955_s22 + $0xb8] sm:$0xf]  ;;  %v4704_v60 = vld [vmem:[%s5955_s22 + $0xac] sm:$0x1] }
  0x3d   : > { %v4807_v37 = vcombine.low %v1841_v27, %v1855_v28  ;;  %v1869_v42 = vsel %vm6000_vm4, %v1864_v5, %v1868_v30  ;;  %v923_v47 = vshll.u32 %v4701_v38, 16  ;;  %v934_v48 = vshrl.u32 %v4703_v39, 16  ;;  %v6171_v13 = vld [vmem:[%s6869_s1 + $0xc] sm:$0x3]  ;;  %v4706_v20 = vld [vmem:[%s5955_s22 + $0xb4] sm:$0x1] }
  0x3e   : > { %5222 = vmatmul.mubr.msk.bf16.gmra.mrb[4].mxu0 %vm222_vm1, %v6065_v2  ;;  %v5865_v2 = vld [vmem:[%s5955_s22 + $0xa0] ss:$8 sps:$4 sm:$0xff]   ;;  %v1878_v31 = vrot.slane %v1877_v21, 4  ;;  %v937_v49 = vshll.u32 %v4703_v39, 16  ;;  %v894_v54 = vrot.slane %v892_v40, 4  ;;  %v897_v55 = vrot.slane %v895_v41, 5 }
  0x3f   : > { %5227 = vmatprep.mubr.msk.bf16.mxu0 %vm222_vm1, %v5864_v46  ;;  %v920_v46 = vshrl.u32 %v4701_v38, 16  ;;  %v908_v57 = vrot.slane %v906_v19, 4  ;;  %v911_v58 = vrot.slane %v909_v45, 5  ;;  %v948_v61 = vshrl.u32 %v4705_v50, 16  ;;  %6883 = vst [vmem:[#allocation2_spill] sm:$0xff] %v6171_v13 }
  0x40   : > { %5302 = vmatmul.mubr.msk.bf16.gmra.mrb[4].mxu1 %vm222_vm1, %v5989_v12  ;;  %v6127_v12 = vsel %vm235_vm0, %v6081_v23, 0  ;;  %v1883_v43 = vsel %vm6000_vm4, %v1878_v31, %v1882_v32  ;;  %v951_v62 = vshll.u32 %v4705_v50, 16  ;;  %v925_v0 = vrot.slane %v923_v47, 5  ;;  %v4708_v21 = vld [vmem:[%s5955_s22 + $0xbc] sm:$0x1] }
  0x41   : > { %5307 = vmatprep.mubr.msk.bf16.mxu1 %vm222_vm1, %v4805_v7  ;;  %v4808_v53 = vcombine.low %v1869_v42, %v1883_v43  ;;  %v922_v63 = vrot.slane %v920_v46, 4  ;;  %v936_v7 = vrot.slane %v934_v48, 4  ;;  %v939_v9 = vrot.slane %v937_v49, 5  ;;  %v6177_v24 = vld [vmem:[%s5955_s22 + $0xe8] ss:$8 sps:$4 sm:$0xff]  }
  0x42   : > { %v915_v10 = vshll.u32 %v4700_v52, 16  ;;  %v962_v11 = vshrl.u32 %v4707_v6, 16  ;;  %v965_v14 = vshll.u32 %v4707_v6, 16  ;;  %v898_v15 = vor.u32 %v897_v55, %v894_v54  ;;  %v6190_v5 = vld [vmem:[%s5955_s22 + $0xf8] ss:$8 sps:$4 sm:$0xff]  }
  0x43   : > { %v929_v16 = vshll.u32 %v4702_v56, 16  ;;  %v943_v17 = vshll.u32 %v4704_v60, 16  ;;  %v912_v18 = vor.u32 %v911_v58, %v908_v57  ;;  %v950_v22 = vrot.slane %v948_v61, 4  ;;  %v4711_v40 = vld [vmem:[%s5955_s22 + $0xc8] sm:$0xf] }
  0x44   : > { %v6181_v25 = vsel %vm235_vm0, %v6132_v29, 0  ;;  %v940_v27 = vor.u32 %v939_v9, %v936_v7  ;;  %v6185_v28 = vsel %vm235_vm0, %v6171_v13, 0  ;;  %v917_v31 = vrot.slane %v915_v10, 5  ;;  %v4710_v19 = vld [vmem:[%s5955_s22 + $0xc4] sm:$0x1] }
  0x45   : > { %6884 = vst [vmem:[#allocation3_spill] sm:$0xff] %v6181_v25  ;;  %6885 = vst [vmem:[#allocation4_spill] sm:$0xff] %v6185_v28  ;;  %v964_v32 = vrot.slane %v962_v11, 4  ;;  %v967_v33 = vrot.slane %v965_v14, 5  ;;  %v899_v35 = vrot.slane %v898_v15, 4  ;;  %v957_v38 = vshll.u32 %v4706_v20, 16 }
  0x46   : > { %5228 = vmatmul.mubr.msk.bf16.vlgmr.msra.gmra.mrb[0].mxu0 %vm222_vm1, %v5865_v2  ;;  %v953_v2 = vrot.slane %v951_v62, 5  ;;  %v971_v39 = vshll.u32 %v4708_v21, 16  ;;  %v913_v41 = vrot.slane %v912_v18, 4  ;;  %v6196_v42 = vrot.slane %v943_v17, 5  ;;  %v4821_v45 = vld [vmem:[%s5955_s22 + $0xd8] sm:$0xf] }
  0x47   : > { %5231 = vmatprep.mubr.msk.bf16.mxu0 %vm222_vm1, %v5866_v26  ;;  %5236 = vmatpush3.bf16.msra.mxu0 %v6127_v12  ;;  %v926_v26 = vor.u32 %v925_v0, %v922_v63  ;;  %v941_v47 = vrot.slane %v940_v27, 4  ;;  %v4823_v50 = vld [vmem:[%s5955_s22 + $0xe0] sm:$0xf]  ;;  %v990_v52 = vshrl.u32 %v4711_v40, 16  ;;  %v959_v54 = vrot.slane %v957_v38, 5 }
  0x48   : > { %5816 = vmatprep.subr.msk.bf16.mxu0 %vm235_vm0, %v6132_v29  ;;  %5308 = vmatmul.mubr.msk.bf16.vlgmr.msra.gmra.mrb[0].mxu1 %vm222_vm1, %v4806_v34  ;;  %v4709_v34 = vld [vmem:[%s5955_s22 + $0xc0] sm:$0xf]  ;;  %v954_v43 = vor.u32 %v953_v2, %v950_v22  ;;  %v973_v55 = vrot.slane %v971_v39, 5  ;;  %v4712_v56 = vld [vmem:[%s5955_s22 + $0xcc] sm:$0x1]  ;;  %v2144_v6 = vshrl.u32 %v4821_v45, 16  ;;  %v918_v60 = vsel %vm6000_vm4, %v913_v41, %v917_v31 }
  0x49   : > { %5316 = vmatpush3.bf16.msra.mxu1 %v6076_v59  ;;  %5311 = vmatprep.mubr.msk.bf16.mxu1 %vm222_vm1, %v4807_v37  ;;  %v6193_v37 = vrot.slane %v929_v16, 5  ;;  %v927_v46 = vrot.slane %v926_v26, 4  ;;  %v976_v48 = vshrl.u32 %v4709_v34, 16  ;;  %v979_v49 = vshll.u32 %v4709_v34, 16  ;;  %v4822_v15 = vld [vmem:[%s5955_s22 + $0xdc] sm:$0x1] }
  0x4a   : > { %5824 = vmatprep.subr.msk.bf16.mxu1 %vm235_vm0, %v6081_v23  ;;  %v901_v23 = vshll.u32 %v4698_v51, 16  ;;  %v968_v51 = vor.u32 %v967_v33, %v964_v32  ;;  %v2147_v57 = vshll.u32 %v4821_v45, 16  ;;  %v955_v61 = vrot.slane %v954_v43, 4  ;;  %v6220_v16 = vld [vmem:[%s5955_s22 + $0x108] ss:$8 sps:$4 sm:$0xff]  }
  0x4b   : > { %v985_v62 = vshll.u32 %v4710_v19, 16  ;;  %v978_v63 = vrot.slane %v976_v48, 4  ;;  %v981_v0 = vrot.slane %v979_v49, 5  ;;  %v2158_v7 = vshrl.u32 %v4823_v50, 16  ;;  %v4824_v18 = vld [vmem:[%s5955_s22 + $0xe4] sm:$0x1] }
  0x4c   : > { %v903_v30 = vrot.slane %v901_v23, 5  ;;  %v2161_v9 = vshll.u32 %v4823_v50, 16  ;;  %v969_v23 = vrot.slane %v968_v51, 4  ;;  %v992_v10 = vrot.slane %v990_v52, 4  ;;  %v4826_v31 = vld [vmem:[%s5955_s22 + $0xec] sm:$0x1] }
  0x4d   : > { %v999_v14 = vshll.u32 %v4712_v56, 16  ;;  %v2146_v20 = vrot.slane %v2144_v6, 4  ;;  %v2149_v21 = vrot.slane %v2147_v57, 5  ;;  %v932_v22 = vsel %vm6000_vm4, %v927_v46, %v6193_v37  ;;  %v4829_v45 = vld [vmem:[%s5955_s22 + $0xf8] sm:$0xf] }
  0x4e   : > { %5232 = vmatmul.mubr.msk.bf16.gmra.mrb[4].mxu0 %vm222_vm1, %v6148_v44  ;;  %v904_v58 = vsel %vm6000_vm4, %v899_v35, %v903_v30  ;;  %v946_v2 = vsel %vm6000_vm4, %v941_v47, %v6196_v42  ;;  %v960_v26 = vsel %vm6000_vm4, %v955_v61, %v959_v54  ;;  %v6235_v27 = vrot.slane %v985_v62, 5  ;;  %v4825_v30 = vld [vmem:[%s5955_s22 + $0xe8] sm:$0xf]  ;;  %v4827_v35 = vld [vmem:[%s5955_s22 + $0xf0] sm:$0xf] }
  0x4f   : > { %5237 = vmatprep.mubr.msk.bf16.mxu0 %vm222_vm1, %v6155_v4  ;;  %v6222_v17 = vcombine.low %v904_v58, %v918_v60  ;;  %v2153_v32 = vshll.u32 %v4822_v15, 16  ;;  %v2160_v33 = vrot.slane %v2158_v7, 4  ;;  %v2163_v34 = vrot.slane %v2161_v9, 5  ;;  %v4831_v49 = vld [vmem:[%s5955_s22 + $0x100] sm:$0xf] }
  0x50   : > { %5312 = vmatmul.mubr.msk.bf16.gmra.mrb[4].mxu1 %vm222_vm1, %v4808_v53  ;;  %v993_v53 = vshll.u32 %v4711_v40, 16  ;;  %v974_v37 = vsel %vm6000_vm4, %v969_v23, %v973_v55  ;;  %v1001_v39 = vrot.slane %v999_v14, 5  ;;  %v2167_v40 = vshll.u32 %v4824_v18, 16  ;;  %v4828_v56 = vld [vmem:[%s5955_s22 + $0xf4] sm:$0x1] }
  0x51   : > { %5317 = vmatprep.mubr.msk.bf16.mxu1 %vm222_vm1, %v6155_v4  ;;  %v2150_v41 = vor.u32 %v2149_v21, %v2146_v20  ;;  %v2172_v42 = vshrl.u32 %v4825_v30, 16  ;;  %v2175_v43 = vshll.u32 %v4825_v30, 16  ;;  %v2181_v19 = vshll.u32 %v4826_v31, 16  ;;  %v6260_v58 = vld [vmem:[%s6869_s1 + $0xe] sm:$0x3] }
  0x52   : > { %v995_v11 = vrot.slane %v993_v53, 5  ;;  %v6247_v46 = vcombine.low %v932_v22, %v946_v2  ;;  %v2186_v47 = vshrl.u32 %v4827_v35, 16  ;;  %v2189_v48 = vshll.u32 %v4827_v35, 16  ;;  %6886 = vst [vmem:[#allocation5_spill] sm:$0xff] %v6260_v58  ;;  %v4830_v14 = vld [vmem:[%s5955_s22 + $0xfc] sm:$0x1] }
  0x53   : > { %v6252_v50 = vcombine.low %v960_v26, %v974_v37  ;;  %v2155_v52 = vrot.slane %v2153_v32, 5  ;;  %v2164_v53 = vor.u32 %v2163_v34, %v2160_v33  ;;  %v2169_v55 = vrot.slane %v2167_v40, 5  ;;  %v4833_v15 = vld [vmem:[%s5955_s22 + $0x108] sm:$0xf]  ;;  %v4835_v21 = vld [vmem:[%s5955_s22 + $0x110] sm:$0xf] }
  0x54   : > { %v996_v38 = vor.u32 %v995_v11, %v992_v10  ;;  %v2200_v6 = vshrl.u32 %v4829_v45, 16  ;;  %v2203_v57 = vshll.u32 %v4829_v45, 16  ;;  %v2151_v60 = vrot.slane %v2150_v41, 4  ;;  %v6280_v32 = vld [vmem:[%s5955_s22 + $0x8] ss:$8 sps:$4 sm:$0xff]  }
  0x55   : > { %v2174_v61 = vrot.slane %v2172_v42, 4  ;;  %v2214_v62 = vshrl.u32 %v4831_v49, 16  ;;  %v6262_v7 = vrot.slane %v2181_v19, 5  ;;  %v2188_v9 = vrot.slane %v2186_v47, 4  ;;  %v4832_v33 = vld [vmem:[%s5955_s22 + $0x104] sm:$0x1] }
  0x56   : > { %5238 = vmatmul.mubr.msk.bf16.vlgmr.msra.gmra.mrb[0].mxu0 %vm222_vm1, %v6177_v24  ;;  %v997_v54 = vrot.slane %v996_v38, 4  ;;  %v2191_v23 = vrot.slane %v2189_v48, 5  ;;  %v2165_v10 = vrot.slane %v2164_v53, 4  ;;  %v2195_v11 = vshll.u32 %v4828_v56, 16 }
  0x57   : > { %5241 = vmatprep.mubr.msk.bf16.mxu0 %vm222_vm1, %v6190_v5  ;;  %5246 = vmatpush3.bf16.msra.mxu0 %v6181_v25  ;;  %v2202_v18 = vrot.slane %v2200_v6, 4  ;;  %v2205_v20 = vrot.slane %v2203_v57, 5  ;;  %v2216_v26 = vrot.slane %v2214_v62, 4  ;;  %v2228_v34 = vshrl.u32 %v4833_v15, 16 }
  0x58   : > { %5817 = vmatprep.subr.msk.bf16.mxu0 %vm235_vm0, %v6171_v13  ;;  %5318 = vmatmul.mubr.msk.bf16.vlgmr.msra.gmra.mrb[0].mxu1 %vm222_vm1, %v6177_v24  ;;  %v1002_v2 = vsel %vm6000_vm4, %v997_v54, %v1001_v39  ;;  %v2231_v35 = vshll.u32 %v4833_v15, 16  ;;  %v2242_v37 = vshrl.u32 %v4835_v21, 16  ;;  %v2156_v39 = vsel %vm6000_vm4, %v2151_v60, %v2155_v52  ;;  %v4834_v52 = vld [vmem:[%s5955_s22 + $0x10c] sm:$0x1]  ;;  %v6318_v15 = vld [vmem:[%s5955_s22 + $0x28] ss:$8 sps:$4 sm:$0xff]  }
  0x59   : > { %5326 = vmatpush3.bf16.msra.mxu1 %v6127_v12  ;;  %5321 = vmatprep.mubr.msk.bf16.mxu1 %vm222_vm1, %v6190_v5  ;;  %v2197_v40 = vrot.slane %v2195_v11, 5  ;;  %v2209_v41 = vshll.u32 %v4830_v14, 16  ;;  %v2170_v42 = vsel %vm6000_vm4, %v2165_v10, %v2169_v55  ;;  %v2223_v45 = vshll.u32 %v4832_v33, 16  ;;  %v4836_v55 = vld [vmem:[%s5955_s22 + $0x114] sm:$0x1] }
  0x5a   : > { %5825 = vmatprep.subr.msk.bf16.mxu1 %vm235_vm0, %v6132_v29  ;;  %v982_v29 = vor.u32 %v981_v0, %v978_v63  ;;  %v2217_v63 = vshll.u32 %v4831_v49, 16  ;;  %v2177_v0 = vrot.slane %v2175_v43, 5  ;;  %v2206_v43 = vor.u32 %v2205_v20, %v2202_v18  ;;  %v4756_v14 = vld [vmem:[%s5955_s22 + $0x8] sm:$0xf]  ;;  %v4758_v18 = vld [vmem:[%s5955_s22 + $0x10] sm:$0xf] }
  0x5b   : > { %v2230_v49 = vrot.slane %v2228_v34, 4  ;;  %v2244_v53 = vrot.slane %v2242_v37, 4  ;;  %v6299_v56 = vcombine.low %v2156_v39, %v2170_v42  ;;  %v2211_v57 = vrot.slane %v2209_v41, 5  ;;  %v6344_v39 = vld [vmem:[%s5955_s22 + $0x38] ss:$8 sps:$4 sm:$0xff]  }
  0x5c   : > { %v983_v51 = vrot.slane %v982_v29, 4  ;;  %v2219_v30 = vrot.slane %v2217_v63, 5  ;;  %v2178_v31 = vor.u32 %v2177_v0, %v2174_v61  ;;  %v2192_v29 = vor.u32 %v2191_v23, %v2188_v9  ;;  %v6312_v23 = vld [vmem:[%s5955_s22 + $0x18] ss:$8 sps:$4 sm:$0xff]  }
  0x5d   : > { %v2207_v6 = vrot.slane %v2206_v43, 4  ;;  %v2225_v61 = vrot.slane %v2223_v45, 5  ;;  %v2237_v9 = vshll.u32 %v4834_v52, 16  ;;  %v2251_v11 = vshll.u32 %v4836_v55, 16  ;;  %v4760_v43 = vld [vmem:[%s5955_s22 + $0x18] sm:$0xf] }
  0x5e   : > { %5242 = vmatmul.mubr.msk.bf16.gmra.mrb[4].mxu0 %vm222_vm1, %v6220_v16  ;;  %v988_v22 = vsel %vm6000_vm4, %v983_v51, %v6235_v27  ;;  %v2245_v27 = vshll.u32 %v4835_v21, 16  ;;  %v2220_v19 = vor.u32 %v2219_v30, %v2216_v26  ;;  %v2179_v47 = vrot.slane %v2178_v31, 4  ;;  %v6334_v30 = vld [vmem:[%s6869_s1 + $0x10] sm:$0x3]  ;;  %v4762_v52 = vld [vmem:[%s5955_s22 + $0x20] sm:$0xf] }
  0x5f   : > { %5247 = vmatprep.mubr.msk.bf16.mxu0 %vm222_vm1, %v6222_v17  ;;  %v6288_v38 = vcombine.low %v988_v22, %v1002_v2  ;;  %v2193_v48 = vrot.slane %v2192_v29, 4  ;;  %v2233_v51 = vrot.slane %v2231_v35, 5  ;;  %v2212_v20 = vsel %vm6000_vm4, %v2207_v6, %v2211_v57  ;;  %v4764_v57 = vld [vmem:[%s5955_s22 + $0x28] sm:$0xf] }
  0x60   : > { %5322 = vmatmul.mubr.msk.bf16.gmra.mrb[4].mxu1 %vm222_vm1, %v6220_v16  ;;  %v2247_v54 = vrot.slane %v2245_v27, 5  ;;  %v2221_v60 = vrot.slane %v2220_v19, 4  ;;  %v2184_v62 = vsel %vm6000_vm4, %v2179_v47, %v6262_v7  ;;  %v6329_v22 = vsel %vm235_vm0, %v6260_v58, 0  ;;  %v4759_v47 = vld [vmem:[%s5955_s22 + $0x14] sm:$0x1] }
  0x61   : > { %5327 = vmatprep.mubr.msk.bf16.mxu1 %vm222_vm1, %v6222_v17  ;;  %v2198_v63 = vsel %vm6000_vm4, %v2193_v48, %v2197_v40  ;;  %v2234_v0 = vor.u32 %v2233_v51, %v2230_v49  ;;  %6887 = vst [vmem:[#allocation6_spill] sm:$0xff] %v6329_v22  ;;  %v2239_v26 = vrot.slane %v2237_v9, 5  ;;  %v1360_v31 = vshrl.u32 %v4756_v14, 16  ;;  %v4757_v40 = vld [vmem:[%s5955_s22 + $0xc] sm:$0x1] }
  0x62   : > { %v2248_v10 = vor.u32 %v2247_v54, %v2244_v53  ;;  %v6321_v7 = vcombine.low %v2184_v62, %v2198_v63  ;;  %v2226_v21 = vsel %vm6000_vm4, %v2221_v60, %v2225_v61  ;;  %v1363_v29 = vshll.u32 %v4756_v14, 16  ;;  %v4761_v51 = vld [vmem:[%s5955_s22 + $0x1c] sm:$0x1]  ;;  %v4763_v53 = vld [vmem:[%s5955_s22 + $0x24] sm:$0x1] }
  0x63   : > { %v2235_v2 = vrot.slane %v2234_v0, 4  ;;  %v2253_v34 = vrot.slane %v2251_v11, 5  ;;  %v1374_v35 = vshrl.u32 %v4758_v18, 16  ;;  %v1377_v37 = vshll.u32 %v4758_v18, 16  ;;  %v6369_v61 = vld [vmem:[%s5955_s22 + $0x50] ss:$8 sps:$4 sm:$0xff]  }
  0x64   : > { %v2249_v33 = vrot.slane %v2248_v10, 4  ;;  %v6338_v27 = vcombine.low %v2212_v20, %v2226_v21  ;;  %v1362_v41 = vrot.slane %v1360_v31, 4  ;;  %v1365_v42 = vrot.slane %v1363_v29, 5  ;;  %v4766_v9 = vld [vmem:[%s5955_s22 + $0x30] sm:$0xf] }
  0x65   : > { %v2240_v19 = vsel %vm6000_vm4, %v2235_v2, %v2239_v26  ;;  %v1376_v48 = vrot.slane %v1374_v35, 4  ;;  %v1379_v49 = vrot.slane %v1377_v37, 5  ;;  %v1369_v54 = vshll.u32 %v4757_v40, 16 }
  0x66   : > { %5248 = vmatmul.mubr.msk.bf16.vlgmr.msra.gmra.mrb[0].mxu0 %vm222_vm1, %v6247_v46  ;;  %v2254_v45 = vsel %vm6000_vm4, %v2249_v33, %v2253_v34  ;;  %v1388_v55 = vshrl.u32 %v4760_v43, 16  ;;  %v1391_v6 = vshll.u32 %v4760_v43, 16  ;;  %v1366_v62 = vor.u32 %v1365_v42, %v1362_v41  ;;  %v4768_v34 = vld [vmem:[%s5955_s22 + $0x38] sm:$0xf]  ;;  %v4765_v42 = vld [vmem:[%s5955_s22 + $0x2c] sm:$0x1] }
  0x67   : > { %5251 = vmatprep.mubr.msk.bf16.mxu0 %vm222_vm1, %v6252_v50  ;;  %5256 = vmatpush3.bf16.msra.mxu0 %v6185_v28  ;;  %v6366_v60 = vcombine.low %v2240_v19, %v2254_v45  ;;  %v1383_v63 = vshll.u32 %v4759_v47, 16  ;;  %v1397_v0 = vshll.u32 %v4761_v51, 16  ;;  %v1380_v10 = vor.u32 %v1379_v49, %v1376_v48  ;;  %v6393_v43 = vld [vmem:[%s5955_s22 + $0x60] ss:$8 sps:$4 sm:$0xff]   ;;  %v6401_v51 = vld [vmem:[%s5955_s22 + $0x70] ss:$8 sps:$4 sm:$0xff]  }
  0x68   : > { %5818 = vmatprep.subr.msk.bf16.mxu0 %vm235_vm0, %v6260_v58  ;;  %5328 = vmatmul.mubr.msk.bf16.vlgmr.msra.gmra.mrb[0].mxu1 %vm222_vm1, %v6247_v46  ;;  %v1402_v11 = vshrl.u32 %v4762_v52, 16  ;;  %v1405_v14 = vshll.u32 %v4762_v52, 16  ;;  %v1411_v18 = vshll.u32 %v4763_v53, 16  ;;  %v6378_v20 = vsel %vm235_vm0, %v6334_v30, 0  ;;  %v4770_v49 = vld [vmem:[%s5955_s22 + $0x40] sm:$0xf] }
  0x69   : > { %5336 = vmatpush3.bf16.msra.mxu1 %v6181_v25  ;;  %5331 = vmatprep.mubr.msk.bf16.mxu1 %vm222_vm1, %v6252_v50  ;;  %v1416_v21 = vshrl.u32 %v4764_v57, 16  ;;  %v1419_v2 = vshll.u32 %v4764_v57, 16  ;;  %v1390_v26 = vrot.slane %v1388_v55, 4  ;;  %v1393_v31 = vrot.slane %v1391_v6, 5  ;;  %v4767_v57 = vld [vmem:[%s5955_s22 + $0x34] sm:$0x1] }
  0x6a   : > { %5826 = vmatprep.subr.msk.bf16.mxu1 %vm235_vm0, %v6171_v13  ;;  %v1430_v29 = vshrl.u32 %v4766_v9, 16  ;;  %v1433_v33 = vshll.u32 %v4766_v9, 16  ;;  %v6381_v35 = vrot.slane %v1366_v62, 4  ;;  %v6383_v37 = vrot.slane %v1369_v54, 5  ;;  %v4769_v9 = vld [vmem:[%s5955_s22 + $0x3c] sm:$0x1] }
  0x6b   : > { %v6385_v40 = vrot.slane %v1383_v63, 5  ;;  %v6387_v41 = vrot.slane %v1397_v0, 5  ;;  %v1381_v19 = vrot.slane %v1380_v10, 4  ;;  %v1404_v45 = vrot.slane %v1402_v11, 4  ;;  %v4771_v10 = vld [vmem:[%s5955_s22 + $0x44] sm:$0x1] }
  0x6c   : > { %v1407_v47 = vrot.slane %v1405_v14, 5  ;;  %v6395_v48 = vrot.slane %v1411_v18, 5  ;;  %v1418_v52 = vrot.slane %v1416_v21, 4  ;;  %v1421_v53 = vrot.slane %v1419_v2, 5  ;;  %v4853_v21 = vld [vmem:[%s5955_s22 + $0x50] sm:$0xf] }
  0x6d   : > { %v1444_v54 = vshrl.u32 %v4768_v34, 16  ;;  %v1447_v55 = vshll.u32 %v4768_v34, 16  ;;  %v1394_v6 = vor.u32 %v1393_v31, %v1390_v26  ;;  %v1425_v62 = vshll.u32 %v4765_v42, 16  ;;  %v4859_v25 = vld [vmem:[%s5955_s22 + $0x68] sm:$0xf] }
  0x6e   : > { %5252 = vmatmul.mubr.msk.bf16.gmra.mrb[4].mxu0 %vm222_vm1, %v6288_v38  ;;  %v1432_v63 = vrot.slane %v1430_v29, 4  ;;  %v1435_v0 = vrot.slane %v1433_v33, 5  ;;  %v1458_v11 = vshrl.u32 %v4770_v49, 16  ;;  %v1461_v14 = vshll.u32 %v4770_v49, 16  ;;  %v4855_v33 = vld [vmem:[%s5955_s22 + $0x58] sm:$0xf] }
  0x6f   : > { %5257 = vmatprep.mubr.msk.bf16.mxu0 %vm222_vm1, %v6280_v32  ;;  %v1372_v18 = vsel %vm6000_vm4, %v6381_v35, %v6383_v37  ;;  %v1408_v2 = vor.u32 %v1407_v47, %v1404_v45  ;;  %v1422_v26 = vor.u32 %v1421_v53, %v1418_v52  ;;  %v1446_v31 = vrot.slane %v1444_v54, 4  ;;  %v6423_v35 = vld [vmem:[%s6869_s1 + $0x2] sm:$0x3] }
  0x70   : > { %5332 = vmatmul.mubr.msk.bf16.gmra.mrb[4].mxu1 %vm222_vm1, %v6288_v38  ;;  %v1449_v29 = vrot.slane %v1447_v55, 5  ;;  %v1386_v34 = vsel %vm6000_vm4, %v1381_v19, %v6385_v40  ;;  %v1395_v42 = vrot.slane %v1394_v6, 4  ;;  %v1436_v49 = vor.u32 %v1435_v0, %v1432_v63  ;;  %v6430_v40 = vld [vmem:[%s5955_s22 + $0x80] ss:$8 sps:$4 sm:$0xff]  }
  0x71   : > { %5337 = vmatprep.mubr.msk.bf16.mxu1 %vm222_vm1, %v6299_v56  ;;  %v1460_v37 = vrot.slane %v1458_v11, 4  ;;  %v1463_v45 = vrot.slane %v1461_v14, 5  ;;  %v2515_v47 = vshrl.u32 %v4853_v21, 16  ;;  %v2518_v52 = vshll.u32 %v4853_v21, 16  ;;  %v4854_v11 = vld [vmem:[%s5955_s22 + $0x54] sm:$0x1] }
  0x72   : > { %v1453_v19 = vshll.u32 %v4769_v9, 16  ;;  %v1467_v53 = vshll.u32 %v4771_v10, 16  ;;  %v2529_v54 = vshrl.u32 %v4855_v33, 16  ;;  %v2532_v55 = vshll.u32 %v4855_v33, 16  ;;  %v4856_v9 = vld [vmem:[%s5955_s22 + $0x5c] sm:$0x1] }
  0x73   : > { %v1409_v6 = vrot.slane %v1408_v2, 4  ;;  %v1427_v63 = vrot.slane %v1425_v62, 5  ;;  %v1450_v0 = vor.u32 %v1449_v29, %v1446_v31  ;;  %v1437_v14 = vrot.slane %v1436_v49, 4  ;;  %v4857_v10 = vld [vmem:[%s5955_s22 + $0x60] sm:$0xf] }
  0x74   : > { %v6440_v33 = vcombine.low %v1372_v18, %v1386_v34  ;;  %v2520_v13 = vrot.slane %v2518_v52, 5  ;;  %v1455_v62 = vrot.slane %v1453_v19, 5  ;;  %v1469_v2 = vrot.slane %v1467_v53, 5  ;;  %v4861_v49 = vld [vmem:[%s5955_s22 + $0x70] sm:$0xf] }
  0x75   : > { %v2534_v31 = vrot.slane %v2532_v55, 5  ;;  %v2524_v29 = vshll.u32 %v4854_v11, 16  ;;  %v1400_v18 = vsel %vm6000_vm4, %v1395_v42, %v6387_v41  ;;  %v1414_v34 = vsel %vm6000_vm4, %v1409_v6, %v6395_v48 }
  0x76   : > { %5258 = vmatmul.mubr.msk.bf16.vlgmr.msra.gmra.mrb[0].mxu0 %vm222_vm1, %v6312_v23  ;;  %v2538_v53 = vshll.u32 %v4856_v9, 16  ;;  %v2546_v41 = vshll.u32 %v4857_v10, 16  ;;  %v2557_v42 = vshrl.u32 %v4859_v25, 16  ;;  %v6463_v48 = vcombine.low %v1400_v18, %v1414_v34 }
  0x77   : > { %5261 = vmatprep.mubr.msk.bf16.mxu0 %vm222_vm1, %v6318_v15  ;;  %5266 = vmatpush3.bf16.msra.mxu0 %v6329_v22 }
  0x78   : > { %5819 = vmatprep.subr.msk.bf16.mxu0 %vm235_vm0, %v6334_v30  ;;  %5338 = vmatmul.mubr.msk.bf16.vlgmr.msra.gmra.mrb[0].mxu1 %vm222_vm1, %v6321_v7 }
  0x79   : > { %5346 = vmatpush3.bf16.msra.mxu1 %v6185_v28  ;;  %5341 = vmatprep.mubr.msk.bf16.mxu1 %vm222_vm1, %v6338_v27  ;;  %v2517_v28 = vrot.slane %v2515_v47, 4  ;;  %v4863_v47 = vld [vmem:[%s5955_s22 + $0x78] sm:$0xf] }
  0x7a   : > { %5827 = vmatprep.subr.msk.bf16.mxu1 %vm235_vm0, %v6260_v58  ;;  %v1439_v58 = vshll.u32 %v4767_v57, 16  ;;  %v1423_v57 = vrot.slane %v1422_v26, 4  ;;  %v2531_v26 = vrot.slane %v2529_v54, 4  ;;  %v2543_v54 = vshrl.u32 %v4857_v10, 16 }
  0x7b   : > { %v2521_v19 = vor.u32 %v2520_v13, %v2517_v28  ;;  %v2526_v28 = vrot.slane %v2524_v29, 5  ;;  %v2588_v11 = vshll.u32 %v4863_v47, 16  ;;  %v4865_v29 = vld [vmem:[%s5955_s22 + $0x80] sm:$0xf] }
  0x7c   : > { %v1441_v21 = vrot.slane %v1439_v58, 5  ;;  %v1451_v58 = vrot.slane %v1450_v0, 4  ;;  %v2535_v55 = vor.u32 %v2534_v31, %v2531_v26  ;;  %v2560_v0 = vshll.u32 %v4859_v25, 16  ;;  %v4858_v26 = vld [vmem:[%s5955_s22 + $0x64] sm:$0x1] }
  0x7d   : > { %v2545_v9 = vrot.slane %v2543_v54, 4  ;;  %v2559_v31 = vrot.slane %v2557_v42, 4  ;;  %v4862_v54 = vld [vmem:[%s5955_s22 + $0x74] sm:$0x1] }
  0x7e   : > { %5262 = vmatmul.mubr.msk.bf16.gmra.mrb[4].mxu0 %vm222_vm1, %v6344_v39  ;;  %v1456_v13 = vsel %vm6000_vm4, %v1451_v58, %v1455_v62  ;;  %v2536_v10 = vrot.slane %v2535_v55, 4  ;;  %v2548_v62 = vrot.slane %v2546_v41, 5  ;;  %v2562_v58 = vrot.slane %v2560_v0, 5  ;;  %v4864_v55 = vld [vmem:[%s5955_s22 + $0x7c] sm:$0x1] }
  0x7f   : > { %5267 = vmatprep.mubr.msk.bf16.mxu0 %vm222_vm1, %v6369_v61 }
  0x80   : > { %5342 = vmatmul.mubr.msk.bf16.gmra.mrb[4].mxu1 %vm222_vm1, %v6366_v60  ;;  %v2549_v42 = vor.u32 %v2548_v62, %v2545_v9  ;;  %v2563_v0 = vor.u32 %v2562_v58, %v2559_v31  ;;  %v4866_v58 = vld [vmem:[%s5955_s22 + $0x84] sm:$0x1] }
  0x81   : > { %5347 = vmatprep.mubr.msk.bf16.mxu1 %vm222_vm1, %v6369_v61 }
  0x82   : > { %v2564_v62 = vrot.slane %v2563_v0, 4 }
  0x86   : > { %5268 = vmatmul.mubr.msk.bf16.vlgmr.msra.gmra.mrb[0].mxu0 %vm222_vm1, %v6393_v43 }
  0x87   : > { %5271 = vmatprep.mubr.msk.bf16.mxu0 %vm222_vm1, %v6401_v51  ;;  %5276 = vmatpush3.bf16.msra.mxu0 %v6378_v20 }
  0x88   : > { %5829 = vmatprep.subr.msk.bf16.mxu0 %vm235_vm0, %v6423_v35  ;;  %5348 = vmatmul.mubr.msk.bf16.vlgmr.msra.gmra.mrb[0].mxu1 %vm222_vm1, %v6393_v43 }
  0x89   : > { %5356 = vmatpush3.bf16.msra.mxu1 %v6329_v22  ;;  %5351 = vmatprep.mubr.msk.bf16.mxu1 %vm222_vm1, %v6401_v51  ;;  %v1464_v22 = vor.u32 %v1463_v45, %v1460_v37  ;;  %v1428_v37 = vsel %vm6000_vm4, %v1423_v57, %v1427_v63  ;;  %v1442_v45 = vsel %vm6000_vm4, %v1437_v14, %v1441_v21  ;;  %v2574_v57 = vshll.u32 %v4861_v49, 16 }
  0x8a   : > { %5828 = vmatprep.subr.msk.bf16.mxu1 %vm235_vm0, %v6334_v30  ;;  %v6465_v6 = vcombine.low %v1428_v37, %v1442_v45  ;;  %v2585_v63 = vshrl.u32 %v4863_v47, 16  ;;  %v2522_v14 = vrot.slane %v2521_v19, 4  ;;  %v2540_v21 = vrot.slane %v2538_v53, 5  ;;  %v4867_v45 = vld [vmem:[%s5955_s22 + $0x88] sm:$0xf] }
  0x8b   : > { %v1465_v52 = vrot.slane %v1464_v22, 4  ;;  %v2571_v22 = vshrl.u32 %v4861_v49, 16  ;;  %v2576_v18 = vrot.slane %v2574_v57, 5  ;;  %v2590_v37 = vrot.slane %v2588_v11, 5  ;;  %v6483_v47 = vld [vmem:[%s6869_s1] sm:$0x3] }
  0x8c   : > { %v2587_v34 = vrot.slane %v2585_v63, 4  ;;  %v2527_v19 = vsel %vm6000_vm4, %v2522_v14, %v2526_v28  ;;  %v2552_v53 = vshll.u32 %v4858_v26, 16  ;;  %v2541_v41 = vsel %vm6000_vm4, %v2536_v10, %v2540_v21 }
  0x8d   : > { %v1470_v25 = vsel %vm6000_vm4, %v1465_v52, %v1469_v2  ;;  %v4860_v2 = vld [vmem:[%s5955_s22 + $0x6c] sm:$0x1]  ;;  %v2573_v49 = vrot.slane %v2571_v22, 4  ;;  %v2602_v28 = vshll.u32 %v4865_v29, 16  ;;  %v2613_v57 = vshrl.u32 %v4867_v45, 16 }
  0x8e   : > { %5272 = vmatmul.mubr.msk.bf16.gmra.mrb[4].mxu0 %vm222_vm1, %v6430_v40  ;;  %v6487_v52 = vcombine.low %v1456_v13, %v1470_v25  ;;  %v2566_v22 = vshll.u32 %v4860_v2, 16  ;;  %v2599_v13 = vshrl.u32 %v4865_v29, 16  ;;  %v2616_v63 = vshll.u32 %v4867_v45, 16 }
  0x8f   : > { %5277 = vmatprep.mubr.msk.bf16.mxu0 %vm222_vm1, %v6440_v33  ;;  %v2577_v11 = vor.u32 %v2576_v18, %v2573_v49  ;;  %v2580_v25 = vshll.u32 %v4862_v54, 16  ;;  %v2591_v14 = vor.u32 %v2590_v37, %v2587_v34  ;;  %v2594_v21 = vshll.u32 %v4864_v55, 16 }
  0x90   : > { %5352 = vmatmul.mubr.msk.bf16.gmra.mrb[4].mxu1 %vm222_vm1, %v6430_v40  ;;  %v2554_v9 = vrot.slane %v2552_v53, 5  ;;  %v6504_v10 = vcombine.low %v2527_v19, %v2541_v41  ;;  %v2550_v26 = vrot.slane %v2549_v42, 4  ;;  %v2568_v31 = vrot.slane %v2566_v22, 5  ;;  %v4868_v53 = vld [vmem:[%s5955_s22 + $0x8c] sm:$0x1] }
  0x91   : > { %5357 = vmatprep.mubr.msk.bf16.mxu1 %vm222_vm1, %v6440_v33  ;;  %v2601_v2 = vrot.slane %v2599_v13, 4  ;;  %v2615_v29 = vrot.slane %v2613_v57, 4  ;;  %v2618_v49 = vrot.slane %v2616_v63, 5  ;;  %v2578_v18 = vrot.slane %v2577_v11, 4 }
  0x92   : > { %v2582_v34 = vrot.slane %v2580_v25, 5  ;;  %v2592_v37 = vrot.slane %v2591_v14, 4  ;;  %v2596_v45 = vrot.slane %v2594_v21, 5  ;;  %v2555_v19 = vsel %vm6000_vm4, %v2550_v26, %v2554_v9  ;;  %v5890_v21 = vld [vmem:[%s6869_s1 + $0x4] sm:$0x3] }
  0x93   : > { %v2608_v54 = vshll.u32 %v4866_v58, 16  ;;  %v2569_v55 = vsel %vm6000_vm4, %v2564_v62, %v2568_v31  ;;  %v2619_v42 = vor.u32 %v2618_v49, %v2615_v29  ;;  %v2622_v0 = vshll.u32 %v4868_v53, 16  ;;  %v5891_v31 = vld [vmem:[%s5955_s22 + $0x90] ss:$8 sps:$4 sm:$0xff]   ;;  %v4943_v29 = vld [vmem:[%s5955_s22 + $0xc0] sm:$0xf] }
  0x94   : > { %v2583_v22 = vsel %vm6000_vm4, %v2578_v18, %v2582_v34  ;;  %v2597_v13 = vsel %vm6000_vm4, %v2592_v37, %v2596_v45  ;;  %v5893_v58 = vld [vmem:[%s5955_s22 + $0xb0] ss:$8 sps:$4 sm:$0xff]   ;;  %v4938_v45 = vld [vmem:[%s5955_s22 + $0xac] sm:$0x1] }
  0x95   : > { %v2610_v57 = vrot.slane %v2608_v54, 5  ;;  %v6526_v63 = vcombine.low %v2583_v22, %v2597_v13  ;;  %v2620_v25 = vrot.slane %v2619_v42, 4  ;;  %v2624_v14 = vrot.slane %v2622_v0, 5  ;;  %v4945_v0 = vld [vmem:[%s5955_s22 + $0xc8] sm:$0xf] }
  0x96   : > { %5278 = vmatmul.mubr.msk.bf16.vlgmr.msra.gmra.mrb[0].mxu0 %vm222_vm1, %v6463_v48  ;;  %v3515_v42 = vshll.u32 %v4943_v29, 16  ;;  %v4940_v22 = vld [vmem:[%s5955_s22 + $0xb4] sm:$0x1] }
  0x97   : > { %5281 = vmatprep.mubr.msk.bf16.mxu0 %vm222_vm1, %v6465_v6  ;;  %5376 = vmatpush3.bf16.msra.mxu0 %v5942_v1  ;;  %v2625_v26 = vsel %vm6000_vm4, %v2620_v25, %v2624_v14  ;;  %v3479_v14 = vshll.u32 %v4938_v45, 16 }
  0x98   : > { %5830 = vmatprep.subr.msk.bf16.mxu0 %vm235_vm0, %v6483_v47  ;;  %5358 = vmatmul.mubr.msk.bf16.vlgmr.msra.gmra.mrb[0].mxu1 %vm222_vm1, %v6463_v48 }
  0x99   : > { %5366 = vmatpush3.bf16.msra.mxu1 %v6378_v20  ;;  %5361 = vmatprep.mubr.msk.bf16.mxu1 %vm222_vm1, %v6465_v6 }
  0x9a   : > { %5838 = vmatprep.subr.msk.bf16.mxu1 %vm235_vm0, %v6423_v35  ;;  %v2604_v35 = vrot.slane %v2602_v28, 5  ;;  %v6522_v28 = vcombine.low %v2555_v19, %v2569_v55 }
  0x9c   : > { %v2605_v41 = vor.u32 %v2604_v35, %v2601_v2 }
  0x9e   : > { %5282 = vmatmul.mubr.msk.bf16.gmra.mrb[4].mxu0 %vm222_vm1, %v6487_v52  ;;  %v2606_v11 = vrot.slane %v2605_v41, 4  ;;  %v3512_v41 = vshrl.u32 %v4943_v29, 16 }
  0x9f   : > { %5377 = vmatprep.mubr.msk.bf16.mxu0 %vm222_vm1, %v6155_v4 }
  0xa0   : > { %5362 = vmatmul.mubr.msk.bf16.gmra.mrb[4].mxu1 %vm222_vm1, %v6487_v52  ;;  %v2611_v9 = vsel %vm6000_vm4, %v2606_v11, %v2610_v57  ;;  %v5885_v57 = vld [vmem:[%s5955_s22 + $0xf0] ss:$8 sps:$4 sm:$0xff]  }
  0xa1   : > { %5367 = vmatprep.mubr.msk.bf16.mxu1 %vm222_vm1, %v6504_v10  ;;  %v6546_v62 = vcombine.low %v2611_v9, %v2625_v26  ;;  %v4942_v9 = vld [vmem:[%s5955_s22 + $0xbc] sm:$0x1] }
  0xa6   : > { %5378 = vmatmul.mubr.msk.bf16.vlgmr.msra.gmra.mrb[8].mxu0 %vm222_vm1, %v6177_v24 }
  0xa7   : > { %5381 = vmatprep.mubr.msk.bf16.mxu0 %vm222_vm1, %v6190_v5  ;;  %5386 = vmatpush3.bf16.msra.mxu0 %v5958_v3 }
  0xa8   : > { %5831 = vmatprep.subr.msk.bf16.mxu0 %vm235_vm0, %v5890_v21  ;;  %5368 = vmatmul.mubr.msk.bf16.vlgmr.msra.gmra.mrb[0].mxu1 %vm222_vm1, %v6522_v28 }
  0xa9   : > { %5466 = vmatpush3.bf16.msra.mxu1 %v5942_v1  ;;  %5371 = vmatprep.mubr.msk.bf16.mxu1 %vm222_vm1, %v6526_v63  ;;  %v5892_v1 = vld [vmem:[%s5955_s22 + $0xa0] ss:$8 sps:$4 sm:$0xff]  }
  0xaa   : > { %5839 = vmatprep.subr.msk.bf16.mxu1 %vm235_vm0, %v6483_v47  ;;  %v5894_v47 = vld [vmem:[%s6869_s1 + $0x6] sm:$0x3] }
  0xae   : > { %5382 = vmatmul.mubr.msk.bf16.gmra.mrb[12].mxu0 %vm222_vm1, %v6220_v16 }
  0xaf   : > { %5387 = vmatprep.mubr.msk.bf16.mxu0 %vm222_vm1, %v5891_v31 }
  0xb0   : > { %5372 = vmatmul.mubr.msk.bf16.gmra.mrb[4].mxu1 %vm222_vm1, %v6546_v62 }
  0xb1   : > { %5467 = vmatprep.mubr.msk.bf16.mxu1 %vm222_vm1, %v6222_v17 }
  0xb6   : > { %5388 = vmatmul.mubr.msk.bf16.vlgmr.msra.gmra.mrb[8].mxu0 %vm222_vm1, %v5892_v1  ;;  %v3526_v1 = vshrl.u32 %v4945_v0, 16 }
  0xb7   : > { %5391 = vmatprep.mubr.msk.bf16.mxu0 %vm222_vm1, %v5893_v58  ;;  %5396 = vmatpush3.bf16.msra.mxu0 %v5980_v8  ;;  %v3529_v58 = vshll.u32 %v4945_v0, 16  ;;  %v4993_v0 = vld [vmem:[%s5955_s22 + $0xf0] sm:$0xf] }
  0xb8   : > { %5832 = vmatprep.subr.msk.bf16.mxu0 %vm235_vm0, %v5894_v47  ;;  %5468 = vmatmul.mubr.msk.bf16.vlgmr.msra.gmra.mrb[8].mxu1 %vm222_vm1, %v6247_v46 }
  0xb9   : > { %5476 = vmatpush3.bf16.msra.mxu1 %v5958_v3  ;;  %5471 = vmatprep.mubr.msk.bf16.mxu1 %vm222_vm1, %v6252_v50  ;;  %v5895_v3 = vld [vmem:[%s6869_s1 + $0x8] sm:$0x3] }
  0xba   : > { %5840 = vmatprep.subr.msk.bf16.mxu1 %vm235_vm0, %v5890_v21  ;;  %v4947_v21 = vld [vmem:[%s5955_s22 + $0xd0] sm:$0xf] }
  0xbe   : > { %5392 = vmatmul.mubr.msk.bf16.gmra.mrb[12].mxu0 %vm222_vm1, %v6148_v44  ;;  %v6889_v44 = vld [vmem:[#allocation2_spill] sm:$0xff] }
  0xbf   : > { %5397 = vmatprep.mubr.msk.bf16.mxu0 %vm222_vm1, %v6222_v17  ;;  %v5882_v17 = vld [vmem:[%s5955_s22 + $0xb8] ss:$8 sps:$4 sm:$0xff]  }
  0xc0   : > { %5472 = vmatmul.mubr.msk.bf16.gmra.mrb[12].mxu1 %vm222_vm1, %v6288_v38 }
  0xc1   : > { %5477 = vmatprep.mubr.msk.bf16.mxu1 %vm222_vm1, %v6155_v4  ;;  %v6891_v4 = vld [vmem:[#allocation5_spill] sm:$0xff] }
  0xc6   : > { %5398 = vmatmul.mubr.msk.bf16.vlgmr.msra.gmra.mrb[8].mxu0 %vm222_vm1, %v6247_v46  ;;  %v4933_v46 = vld [vmem:[%s5955_s22 + $0x98] sm:$0xf] }
  0xc7   : > { %5401 = vmatprep.mubr.msk.bf16.mxu0 %vm222_vm1, %v6252_v50  ;;  %5406 = vmatpush3.bf16.msra.mxu0 %v6076_v59  ;;  %v4935_v50 = vld [vmem:[%s5955_s22 + $0xa0] sm:$0xf] }
  0xc8   : > { %5833 = vmatprep.subr.msk.bf16.mxu0 %vm235_vm0, %v5895_v3  ;;  %5478 = vmatmul.mubr.msk.bf16.vlgmr.msra.gmra.mrb[8].mxu1 %vm222_vm1, %v6177_v24  ;;  %v5880_v24 = vld [vmem:[%s5955_s22 + $0x98] ss:$8 sps:$4 sm:$0xff]  }
  0xc9   : > { %5486 = vmatpush3.bf16.msra.mxu1 %v5980_v8  ;;  %5481 = vmatprep.mubr.msk.bf16.mxu1 %vm222_vm1, %v6190_v5  ;;  %v5896_v8 = vld [vmem:[%s6869_s1 + $0xa] sm:$0x3]  ;;  %v5897_v5 = vld [vmem:[%s6869_s1 + $0xc] sm:$0x3] }
  0xca   : > { %5841 = vmatprep.subr.msk.bf16.mxu1 %vm235_vm0, %v5894_v47  ;;  %v5886_v47 = vld [vmem:[%s5955_s22 + $0x100] ss:$8 sps:$4 sm:$0xff]  }
  0xce   : > { %5402 = vmatmul.mubr.msk.bf16.gmra.mrb[12].mxu0 %vm222_vm1, %v6288_v38  ;;  %v3445_v38 = vshll.u32 %v4933_v46, 16 }
  0xcf   : > { %5407 = vmatprep.mubr.msk.bf16.mxu0 %vm222_vm1, %v6280_v32  ;;  %v3442_v32 = vshrl.u32 %v4933_v46, 16  ;;  %v3507_v46 = vshll.u32 %v4942_v9, 16 }
  0xd0   : > { %5482 = vmatmul.mubr.msk.bf16.gmra.mrb[12].mxu1 %vm222_vm1, %v6220_v16  ;;  %v5881_v16 = vld [vmem:[%s5955_s22 + $0xa8] ss:$8 sps:$4 sm:$0xff]  }
  0xd1   : > { %5487 = vmatprep.mubr.msk.bf16.mxu1 %vm222_vm1, %v6299_v56  ;;  %v6892_v56 = vld [vmem:[#allocation6_spill] sm:$0xff] }
  0xd6   : > { %5408 = vmatmul.mubr.msk.bf16.vlgmr.msra.gmra.mrb[8].mxu0 %vm222_vm1, %v6312_v23  ;;  %v4937_v23 = vld [vmem:[%s5955_s22 + $0xa8] sm:$0xf] }
  0xd7   : > { %5411 = vmatprep.mubr.msk.bf16.mxu0 %vm222_vm1, %v6318_v15  ;;  %5416 = vmatpush3.bf16.msra.mxu0 %v6127_v12  ;;  %v3456_v15 = vshrl.u32 %v4935_v50, 16 }
  0xd8   : > { %5834 = vmatprep.subr.msk.bf16.mxu0 %vm235_vm0, %v5896_v8  ;;  %5488 = vmatmul.mubr.msk.bf16.vlgmr.msra.gmra.mrb[8].mxu1 %vm222_vm1, %v6321_v7  ;;  %v3459_v7 = vshll.u32 %v4935_v50, 16 }
  0xd9   : > { %5496 = vmatpush3.bf16.msra.mxu1 %v6076_v59  ;;  %5491 = vmatprep.mubr.msk.bf16.mxu1 %vm222_vm1, %v6338_v27  ;;  %v6888_v59 = vld [vmem:[#allocation3_spill] sm:$0xff] }
  0xda   : > { %5842 = vmatprep.subr.msk.bf16.mxu1 %vm235_vm0, %v5895_v3  ;;  %v5883_v27 = vld [vmem:[%s5955_s22 + $0xc8] ss:$8 sps:$4 sm:$0xff]  }
  0xde   : > { %5412 = vmatmul.mubr.msk.bf16.gmra.mrb[12].mxu0 %vm222_vm1, %v6344_v39  ;;  %v3444_v39 = vrot.slane %v3442_v32, 4  ;;  %v3528_v32 = vrot.slane %v3526_v1, 4 }
  0xdf   : > { %5417 = vmatprep.mubr.msk.bf16.mxu0 %vm222_vm1, %v6369_v61 }
  0xe0   : > { %5492 = vmatmul.mubr.msk.bf16.gmra.mrb[12].mxu1 %vm222_vm1, %v6366_v60  ;;  %v3447_v60 = vrot.slane %v3445_v38, 5  ;;  %v3531_v38 = vrot.slane %v3529_v58, 5  ;;  %v4318_v58 = vshll.u32 %v4993_v0, 16 }
  0xe1   : > { %5497 = vmatprep.mubr.msk.bf16.mxu1 %vm222_vm1, %v6369_v61  ;;  %v4939_v61 = vld [vmem:[%s5955_s22 + $0xb0] sm:$0xf] }
  0xe2   : > { %v3484_v2 = vshrl.u32 %v4939_v61, 16  ;;  %v3487_v35 = vshll.u32 %v4939_v61, 16  ;;  %v3448_v49 = vor.u32 %v3447_v60, %v3444_v39  ;;  %v4946_v61 = vld [vmem:[%s5955_s22 + $0xcc] sm:$0x1] }
  0xe4   : > { %v3486_v13 = vrot.slane %v3484_v2, 4 }
  0xe6   : > { %5418 = vmatmul.mubr.msk.bf16.vlgmr.msra.gmra.mrb[8].mxu0 %vm222_vm1, %v6393_v43 }
  0xe7   : > { %5421 = vmatprep.mubr.msk.bf16.mxu0 %vm222_vm1, %v6401_v51  ;;  %5426 = vmatpush3.bf16.msra.mxu0 %v6888_v59 }
  0xe8   : > { %5835 = vmatprep.subr.msk.bf16.mxu0 %vm235_vm0, %v6889_v44  ;;  %5498 = vmatmul.mubr.msk.bf16.vlgmr.msra.gmra.mrb[8].mxu1 %vm222_vm1, %v6393_v43  ;;  %v3470_v43 = vshrl.u32 %v4937_v23, 16 }
  0xe9   : > { %5506 = vmatpush3.bf16.msra.mxu1 %v6127_v12  ;;  %5501 = vmatprep.mubr.msk.bf16.mxu1 %vm222_vm1, %v6401_v51  ;;  %v6890_v12 = vld [vmem:[#allocation4_spill] sm:$0xff]  ;;  %v3473_v51 = vshll.u32 %v4937_v23, 16  ;;  %v4989_v23 = vld [vmem:[%s5955_s22 + $0xe0] sm:$0xf] }
  0xea   : > { %5843 = vmatprep.subr.msk.bf16.mxu1 %vm235_vm0, %v5896_v8  ;;  %v3472_v34 = vrot.slane %v3470_v43, 4 }
  0xeb   : > { %v3475_v37 = vrot.slane %v3473_v51, 5 }
  0xed   : > { %v3476_v25 = vor.u32 %v3475_v37, %v3472_v34  ;;  %v3535_v34 = vshll.u32 %v4946_v61, 16 }
  0xee   : > { %5422 = vmatmul.mubr.msk.bf16.gmra.mrb[12].mxu0 %vm222_vm1, %v6430_v40 }
  0xef   : > { %5427 = vmatprep.mubr.msk.bf16.mxu0 %vm222_vm1, %v6440_v33 }
  0xf0   : > { %5502 = vmatmul.mubr.msk.bf16.gmra.mrb[12].mxu1 %vm222_vm1, %v6430_v40  ;;  %v4934_v40 = vld [vmem:[%s5955_s22 + $0x9c] sm:$0x1] }
  0xf1   : > { %5507 = vmatprep.mubr.msk.bf16.mxu1 %vm222_vm1, %v6440_v33  ;;  %v5884_v33 = vld [vmem:[%s5955_s22 + $0xe0] ss:$8 sps:$4 sm:$0xff]   ;;  %v3451_v18 = vshll.u32 %v4934_v40, 16  ;;  %v4948_v40 = vld [vmem:[%s5955_s22 + $0xd4] sm:$0x1] }
  0xf3   : > { %v3453_v11 = vrot.slane %v3451_v18, 5  ;;  %v3532_v18 = vor.u32 %v3531_v38, %v3528_v32 }
  0xf6   : > { %5428 = vmatmul.mubr.msk.bf16.vlgmr.msra.gmra.mrb[8].mxu0 %vm222_vm1, %v6463_v48 }
  0xf7   : > { %5431 = vmatprep.mubr.msk.bf16.mxu0 %vm222_vm1, %v6465_v6  ;;  %5436 = vmatpush3.bf16.msra.mxu0 %v6890_v12 }
  0xf8   : > { %5836 = vmatprep.subr.msk.bf16.mxu0 %vm235_vm0, %v6891_v4  ;;  %5508 = vmatmul.mubr.msk.bf16.vlgmr.msra.gmra.mrb[8].mxu1 %vm222_vm1, %v6463_v48  ;;  %v3458_v48 = vrot.slane %v3456_v15, 4  ;;  %v4991_v15 = vld [vmem:[%s5955_s22 + $0xe8] sm:$0xf] }
  0xf9   : > { %5516 = vmatpush3.bf16.msra.mxu1 %v6888_v59  ;;  %5511 = vmatprep.mubr.msk.bf16.mxu1 %vm222_vm1, %v6465_v6  ;;  %v3461_v6 = vrot.slane %v3459_v7, 5  ;;  %v3514_v59 = vrot.slane %v3512_v41, 4  ;;  %v4304_v2 = vshll.u32 %v4991_v15, 16 }
  0xfa   : > { %5844 = vmatprep.subr.msk.bf16.mxu1 %vm235_vm0, %v5897_v5  ;;  %v3543_v5 = vshll.u32 %v4947_v21, 16 }
  0xfb   : > { %v3462_v54 = vor.u32 %v3461_v6, %v3458_v48  ;;  %v4287_v6 = vshrl.u32 %v4989_v23, 16 }
  0xfc   : > { %v3545_v48 = vrot.slane %v3543_v5, 5 }
  0xfd   : > { %v3463_v3 = vrot.slane %v3462_v54, 4 }
  0xfe   : > { %5432 = vmatmul.mubr.msk.bf16.gmra.mrb[12].mxu0 %vm222_vm1, %v6487_v52 }
  0xff   : > { %5437 = vmatprep.mubr.msk.bf16.mxu0 %vm222_vm1, %v5880_v24  ;;  %v3540_v24 = vshrl.u32 %v4947_v21, 16 }
 0x100   : > { %5512 = vmatmul.mubr.msk.bf16.gmra.mrb[12].mxu1 %vm222_vm1, %v6487_v52  ;;  %v4941_v52 = vld [vmem:[%s5955_s22 + $0xb8] sm:$0xf] }
 0x101   : > { %5517 = vmatprep.mubr.msk.bf16.mxu1 %vm222_vm1, %v6504_v10  ;;  %v4936_v10 = vld [vmem:[%s5955_s22 + $0xa4] sm:$0x1]  ;;  %v3498_v53 = vshrl.u32 %v4941_v52, 16  ;;  %v3501_v19 = vshll.u32 %v4941_v52, 16  ;;  %v4290_v52 = vshll.u32 %v4989_v23, 16 }
 0x102   : > { %v3465_v55 = vshll.u32 %v4936_v10, 16  ;;  %v4301_v10 = vshrl.u32 %v4991_v15, 16  ;;  %v4994_v23 = vld [vmem:[%s5955_s22 + $0xf4] sm:$0x1] }
 0x103   : > { %v3500_v26 = vrot.slane %v3498_v53, 4  ;;  %v3503_v31 = vrot.slane %v3501_v19, 5  ;;  %v3549_v53 = vshll.u32 %v4948_v40, 16  ;;  %v4990_v19 = vld [vmem:[%s5955_s22 + $0xe4] sm:$0x1] }
 0x104   : > { %v3467_v8 = vrot.slane %v3465_v55, 5 }
 0x105   : > { %v3504_v50 = vor.u32 %v3503_v31, %v3500_v26  ;;  %v3551_v9 = vrot.slane %v3549_v53, 5  ;;  %v4315_v31 = vshrl.u32 %v4993_v0, 16 }
 0x106   : > { %5438 = vmatmul.mubr.msk.bf16.vlgmr.msra.gmra.mrb[8].mxu0 %vm222_vm1, %v5881_v16  ;;  %v6708_v16 = vrot.slane %v3476_v25, 4  ;;  %v4296_v25 = vshll.u32 %v4990_v19, 16 }
 0x107   : > { %5441 = vmatprep.mubr.msk.bf16.mxu0 %vm222_vm1, %v5882_v17  ;;  %5446 = vmatpush3.bf16.msra.mxu0 %v6892_v56  ;;  %v6710_v17 = vrot.slane %v3479_v14, 5  ;;  %v3505_v29 = vrot.slane %v3504_v50, 4  ;;  %v4995_v14 = vld [vmem:[%s5955_s22 + $0xf8] sm:$0xf]  ;;  %v4317_v15 = vrot.slane %v4315_v31, 4 }
 0x108   : > { %5837 = vmatprep.subr.msk.bf16.mxu0 %vm235_vm0, %v6334_v30  ;;  %5518 = vmatmul.mubr.msk.bf16.vlgmr.msra.gmra.mrb[8].mxu1 %vm222_vm1, %v6522_v28  ;;  %v3489_v28 = vrot.slane %v3487_v35, 5  ;;  %v5887_v35 = vld [vmem:[%s5955_s22 + $0x110] ss:$8 sps:$4 sm:$0xff]   ;;  %v4298_v5 = vrot.slane %v4296_v25, 5 }
 0x109   : > { %5526 = vmatpush3.bf16.msra.mxu1 %v6890_v12  ;;  %5521 = vmatprep.mubr.msk.bf16.mxu1 %vm222_vm1, %v6526_v63  ;;  %v3449_v63 = vrot.slane %v3448_v49, 4  ;;  %v3493_v12 = vshll.u32 %v4940_v22, 16  ;;  %v3509_v49 = vrot.slane %v3507_v46, 5  ;;  %v4292_v22 = vrot.slane %v4290_v52, 5  ;;  %v5003_v52 = vld [vmem:[%s5955_s22 + $0x118] sm:$0xf] }
 0x10a   : > { %5845 = vmatprep.subr.msk.bf16.mxu1 %vm235_vm0, %v6891_v4  ;;  %v3490_v44 = vor.u32 %v3489_v28, %v3486_v13  ;;  %v4944_v4 = vld [vmem:[%s5955_s22 + $0xc4] sm:$0x1]  ;;  %v4303_v13 = vrot.slane %v4301_v10, 4  ;;  %v4306_v28 = vrot.slane %v4304_v2, 5  ;;  %v4324_v2 = vshll.u32 %v4994_v23, 16 }
 0x10b   : > { %v3454_v7 = vsel %vm6000_vm4, %v3449_v63, %v3453_v11  ;;  %v3521_v60 = vshll.u32 %v4944_v4, 16  ;;  %v3495_v51 = vrot.slane %v3493_v12, 5  ;;  %v3533_v63 = vrot.slane %v3532_v18, 4 }
 0x10c   : > { %v3491_v43 = vrot.slane %v3490_v44, 4  ;;  %v3537_v11 = vrot.slane %v3535_v34, 5  ;;  %v4332_v44 = vshll.u32 %v4995_v14, 16 }
 0x10d   : > { %v3523_v45 = vrot.slane %v3521_v60, 5  ;;  %v4996_v60 = vld [vmem:[%s5955_s22 + $0xfc] sm:$0x1] }
 0x10e   : > { %5442 = vmatmul.mubr.msk.bf16.gmra.mrb[12].mxu0 %vm222_vm1, %v5883_v27  ;;  %v3468_v27 = vsel %vm6000_vm4, %v3463_v3, %v3467_v8  ;;  %v3496_v55 = vsel %vm6000_vm4, %v3491_v43, %v3495_v51  ;;  %v4999_v3 = vld [vmem:[%s5955_s22 + $0x108] sm:$0xf]  ;;  %v4334_v43 = vrot.slane %v4332_v44, 5  ;;  %v5001_v51 = vld [vmem:[%s5955_s22 + $0x110] sm:$0xf] }
 0x10f   : > { %5447 = vmatprep.mubr.msk.bf16.mxu0 %vm222_vm1, %v5884_v33  ;;  %v4949_v54 = vcombine.low %v3454_v7, %v3468_v27  ;;  %v4357_v46 = vshrl.u32 %v4999_v3, 16  ;;  %v4360_v50 = vshll.u32 %v4999_v3, 16  ;;  %v4320_v7 = vrot.slane %v4318_v58, 5 }
 0x110   : > { %5522 = vmatmul.mubr.msk.bf16.gmra.mrb[12].mxu1 %vm222_vm1, %v6546_v62  ;;  %v3517_v62 = vrot.slane %v3515_v42, 5  ;;  %v4992_v42 = vld [vmem:[%s5955_s22 + $0xec] sm:$0x1]  ;;  %v4371_v53 = vshrl.u32 %v5001_v51, 16  ;;  %v4374_v19 = vshll.u32 %v5001_v51, 16 }
 0x111   : > { %5527 = vmatprep.mubr.msk.bf16.mxu1 %vm222_vm1, %v5884_v33  ;;  %v3542_v33 = vrot.slane %v3540_v24, 4  ;;  %v4310_v26 = vshll.u32 %v4992_v42, 16  ;;  %v3538_v24 = vsel %vm6000_vm4, %v3533_v63, %v3537_v11 }
 0x112   : > { %v3518_v39 = vor.u32 %v3517_v62, %v3514_v59  ;;  %v4307_v59 = vor.u32 %v4306_v28, %v4303_v13  ;;  %v4329_v62 = vshrl.u32 %v4995_v14, 16  ;;  %v4373_v63 = vrot.slane %v4371_v53, 4 }
 0x113   : > { %v3546_v41 = vor.u32 %v3545_v48, %v3542_v33  ;;  %v4312_v38 = vrot.slane %v4310_v26, 5  ;;  %v4359_v48 = vrot.slane %v4357_v46, 4  ;;  %v4376_v11 = vrot.slane %v4374_v19, 5 }
 0x114   : > { %v3519_v37 = vrot.slane %v3518_v39, 4  ;;  %v4308_v39 = vrot.slane %v4307_v59, 4  ;;  %v4331_v61 = vrot.slane %v4329_v62, 4 }
 0x115   : > { %v3547_v1 = vrot.slane %v3546_v41, 4 }
 0x116   : > { %5448 = vmatmul.mubr.msk.bf16.vlgmr.msra.gmra.mrb[8].mxu0 %vm222_vm1, %v5885_v57  ;;  %v3524_v21 = vsel %vm6000_vm4, %v3519_v37, %v3523_v45  ;;  %v4313_v34 = vsel %vm6000_vm4, %v4308_v39, %v4312_v38  ;;  %v4321_v37 = vor.u32 %v4320_v7, %v4317_v15  ;;  %v4335_v45 = vor.u32 %v4334_v43, %v4331_v61 }
 0x117   : > { %5451 = vmatprep.mubr.msk.bf16.mxu0 %vm222_vm1, %v5886_v47  ;;  %5456 = vmatpush3.bf16.msra.mxu0 %v6378_v20  ;;  %v3552_v32 = vsel %vm6000_vm4, %v3547_v1, %v3551_v9  ;;  %v5004_v1 = vld [vmem:[%s5955_s22 + $0x11c] sm:$0x1] }
 0x118   : > { %5528 = vmatmul.mubr.msk.bf16.vlgmr.msra.gmra.mrb[8].mxu1 %vm222_vm1, %v5885_v57  ;;  %v3510_v57 = vsel %vm6000_vm4, %v3505_v29, %v3509_v49  ;;  %v4952_v10 = vcombine.low %v3538_v24, %v3552_v32  ;;  %v4998_v29 = vld [vmem:[%s5955_s22 + $0x104] sm:$0x1]  ;;  %v5000_v49 = vld [vmem:[%s5955_s22 + $0x10c] sm:$0x1]  ;;  %v4322_v13 = vrot.slane %v4321_v37, 4  ;;  %v4336_v28 = vrot.slane %v4335_v45, 4 }
 0x119   : > { %5536 = vmatpush3.bf16.msra.mxu1 %v6892_v56  ;;  %5531 = vmatprep.mubr.msk.bf16.mxu1 %vm222_vm1, %v5886_v47  ;;  %v3482_v56 = vsel %vm6000_vm4, %v6708_v16, %v6710_v17  ;;  %v4997_v47 = vld [vmem:[%s5955_s22 + $0x100] sm:$0xf]  ;;  %v4951_v4 = vcombine.low %v3510_v57, %v3524_v21  ;;  %v4352_v41 = vshll.u32 %v4998_v29, 16  ;;  %v4366_v0 = vshll.u32 %v5000_v49, 16 }
 0x11a   : > { %5846 = vmatprep.subr.msk.bf16.mxu1 %vm235_vm0, %v6334_v30  ;;  %v4289_v30 = vrot.slane %v4287_v6, 4  ;;  %v4950_v12 = vcombine.low %v3482_v56, %v3496_v55  ;;  %v4343_v16 = vshrl.u32 %v4997_v47, 16  ;;  %v4346_v17 = vshll.u32 %v4997_v47, 16 }
 0x11b   : > { %v4362_v6 = vrot.slane %v4360_v50, 5  ;;  %v4388_v56 = vshll.u32 %v5003_v52, 16  ;;  %v4354_v9 = vrot.slane %v4352_v41, 5  ;;  %v4368_v31 = vrot.slane %v4366_v0, 5 }
 0x11c   : > { %v4293_v8 = vor.u32 %v4292_v22, %v4289_v30  ;;  %v4345_v40 = vrot.slane %v4343_v16, 4  ;;  %v4348_v33 = vrot.slane %v4346_v17, 5  ;;  %v4326_v30 = vrot.slane %v4324_v2, 5 }
 0x11d   : > { %v4363_v42 = vor.u32 %v4362_v6, %v4359_v48  ;;  %v4390_v14 = vrot.slane %v4388_v56, 5  ;;  %v4394_v62 = vshll.u32 %v5004_v1, 16 }
 0x11e   : > { %5452 = vmatmul.mubr.msk.bf16.gmra.mrb[12].mxu0 %vm222_vm1, %v5887_v35  ;;  %v4294_v27 = vrot.slane %v4293_v8, 4  ;;  %v4349_v55 = vor.u32 %v4348_v33, %v4345_v40  ;;  %v4327_v58 = vsel %vm6000_vm4, %v4322_v13, %v4326_v30  ;;  %v4377_v8 = vor.u32 %v4376_v11, %v4373_v63 }
 0x11f   : > { %5457 = vmatprep.mubr.msk.bf16.mxu0 %vm222_vm1, %v4949_v54  ;;  %v4364_v26 = vrot.slane %v4363_v42, 4  ;;  %v4396_v46 = vrot.slane %v4394_v62, 5 }
 0x120   : > { %5532 = vmatmul.mubr.msk.bf16.gmra.mrb[12].mxu1 %vm222_vm1, %v5887_v35  ;;  %v4338_v35 = vshll.u32 %v4996_v60, 16  ;;  %v4299_v18 = vsel %vm6000_vm4, %v4294_v27, %v4298_v5  ;;  %v4350_v21 = vrot.slane %v4349_v55, 4  ;;  %v4378_v16 = vrot.slane %v4377_v8, 4 }
 0x121   : > { %5537 = vmatprep.mubr.msk.bf16.mxu1 %vm222_vm1, %v4949_v54  ;;  %v4385_v54 = vshrl.u32 %v5003_v52, 16  ;;  %v5005_v22 = vcombine.low %v4299_v18, %v4313_v34 }
 0x122   : > { %v4340_v57 = vrot.slane %v4338_v35, 5  ;;  %v4355_v44 = vsel %vm6000_vm4, %v4350_v21, %v4354_v9 }
 0x123   : > { %v4387_v25 = vrot.slane %v4385_v54, 4 }
 0x124   : > { %v4341_v3 = vsel %vm6000_vm4, %v4336_v28, %v4340_v57 }
 0x125   : > { %v4391_v59 = vor.u32 %v4390_v14, %v4387_v25 }
 0x126   : > { %5458 = vmatmul.mubr.msk.bf16.vlgmr.msra.gmra.mrb[8].mxu0 %vm222_vm1, %v4950_v12 }
 0x127   : > { %5461 = vmatprep.mubr.msk.bf16.mxu0 %vm222_vm1, %v4951_v4  ;;  %v4392_v17 = vrot.slane %v4391_v59, 4 }
 0x128   : > { %5538 = vmatmul.mubr.msk.bf16.vlgmr.msra.gmra.mrb[8].mxu1 %vm222_vm1, %v4950_v12  ;;  %v4369_v12 = vsel %vm6000_vm4, %v4364_v26, %v4368_v31 }
 0x129   : > { %5546 = vmatpush3.bf16.msra.mxu1 %v6378_v20  ;;  %5541 = vmatprep.mubr.msk.bf16.mxu1 %vm222_vm1, %v4951_v4  ;;  %v5002_v20 = vld [vmem:[%s5955_s22 + $0x114] sm:$0x1]  ;;  %v5006_v4 = vcombine.low %v4327_v58, %v4341_v3  ;;  %v5007_v5 = vcombine.low %v4355_v44, %v4369_v12  ;;  %v4397_v32 = vsel %vm6000_vm4, %v4392_v17, %v4396_v46 }
 0x12a   : > { %v4380_v47 = vshll.u32 %v5002_v20, 16 }
 0x12c   : > { %v4382_v24 = vrot.slane %v4380_v47, 5 }
 0x12e   : > { %5462 = vmatmul.mubr.msk.bf16.gmra.mrb[12].mxu0 %vm222_vm1, %v4952_v10  ;;  %v4383_v50 = vsel %vm6000_vm4, %v4378_v16, %v4382_v24 }
 0x12f   : > { %v5008_v38 = vcombine.low %v4383_v50, %v4397_v32 }
 0x130   : > { %5542 = vmatmul.mubr.msk.bf16.gmra.mrb[12].mxu1 %vm222_vm1, %v4952_v10 }
 0x131   : > { %5547 = vmatprep.mubr.msk.bf16.mxu1 %vm222_vm1, %v5005_v22 }
 0x138   : > { %5548 = vmatmul.mubr.msk.bf16.vlgmr.msra.gmra.mrb[8].mxu1 %vm222_vm1, %v5006_v4 }
 0x139   : > { %5551 = vmatprep.mubr.msk.bf16.mxu1 %vm222_vm1, %v5007_v5 }
 0x140   : > { %5552 = vmatmul.mubr.msk.bf16.gmra.mrb[12].mxu1 %vm222_vm1, %v5008_v38 }
 0x169   : > { %v5279_v23 = vpop.f32.mrb[0].mxu0 }
 0x16a   : > { %v1534_v15 = vpop.f32.mrb[1].mxu0  ;;  %v1598_v60 = vmul.f32 %v5279_v23, %v5279_v23  ;;  %v1577_v33 = vsel %vm1573_vm5, %v5279_v23, 0.0 }
 0x16b   : > { %v1596_v7 = vmul.f32 %v1534_v15, %v1534_v15  ;;  %v5280_v27 = vpop.f32.mrb[2].mxu0  ;;  %v1574_v61 = vsel %vm1573_vm5, %v1534_v15, 0.0 }
 0x16c   : > { %v1537_v39 = vpop.f32.mrb[3].mxu0  ;;  %v1599_v48 = vmul.f32 %v5280_v27, %v5280_v27  ;;  %v1607_v2 = vsel %vm1573_vm5, %v1598_v60, 0.0  ;;  %v1579_v35 = vsel %vm1573_vm5, %v5280_v27, 0.0 }
 0x16d   : > { %v1575_v43 = vsel %vm1573_vm5, %v1537_v39, 0.0  ;;  %v1597_v51 = vmul.f32 %v1537_v39, %v1537_v39  ;;  %v1604_v36 = vsel %vm1573_vm5, %v1596_v7, 0.0 }
 0x16e   : > { %v1576_v40 = vadd.f32 %v1575_v43, %v1574_v61  ;;  %v1609_v37 = vsel %vm1573_vm5, %v1599_v48, 0.0 }
 0x16f   : > { %v1605_v6 = vsel %vm1573_vm5, %v1597_v51, 0.0 }
 0x170   : > { %v1578_v52 = vadd.f32 %v1577_v33, %v1576_v40  ;;  %v1606_v10 = vadd.f32 %v1605_v6, %v1604_v36 }
 0x171   : > { %v5283_v29 = vpop.f32.mrb[4].mxu0 }
 0x172   : > { %v1608_v49 = vadd.f32 %v1607_v2, %v1606_v10  ;;  %v1550_v18 = vpop.f32.mrb[5].mxu0  ;;  %v1580_v34 = vadd.f32 %v1579_v35, %v1578_v52  ;;  %v1602_v41 = vmul.f32 %v5283_v29, %v5283_v29  ;;  %v1585_v28 = vsel %vm1573_vm5, %v5283_v29, 0.0 }
 0x173   : > { %v1581_v45 = vsel %vm1573_vm5, %v1550_v18, 0.0  ;;  %v1600_v53 = vmul.f32 %v1550_v18, %v1550_v18  ;;  %v5284_v19 = vpop.f32.mrb[6].mxu0 }
 0x174   : > { %v1582_v54 = vadd.f32 %v1581_v45, %v1580_v34  ;;  %v1610_v56 = vadd.f32 %v1609_v37, %v1608_v49  ;;  %v1553_v55 = vpop.f32.mrb[7].mxu0  ;;  %v1603_v57 = vmul.f32 %v5284_v19, %v5284_v19  ;;  %v1615_v25 = vsel %vm1573_vm5, %v1602_v41, 0.0 }
 0x175   : > { %v1611_v42 = vsel %vm1573_vm5, %v1600_v53, 0.0  ;;  %v1583_v0 = vsel %vm1573_vm5, %v1553_v55, 0.0  ;;  %v1601_v30 = vmul.f32 %v1553_v55, %v1553_v55  ;;  %v1587_v14 = vsel %vm1573_vm5, %v5284_v19, 0.0 }
 0x176   : > { %v1612_v22 = vadd.f32 %v1611_v42, %v1610_v56  ;;  %v1584_v13 = vadd.f32 %v1583_v0, %v1582_v54  ;;  %v1617_v26 = vsel %vm1573_vm5, %v1603_v57, 0.0 }
 0x177   : > { %v1613_v20 = vsel %vm1573_vm5, %v1601_v30, 0.0 }
 0x178   : > { %v1586_v63 = vadd.f32 %v1585_v28, %v1584_v13  ;;  %v1614_v11 = vadd.f32 %v1613_v20, %v1612_v22 }
 0x17a   : > { %v1588_v21 = vadd.f32 %v1587_v14, %v1586_v63  ;;  %v1616_v9 = vadd.f32 %v1615_v25, %v1614_v11 }
 0x17b   : > { %v5369_v1 = vpop.f32.mrb[0].mxu1 }
 0x17c   : > { %v1618_v31 = vadd.f32 %v1617_v26, %v1616_v9  ;;  %v2684_v58 = vpop.f32.mrb[1].mxu1  ;;  %v2747_v59 = vmul.f32 %v5369_v1, %v5369_v1  ;;  %v2726_v24 = vsel %vm1573_vm5, %v5369_v1, 0.0  ;;  %v1589_v23 = vrot.slane %v1588_v21, 4 }
 0x17d   : > { %v2745_v47 = vmul.f32 %v2684_v58, %v2684_v58  ;;  %v5370_v3 = vpop.f32.mrb[2].mxu1  ;;  %v2723_v62 = vsel %vm1573_vm5, %v2684_v58, 0.0 }
 0x17e   : > { %v2687_v8 = vpop.f32.mrb[3].mxu1  ;;  %v2748_v16 = vmul.f32 %v5370_v3, %v5370_v3  ;;  %v2756_v32 = vsel %vm1573_vm5, %v2747_v59, 0.0  ;;  %v2728_v15 = vsel %vm1573_vm5, %v5370_v3, 0.0  ;;  %v1619_v36 = vrot.slane %v1618_v31, 4 }
 0x17f   : > { %v2724_v44 = vsel %vm1573_vm5, %v2687_v8, 0.0  ;;  %v2746_v12 = vmul.f32 %v2687_v8, %v2687_v8  ;;  %v2753_v5 = vsel %vm1573_vm5, %v2745_v47, 0.0  ;;  %v1590_v29 = vadd.f32 %v1589_v23, %v1588_v21 }
 0x180   : > { %v2725_v4 = vadd.f32 %v2724_v44, %v2723_v62  ;;  %v2758_v39 = vsel %vm1573_vm5, %v2748_v16, 0.0  ;;  %v1620_v45 = vadd.f32 %v1619_v36, %v1618_v31 }
 0x181   : > { %v2754_v17 = vsel %vm1573_vm5, %v2746_v12, 0.0  ;;  %v1591_v55 = vrot.slane %v1590_v29, 2 }
 0x182   : > { %v2727_v46 = vadd.f32 %v2726_v24, %v2725_v4  ;;  %v2755_v50 = vadd.f32 %v2754_v17, %v2753_v5  ;;  %v1621_v30 = vrot.slane %v1620_v45, 2 }
 0x183   : > { %v5373_v38 = vpop.f32.mrb[4].mxu1  ;;  %v1592_v28 = vadd.f32 %v1591_v55, %v1590_v29 }
 0x184   : > { %v2757_v7 = vadd.f32 %v2756_v32, %v2755_v50  ;;  %v2700_v27 = vpop.f32.mrb[5].mxu1  ;;  %v2729_v60 = vadd.f32 %v2728_v15, %v2727_v46  ;;  %v2751_v10 = vmul.f32 %v5373_v38, %v5373_v38  ;;  %v2734_v18 = vsel %vm1573_vm5, %v5373_v38, 0.0 }
 0x185   : > { %v2730_v61 = vsel %vm1573_vm5, %v2700_v27, 0.0  ;;  %v2749_v43 = vmul.f32 %v2700_v27, %v2700_v27  ;;  %v5374_v51 = vpop.f32.mrb[6].mxu1  ;;  %v1622_v63 = vadd.f32 %v1621_v30, %v1620_v45  ;;  %v1593_v14 = vrot.slane %v1592_v28, 1 }
 0x186   : > { %v2759_v40 = vadd.f32 %v2758_v39, %v2757_v7  ;;  %v2703_v33 = vpop.f32.mrb[7].mxu1  ;;  %v2731_v48 = vadd.f32 %v2730_v61, %v2729_v60  ;;  %v2752_v34 = vmul.f32 %v5374_v51, %v5374_v51  ;;  %v2764_v54 = vsel %vm1573_vm5, %v2751_v10, 0.0 }
 0x187   : > { %v2760_v6 = vsel %vm1573_vm5, %v2749_v43, 0.0  ;;  %v2732_v52 = vsel %vm1573_vm5, %v2703_v33, 0.0  ;;  %v2750_v35 = vmul.f32 %v2703_v33, %v2703_v33  ;;  %v2736_v56 = vsel %vm1573_vm5, %v5374_v51, 0.0 }
 0x188   : > { %v2761_v2 = vadd.f32 %v2760_v6, %v2759_v40  ;;  %v2733_v49 = vadd.f32 %v2732_v52, %v2731_v48  ;;  %v2766_v0 = vsel %vm1573_vm5, %v2752_v34, 0.0  ;;  %v1623_v26 = vrot.slane %v1622_v63, 1 }
 0x189   : > { %v2762_v37 = vsel %vm1573_vm5, %v2750_v35, 0.0  ;;  %v1594_v58 = vadd.f32 %v1593_v14, %v1592_v28 }
 0x18a   : > { %v2735_v53 = vadd.f32 %v2734_v18, %v2733_v49  ;;  %v2763_v19 = vadd.f32 %v2762_v37, %v2761_v2  ;;  %v1624_v8 = vadd.f32 %v1623_v26, %v1622_v63 }
 0x18c   : > { %v2737_v41 = vadd.f32 %v2736_v56, %v2735_v53  ;;  %v2765_v42 = vadd.f32 %v2764_v54, %v2763_v19 }
 0x18e   : > { %v2738_v22 = vrot.slane %v2737_v41, 4  ;;  %v2767_v13 = vadd.f32 %v2766_v0, %v2765_v42 }
 0x190   : > { %v2739_v57 = vadd.f32 %v2738_v22, %v2737_v41  ;;  %v2768_v20 = vrot.slane %v2767_v13, 4 }
 0x192   : > { %v2740_v11 = vrot.slane %v2739_v57, 2  ;;  %v2769_v25 = vadd.f32 %v2768_v20, %v2767_v13 }
 0x194   : > { %v2741_v21 = vadd.f32 %v2740_v11, %v2739_v57  ;;  %v2770_v9 = vrot.slane %v2769_v25, 2 }
 0x196   : > { %v2742_v31 = vrot.slane %v2741_v21, 1  ;;  %v2771_v1 = vadd.f32 %v2770_v9, %v2769_v25 }
 0x198   : > { %v2743_v47 = vadd.f32 %v2742_v31, %v2741_v21  ;;  %v2772_v3 = vrot.slane %v2771_v1, 1 }
 0x19a   : > { %v6819_v59 = vadd.f32 %v2743_v47, %v1594_v58  ;;  %v2773_v62 = vadd.f32 %v2772_v3, %v2771_v1 }
 0x19c   : > { %v6821_v44 = vadd.f32 %v2773_v62, %v1624_v8 }
 0x1f9   : > { %v5459_v12 = vpop.f32.mrb[8].mxu0 }
 0x1fa   : > { %v3611_v4 = vpop.f32.mrb[9].mxu0  ;;  %v3674_v17 = vmul.f32 %v5459_v12, %v5459_v12  ;;  %v3653_v23 = vsel %vm1573_vm5, %v5459_v12, 0.0 }
 0x1fb   : > { %v3672_v24 = vmul.f32 %v3611_v4, %v3611_v4  ;;  %v5460_v5 = vpop.f32.mrb[10].mxu0  ;;  %v3650_v46 = vsel %vm1573_vm5, %v3611_v4, 0.0 }
 0x1fc   : > { %v3614_v16 = vpop.f32.mrb[11].mxu0  ;;  %v3675_v7 = vmul.f32 %v5460_v5, %v5460_v5  ;;  %v3683_v61 = vsel %vm1573_vm5, %v3674_v17, 0.0  ;;  %v3655_v43 = vsel %vm1573_vm5, %v5460_v5, 0.0 }
 0x1fd   : > { %v3651_v50 = vsel %vm1573_vm5, %v3614_v16, 0.0  ;;  %v3673_v32 = vmul.f32 %v3614_v16, %v3614_v16  ;;  %v3680_v15 = vsel %vm1573_vm5, %v3672_v24, 0.0 }
 0x1fe   : > { %v3652_v38 = vadd.f32 %v3651_v50, %v3650_v46  ;;  %v3685_v48 = vsel %vm1573_vm5, %v3675_v7, 0.0 }
 0x1ff   : > { %v3681_v27 = vsel %vm1573_vm5, %v3673_v32, 0.0 }
 0x200   : > { %v3654_v39 = vadd.f32 %v3653_v23, %v3652_v38  ;;  %v3682_v60 = vadd.f32 %v3681_v27, %v3680_v15 }
 0x201   : > { %v5463_v51 = vpop.f32.mrb[12].mxu0 }
 0x202   : > { %v3684_v40 = vadd.f32 %v3683_v61, %v3682_v60  ;;  %v3627_v33 = vpop.f32.mrb[13].mxu0  ;;  %v3656_v36 = vadd.f32 %v3655_v43, %v3654_v39  ;;  %v3678_v49 = vmul.f32 %v5463_v51, %v5463_v51  ;;  %v3661_v19 = vsel %vm1573_vm5, %v5463_v51, 0.0 }
 0x203   : > { %v3657_v6 = vsel %vm1573_vm5, %v3627_v33, 0.0  ;;  %v3676_v52 = vmul.f32 %v3627_v33, %v3627_v33  ;;  %v5464_v10 = vpop.f32.mrb[14].mxu0 }
 0x204   : > { %v3658_v2 = vadd.f32 %v3657_v6, %v3656_v36  ;;  %v3686_v35 = vadd.f32 %v3685_v48, %v3684_v40  ;;  %v3630_v29 = vpop.f32.mrb[15].mxu0  ;;  %v3679_v54 = vmul.f32 %v5464_v10, %v5464_v10  ;;  %v3691_v42 = vsel %vm1573_vm5, %v3678_v49, 0.0 }
 0x205   : > { %v3687_v18 = vsel %vm1573_vm5, %v3676_v52, 0.0  ;;  %v3659_v34 = vsel %vm1573_vm5, %v3630_v29, 0.0  ;;  %v3677_v37 = vmul.f32 %v3630_v29, %v3630_v29  ;;  %v3663_v0 = vsel %vm1573_vm5, %v5464_v10, 0.0 }
 0x206   : > { %v3688_v45 = vadd.f32 %v3687_v18, %v3686_v35  ;;  %v3660_v53 = vadd.f32 %v3659_v34, %v3658_v2  ;;  %v3693_v13 = vsel %vm1573_vm5, %v3679_v54, 0.0 }
 0x207   : > { %v3689_v56 = vsel %vm1573_vm5, %v3677_v37, 0.0 }
 0x208   : > { %v3662_v55 = vadd.f32 %v3661_v19, %v3660_v53  ;;  %v3690_v41 = vadd.f32 %v3689_v56, %v3688_v45 }
 0x20a   : > { %v3664_v30 = vadd.f32 %v3663_v0, %v3662_v55  ;;  %v3692_v22 = vadd.f32 %v3691_v42, %v3690_v41 }
 0x20b   : > { %v5549_v20 = vpop.f32.mrb[8].mxu1 }
 0x20c   : > { %v3665_v28 = vrot.slane %v3664_v30, 4  ;;  %v3694_v57 = vadd.f32 %v3693_v13, %v3692_v22  ;;  %v4456_v63 = vpop.f32.mrb[9].mxu1  ;;  %v4519_v1 = vmul.f32 %v5549_v20, %v5549_v20  ;;  %v4498_v4 = vsel %vm1573_vm5, %v5549_v20, 0.0 }
 0x20d   : > { %v4517_v14 = vmul.f32 %v4456_v63, %v4456_v63  ;;  %v5550_v21 = vpop.f32.mrb[10].mxu1  ;;  %v4495_v58 = vsel %vm1573_vm5, %v4456_v63, 0.0 }
 0x20e   : > { %v3666_v11 = vadd.f32 %v3665_v28, %v3664_v30  ;;  %v3695_v25 = vrot.slane %v3694_v57, 4  ;;  %v4459_v31 = vpop.f32.mrb[11].mxu1  ;;  %v4520_v5 = vmul.f32 %v5550_v21, %v5550_v21  ;;  %v4528_v38 = vsel %vm1573_vm5, %v4519_v1, 0.0 }
 0x20f   : > { %v4496_v47 = vsel %vm1573_vm5, %v4459_v31, 0.0  ;;  %v4518_v3 = vmul.f32 %v4459_v31, %v4459_v31  ;;  %v4525_v24 = vsel %vm1573_vm5, %v4517_v14, 0.0  ;;  %v4500_v27 = vsel %vm1573_vm5, %v5550_v21, 0.0 }
 0x210   : > { %v3667_v9 = vrot.slane %v3666_v11, 2  ;;  %v3696_v26 = vadd.f32 %v3695_v25, %v3694_v57  ;;  %v4497_v12 = vadd.f32 %v4496_v47, %v4495_v58  ;;  %v4530_v61 = vsel %vm1573_vm5, %v4520_v5, 0.0 }
 0x211   : > { %v4526_v16 = vsel %vm1573_vm5, %v4518_v3, 0.0 }
 0x212   : > { %v3668_v8 = vadd.f32 %v3667_v9, %v3666_v11  ;;  %v3697_v62 = vrot.slane %v3696_v26, 2  ;;  %v4499_v50 = vadd.f32 %v4498_v4, %v4497_v12  ;;  %v4527_v32 = vadd.f32 %v4526_v16, %v4525_v24 }
 0x213   : > { %v5553_v23 = vpop.f32.mrb[12].mxu1 }
 0x214   : > { %v3669_v17 = vrot.slane %v3668_v8, 1  ;;  %v3698_v46 = vadd.f32 %v3697_v62, %v3696_v26  ;;  %v4529_v39 = vadd.f32 %v4528_v38, %v4527_v32  ;;  %v4472_v60 = vpop.f32.mrb[13].mxu1  ;;  %v4501_v43 = vadd.f32 %v4500_v27, %v4499_v50 }
 0x215   : > { %v4502_v51 = vsel %vm1573_vm5, %v4472_v60, 0.0  ;;  %v4521_v40 = vmul.f32 %v4472_v60, %v4472_v60  ;;  %v5554_v33 = vpop.f32.mrb[14].mxu1  ;;  %v4523_v10 = vmul.f32 %v5553_v23, %v5553_v23  ;;  %v4506_v45 = vsel %vm1573_vm5, %v5553_v23, 0.0 }
 0x216   : > { %v3670_v15 = vadd.f32 %v3669_v17, %v3668_v8  ;;  %v3699_v7 = vrot.slane %v3698_v46, 1  ;;  %v4531_v6 = vadd.f32 %v4530_v61, %v4529_v39  ;;  %v4475_v52 = vpop.f32.mrb[15].mxu1  ;;  %v4503_v2 = vadd.f32 %v4502_v51, %v4501_v43 }
 0x217   : > { %v4532_v35 = vsel %vm1573_vm5, %v4521_v40, 0.0  ;;  %v4504_v18 = vsel %vm1573_vm5, %v4475_v52, 0.0  ;;  %v4522_v34 = vmul.f32 %v4475_v52, %v4475_v52  ;;  %v4524_v53 = vmul.f32 %v5554_v33, %v5554_v33 }
 0x218   : > { %v3671_v36 = vadd.f32 %v3670_v15, %v6819_v59  ;;  %v3700_v48 = vadd.f32 %v3699_v7, %v3698_v46  ;;  %v4533_v49 = vadd.f32 %v4532_v35, %v4531_v6  ;;  %v4505_v37 = vadd.f32 %v4504_v18, %v4503_v2 }
 0x219   : > { %v4534_v59 = vsel %vm1573_vm5, %v4522_v34, 0.0  ;;  %v4536_v56 = vsel %vm1573_vm5, %v4523_v10, 0.0  ;;  %v4508_v55 = vsel %vm1573_vm5, %v5554_v33, 0.0  ;;  %v4538_v42 = vsel %vm1573_vm5, %v4524_v53, 0.0 }
 0x21a   : > { %v3701_v29 = vadd.f32 %v3700_v48, %v6821_v44  ;;  %v4507_v19 = vadd.f32 %v4506_v45, %v4505_v37  ;;  %v4535_v54 = vadd.f32 %v4534_v59, %v4533_v49 }
 0x21c   : > { %v4509_v41 = vadd.f32 %v4508_v55, %v4507_v19  ;;  %v4537_v44 = vadd.f32 %v4536_v56, %v4535_v54 }
 0x21e   : > { %v4510_v0 = vrot.slane %v4509_v41, 4  ;;  %v4539_v30 = vadd.f32 %v4538_v42, %v4537_v44 }
 0x220   : > { %v4511_v22 = vadd.f32 %v4510_v0, %v4509_v41  ;;  %v4540_v13 = vrot.slane %v4539_v30, 4 }
 0x222   : > { %v4512_v28 = vrot.slane %v4511_v22, 2  ;;  %v4541_v57 = vadd.f32 %v4540_v13, %v4539_v30 }
 0x224   : > { %v4513_v20 = vadd.f32 %v4512_v28, %v4511_v22  ;;  %v4542_v63 = vrot.slane %v4541_v57, 2 }
 0x226   : > { %v4514_v11 = vrot.slane %v4513_v20, 1  ;;  %v4543_v25 = vadd.f32 %v4542_v63, %v4541_v57 }
 0x228   : > { %v4515_v14 = vadd.f32 %v4514_v11, %v4513_v20  ;;  %v4544_v21 = vrot.slane %v4543_v25, 1 }
 0x22a   : > { %v4516_v9 = vadd.f32 %v4515_v14, %v3671_v36  ;;  %v4545_v26 = vadd.f32 %v4544_v21, %v4543_v25 }
 0x22c   : > { %v4546_v31 = vadd.f32 %v4545_v26, %v3701_v29  ;;  %4548 = vst.msk [vmem:[%s177_s28] sm:$0x1] %vm4547_vm6, %v4516_v9 }
 0x22e   : > { %4549 = vst.msk [vmem:[%s180_s4] sm:$0x1] %vm4547_vm6, %v4546_v31 }
 0x22f PF: > { %s14_s12 = sadd.s32 1, %s5904_s12  }
 0x230   : > { %p11_p5 = scmp.ge.s32.totalorder %s14_s12, 4  }
 0x232   :  { %13 = sbr.rel (!%p11_p5) target bundleno = 1 (0x1), region = 85 }

// kernel: conv_block_forward.3
= control target key start
LH: loop header
LB: loop body
LE: loop exit
PB: predicated region body
PF: predicated region fallthrough
CT: control target
= control target key end

     0   :  { %s5872_s15 = smov 0   ;;  %s6833_s0 = inlined_call_operand.vmem [shape: bf16[8,9,9,4], index: 0, kind: input, shape index: {}]   ;;  %s6834_s1 = inlined_call_operand.vmem [shape: bf16[9,4,8], index: 1, kind: input, shape index: {}]   ;;  %s6835_s2 = inlined_call_operand.vmem [shape: f32[1,8], index: 2, kind: input, shape index: {}]   ;;  %s6836_s3 = inlined_call_operand.vmem [shape: f32[1,8], index: 3, kind: input, shape index: {}]   ;;  %s6837_s4 = inlined_call_operand.vmem [shape: f32[2,64,8], index: 4, kind: output, shape index: {}]  }
   0x1 LB: > { %s5878_s16 = sadd.s32 4294967295, %s5845_s15   ;;  %p4562_p0 = scmp.ge.s32.totalorder %s5845_s15, 1  ;;  %s5845_s15 = sphi %s5872_s15, %s14_s15  }
   0x2   : > { %p164_p1 = scmp.lt.s32.totalorder %s5845_s15, 3 }
   0x4   : > { %p165_p2 = pnand %p4562_p0, %p164_p1 }
   0x6   : > { %168 = sbr.rel (%p165_p2) target bundleno = 544 (0x220), region = 36 }
   0xd   : > { %v4575_v0 = vld [vmem:[%s6834_s1 + $0x2] sm:$0x3]  ;;  %vm259_vm0 = vcmask 1041408   ;;  %s4563_s19 = sshll.u32 %s5878_s16, 2  ;;  %v214_v2 = vld [vmem:[%s6834_s1] sm:$0x3] }
   0xe   : > { %5752 = vmatprep.subr.msk.bf16.mxu0 %vm259_vm0, %v4575_v0  ;;  %v5888_v1 = vsel %vm259_vm0, %v4575_v0, 0  ;;  %p192_p3 = scmp.lt.s32.totalorder %s4563_s19, 7  ;;  %5761 = vmatprep.subr.msk.bf16.mxu1 %vm259_vm0, %v4575_v0  ;;  %vm246_vm1 = vcmask 31744   ;;  %v5904_v3 = vsel %vm259_vm0, %v214_v2, 0  ;;  %vm444_vm2 = vsmask.f32 3328 }
   0xf   : > { %5137 = vmatpush3.bf16.msra.mxu0 %v5888_v1  ;;  %5227 = vmatpush3.bf16.msra.mxu1 %v5888_v1  ;;  %vm445_vm3 = vsmask.f32 7440  ;;  %v5909_v4 = vld [vmem:[%s6834_s1 + $0x4] sm:$0x3]  ;;  %v6742_v36 = vld [vmem:[%s6836_s3] ss:$0 sm:$0xff] }
  0x10   : > { %s6860_s19 = smov (!%p192_p3, %s4563_s19), 7  ;;  %5753 = vmatprep.subr.msk.bf16.mxu0 %vm259_vm0, %v214_v2  ;;  %5762 = vmatprep.subr.msk.bf16.mxu1 %vm259_vm0, %v214_v2  ;;  %v5926_v8 = vsel %vm259_vm0, %v5909_v4, 0  ;;  %vm5946_vm4 = vmor %vm444_vm2, %vm445_vm3  ;;  %p198_p4 = scmp.lt.s32.totalorder %s5878_s16, 1  ;;  %vm4494_vm5 = vcmask 64512  }
  0x11   : > { %s5788_s22 = smul.u32 72, %s6860_s19 }
  0x12   : > { %s6862_s16 = smov (!%p198_p4, %s5878_s16), 1 }
  0x13   : > { %s5901_s25 = scalar_lea.vmem %s6833_s0, %s5788_s22  ;;  %s4955_s8 = sshll.u32 %s6862_s16, 6 }
  0x14   : > { %v5912_v5 = vld [vmem:[%s5901_s25 + $0x48] ss:$8 sps:$4 sm:$0xff]   ;;  %v5915_v6 = vld [vmem:[%s5901_s25 + $0x58] ss:$8 sps:$4 sm:$0xff]   ;;  %v429_v10 = vld [vmem:[%s5901_s25 + $0x4] sm:$0x1]  ;;  %s6803_s11 = scalar_lea.vmem %s6837_s4, %s4955_s8 }
  0x15   : > { %5138 = vmatprep.mubr.msk.bf16.mxu0 %vm246_vm1, %v5912_v5  ;;  %v5920_v7 = vld [vmem:[%s5901_s25 + $0x68] ss:$8 sps:$4 sm:$0xff]   ;;  %v428_v9 = vld [vmem:[%s5901_s25] sm:$0xf]  ;;  %v431_v13 = vld [vmem:[%s5901_s25 + $0xc] sm:$0x1] }
  0x16   : > { %5139 = vmatmul.mubr.msk.bf16.vlgmr.msra.gmra.mrb[0].mxu0 %vm246_vm1, %v5915_v6  ;;  %v430_v11 = vld [vmem:[%s5901_s25 + $0x8] sm:$0xf]  ;;  %v5935_v12 = vld [vmem:[%s5901_s25 + $0x78] ss:$8 sps:$4 sm:$0xff]   ;;  %v448_v14 = vshrl.u32 %v428_v9, 16  ;;  %v451_v15 = vshll.u32 %v428_v9, 16 }
  0x17   : > { %5142 = vmatprep.mubr.msk.bf16.mxu0 %vm246_vm1, %v5920_v7  ;;  %5147 = vmatpush3.bf16.msra.mxu0 %v5904_v3  ;;  %v457_v16 = vshll.u32 %v429_v10, 16  ;;  %v462_v17 = vshrl.u32 %v430_v11, 16  ;;  %v465_v18 = vshll.u32 %v430_v11, 16  ;;  %v471_v19 = vshll.u32 %v431_v13, 16  ;;  %v432_v20 = vld [vmem:[%s5901_s25 + $0x10] sm:$0xf] }
  0x18   : > { %5754 = vmatprep.subr.msk.bf16.mxu0 %vm259_vm0, %v5909_v4  ;;  %v433_v21 = vld [vmem:[%s5901_s25 + $0x14] sm:$0x1]  ;;  %v450_v22 = vrot.slane %v448_v14, 4  ;;  %v453_v23 = vrot.slane %v451_v15, 5  ;;  %v434_v26 = vld [vmem:[%s5901_s25 + $0x18] sm:$0xf] }
  0x19   : > { %v459_v24 = vrot.slane %v457_v16, 5  ;;  %v464_v25 = vrot.slane %v462_v17, 4  ;;  %v467_v27 = vrot.slane %v465_v18, 5  ;;  %v473_v28 = vrot.slane %v471_v19, 5  ;;  %v435_v29 = vld [vmem:[%s5901_s25 + $0x1c] sm:$0x1] }
  0x1a   : > { %v476_v30 = vshrl.u32 %v432_v20, 16  ;;  %v479_v31 = vshll.u32 %v432_v20, 16  ;;  %v454_v32 = vor.u32 %v453_v23, %v450_v22  ;;  %v485_v33 = vshll.u32 %v433_v21, 16  ;;  %v5801_v45 = vld [vmem:[%s5901_s25] ss:$8 sps:$4 sm:$0xff]  }
  0x1b   : > { %v490_v34 = vshrl.u32 %v434_v26, 16  ;;  %v493_v35 = vshll.u32 %v434_v26, 16  ;;  %v468_v37 = vor.u32 %v467_v27, %v464_v25  ;;  %v499_v40 = vshll.u32 %v435_v29, 16  ;;  %v5802_v51 = vld [vmem:[%s5901_s25 + $0x10] ss:$8 sps:$4 sm:$0xff]  }
  0x1c   : > { %v478_v38 = vrot.slane %v476_v30, 4  ;;  %v481_v39 = vrot.slane %v479_v31, 5  ;;  %v455_v41 = vrot.slane %v454_v32, 4  ;;  %v487_v42 = vrot.slane %v485_v33, 5  ;;  %v436_v52 = vld [vmem:[%s5901_s25 + $0x20] sm:$0xf] }
  0x1d   : > { %v492_v43 = vrot.slane %v490_v34, 4  ;;  %v495_v44 = vrot.slane %v493_v35, 5  ;;  %v469_v46 = vrot.slane %v468_v37, 4  ;;  %v501_v48 = vrot.slane %v499_v40, 5  ;;  %v437_v53 = vld [vmem:[%s5901_s25 + $0x24] sm:$0x1] }
  0x1e   : > { %5143 = vmatmul.mubr.msk.bf16.gmra.mrb[4].mxu0 %vm246_vm1, %v5935_v12  ;;  %v482_v47 = vor.u32 %v481_v39, %v478_v38  ;;  %v460_v49 = vsel %vm5946_vm4, %v455_v41, %v459_v24  ;;  %v438_v56 = vld [vmem:[%s5901_s25 + $0x28] sm:$0xf]  ;;  %v439_v57 = vld [vmem:[%s5901_s25 + $0x2c] sm:$0x1]  ;;  %v504_v58 = vshrl.u32 %v436_v52, 16  ;;  %v507_v61 = vshll.u32 %v436_v52, 16 }
  0x1f   : > { %v496_v50 = vor.u32 %v495_v44, %v492_v43  ;;  %5148 = vmatprep.mubr.msk.bf16.mxu0 %vm246_vm1, %v5801_v45  ;;  %v474_v54 = vsel %vm5946_vm4, %v469_v46, %v473_v28  ;;  %v513_v62 = vshll.u32 %v437_v53, 16  ;;  %v440_v63 = vld [vmem:[%s5901_s25 + $0x30] sm:$0xf]  ;;  %v518_v9 = vshrl.u32 %v438_v56, 16  ;;  %v441_v11 = vld [vmem:[%s5901_s25 + $0x34] sm:$0x1] }
  0x20   : > { %v483_v55 = vrot.slane %v482_v47, 4  ;;  %v5963_v59 = vcombine.low %v460_v49, %v474_v54  ;;  %v506_v2 = vrot.slane %v504_v58, 4  ;;  %v521_v10 = vshll.u32 %v438_v56, 16  ;;  %v5972_v13 = vld [vmem:[%s6834_s1 + $0x6] sm:$0x3] }
  0x21   : > { %v497_v60 = vrot.slane %v496_v50, 4  ;;  %v509_v15 = vrot.slane %v507_v61, 5  ;;  %v515_v16 = vrot.slane %v513_v62, 5  ;;  %v527_v17 = vshll.u32 %v439_v57, 16  ;;  %v442_v18 = vld [vmem:[%s5901_s25 + $0x38] sm:$0xf] }
  0x22   : > { %v488_v0 = vsel %vm5946_vm4, %v483_v55, %v487_v42  ;;  %5228 = vmatprep.mubr.msk.bf16.mxu1 %vm246_vm1, %v5963_v59  ;;  %v520_v20 = vrot.slane %v518_v9, 4  ;;  %v523_v21 = vrot.slane %v521_v10, 5  ;;  %v443_v22 = vld [vmem:[%s5901_s25 + $0x3c] sm:$0x1]  ;;  %v532_v23 = vshrl.u32 %v440_v63, 16 }
  0x23   : > { %v502_v14 = vsel %vm5946_vm4, %v497_v60, %v501_v48  ;;  %v510_v24 = vor.u32 %v509_v15, %v506_v2  ;;  %v529_v25 = vrot.slane %v527_v17, 5  ;;  %v535_v26 = vshll.u32 %v440_v63, 16  ;;  %v5803_v35 = vld [vmem:[%s5901_s25 + $0x20] ss:$8 sps:$4 sm:$0xff]   ;;  %v5804_v43 = vld [vmem:[%s5901_s25 + $0x30] ss:$8 sps:$4 sm:$0xff]  }
  0x24   : > { %v5979_v19 = vcombine.low %v488_v0, %v502_v14  ;;  %v541_v27 = vshll.u32 %v441_v11, 16  ;;  %v524_v28 = vor.u32 %v523_v21, %v520_v20  ;;  %v534_v29 = vrot.slane %v532_v23, 4  ;;  %v4729_v47 = vld [vmem:[%s5901_s25 + $0x48] sm:$0xf]  ;;  %v4731_v48 = vld [vmem:[%s5901_s25 + $0x50] sm:$0xf] }
  0x25   : > { %v546_v30 = vshrl.u32 %v442_v18, 16  ;;  %v549_v31 = vshll.u32 %v442_v18, 16  ;;  %v511_v32 = vrot.slane %v510_v24, 4  ;;  %v537_v33 = vrot.slane %v535_v26, 5  ;;  %v4732_v54 = vld [vmem:[%s5901_s25 + $0x54] sm:$0x1] }
  0x26   : > { %5149 = vmatmul.mubr.msk.bf16.vlgmr.msra.gmra.mrb[0].mxu0 %vm246_vm1, %v5802_v51  ;;  %5229 = vmatmul.mubr.msk.bf16.vlgmr.msra.gmra.mrb[0].mxu1 %vm246_vm1, %v5979_v19  ;;  %v555_v34 = vshll.u32 %v443_v22, 16  ;;  %v525_v37 = vrot.slane %v524_v28, 4  ;;  %v543_v42 = vrot.slane %v541_v27, 5  ;;  %v1780_v51 = vshrl.u32 %v4729_v47, 16  ;;  %v4733_v61 = vld [vmem:[%s5901_s25 + $0x58] sm:$0xf] }
  0x27   : > { %5157 = vmatpush3.bf16.msra.mxu0 %v5926_v8  ;;  %5237 = vmatpush3.bf16.msra.mxu1 %v5904_v3  ;;  %v548_v38 = vrot.slane %v546_v30, 4  ;;  %v551_v39 = vrot.slane %v549_v31, 5  ;;  %v516_v40 = vsel %vm5946_vm4, %v511_v32, %v515_v16  ;;  %v538_v41 = vor.u32 %v537_v33, %v534_v29  ;;  %v4735_v14 = vld [vmem:[%s5901_s25 + $0x60] sm:$0xf]  ;;  %v4734_v15 = vld [vmem:[%s5901_s25 + $0x5c] sm:$0x1] }
  0x28   : > { %5755 = vmatprep.subr.msk.bf16.mxu0 %vm259_vm0, %v5972_v13  ;;  %5763 = vmatprep.subr.msk.bf16.mxu1 %vm259_vm0, %v5909_v4  ;;  %v530_v44 = vsel %vm5946_vm4, %v525_v37, %v529_v25  ;;  %v557_v46 = vrot.slane %v555_v34, 5  ;;  %v4730_v4 = vld [vmem:[%s5901_s25 + $0x4c] sm:$0x1]  ;;  %v1783_v52 = vshll.u32 %v4729_v47, 16  ;;  %v1794_v55 = vshrl.u32 %v4731_v48, 16 }
  0x29   : > { %5152 = vmatprep.mubr.msk.bf16.mxu0 %vm246_vm1, %v5803_v35  ;;  %v552_v45 = vor.u32 %v551_v39, %v548_v38  ;;  %v4595_v49 = vcombine.low %v516_v40, %v530_v44  ;;  %v539_v50 = vrot.slane %v538_v41, 4  ;;  %v1797_v56 = vshll.u32 %v4731_v48, 16  ;;  %v4736_v18 = vld [vmem:[%s5901_s25 + $0x64] sm:$0x1]  ;;  %v6027_v23 = vld [vmem:[%s6834_s1 + $0x8] sm:$0x3] }
  0x2a   : > { %v1782_v58 = vrot.slane %v1780_v51, 4  ;;  %v1785_v60 = vrot.slane %v1783_v52, 5  ;;  %v1796_v63 = vrot.slane %v1794_v55, 4  ;;  %v1789_v10 = vshll.u32 %v4730_v4, 16  ;;  %v4739_v30 = vld [vmem:[%s5901_s25 + $0x70] sm:$0xf] }
  0x2b   : > { %v553_v53 = vrot.slane %v552_v45, 4  ;;  %5232 = vmatprep.mubr.msk.bf16.mxu1 %vm246_vm1, %v4595_v49  ;;  %v544_v57 = vsel %vm5946_vm4, %v539_v50, %v543_v42  ;;  %v1799_v0 = vrot.slane %v1797_v56, 5  ;;  %v1803_v11 = vshll.u32 %v4732_v54, 16  ;;  %v4741_v40 = vld [vmem:[%s5901_s25 + $0x78] sm:$0xf] }
  0x2c   : > { %v1786_v9 = vor.u32 %v1785_v60, %v1782_v58  ;;  %v1808_v16 = vshrl.u32 %v4733_v61, 16  ;;  %v1811_v20 = vshll.u32 %v4733_v61, 16  ;;  %v1822_v21 = vshrl.u32 %v4735_v14, 16  ;;  %v4738_v41 = vld [vmem:[%s5901_s25 + $0x6c] sm:$0x1] }
  0x2d   : > { %v558_v62 = vsel %vm5946_vm4, %v553_v53, %v557_v46  ;;  %v1800_v17 = vor.u32 %v1799_v0, %v1796_v63  ;;  %v1825_v22 = vshll.u32 %v4735_v14, 16  ;;  %v1791_v25 = vrot.slane %v1789_v10, 5  ;;  %v4740_v42 = vld [vmem:[%s5901_s25 + $0x74] sm:$0x1]  ;;  %v5805_v46 = vld [vmem:[%s5901_s25 + $0x90] ss:$8 sps:$4 sm:$0xff]  }
  0x2e   : > { %5153 = vmatmul.mubr.msk.bf16.gmra.mrb[4].mxu0 %vm246_vm1, %v5804_v43  ;;  %v6011_v2 = vcombine.low %v544_v57, %v558_v62  ;;  %v1787_v24 = vrot.slane %v1786_v9, 4  ;;  %v1805_v26 = vrot.slane %v1803_v11, 5  ;;  %v1817_v27 = vshll.u32 %v4734_v15, 16  ;;  %v4742_v61 = vld [vmem:[%s5901_s25 + $0x7c] sm:$0x1] }
  0x2f   : > { %5158 = vmatprep.mubr.msk.bf16.mxu0 %vm246_vm1, %v5963_v59  ;;  %v6022_v59 = vsel %vm259_vm0, %v5972_v13, 0  ;;  %v1810_v28 = vrot.slane %v1808_v16, 4  ;;  %v1831_v29 = vshll.u32 %v4736_v18, 16  ;;  %v1801_v31 = vrot.slane %v1800_v17, 4  ;;  %v4744_v62 = vld [vmem:[%s5901_s25 + $0x84] sm:$0x1] }
  0x30   : > { %5233 = vmatmul.mubr.msk.bf16.gmra.mrb[4].mxu1 %vm246_vm1, %v6011_v2  ;;  %v1813_v32 = vrot.slane %v1811_v20, 5  ;;  %v1824_v35 = vrot.slane %v1822_v21, 4  ;;  %v1827_v37 = vrot.slane %v1825_v22, 5  ;;  %v1850_v38 = vshrl.u32 %v4739_v30, 16 }
  0x31   : > { %5238 = vmatprep.mubr.msk.bf16.mxu1 %vm246_vm1, %v5912_v5  ;;  %v4737_v5 = vld [vmem:[%s5901_s25 + $0x68] sm:$0xf]  ;;  %v1853_v39 = vshll.u32 %v4739_v30, 16  ;;  %v1819_v45 = vrot.slane %v1817_v27, 5  ;;  %v1806_v50 = vsel %vm5946_vm4, %v1801_v31, %v1805_v26  ;;  %v1833_v51 = vrot.slane %v1831_v29, 5 }
  0x32   : > { %v1836_v33 = vshrl.u32 %v4737_v5, 16  ;;  %v1839_v34 = vshll.u32 %v4737_v5, 16  ;;  %v1852_v47 = vrot.slane %v1850_v38, 4  ;;  %v1814_v4 = vor.u32 %v1813_v32, %v1810_v28  ;;  %v5807_v26 = vld [vmem:[%s5901_s25 + $0xb0] ss:$8 sps:$4 sm:$0xff]  }
  0x33   : > { %v1855_v48 = vrot.slane %v1853_v39, 5  ;;  %v1864_v52 = vshrl.u32 %v4741_v40, 16  ;;  %v1828_v53 = vor.u32 %v1827_v37, %v1824_v35  ;;  %v1845_v54 = vshll.u32 %v4738_v41, 16  ;;  %v6078_v29 = vld [vmem:[%s6834_s1 + $0xa] sm:$0x3] }
  0x34   : > { %v1838_v43 = vrot.slane %v1836_v33, 4  ;;  %v1841_v44 = vrot.slane %v1839_v34, 5  ;;  %v1859_v55 = vshll.u32 %v4740_v42, 16  ;;  %v1867_v56 = vshll.u32 %v4741_v40, 16  ;;  %v4635_v33 = vld [vmem:[%s5901_s25 + $0x90] sm:$0xf] }
  0x35   : > { %v1856_v57 = vor.u32 %v1855_v48, %v1852_v47  ;;  %v1866_v63 = vrot.slane %v1864_v52, 4  ;;  %v1815_v11 = vrot.slane %v1814_v4, 4  ;;  %v1829_v14 = vrot.slane %v1828_v53, 4  ;;  %v4637_v35 = vld [vmem:[%s5901_s25 + $0x98] sm:$0xf] }
  0x36   : > { %5159 = vmatmul.mubr.msk.bf16.vlgmr.msra.gmra.mrb[0].mxu0 %vm246_vm1, %v5979_v19  ;;  %v1792_v19 = vsel %vm5946_vm4, %v1787_v24, %v1791_v25  ;;  %v1869_v0 = vrot.slane %v1867_v56, 5  ;;  %v1861_v15 = vrot.slane %v1859_v55, 5  ;;  %v1873_v20 = vshll.u32 %v4742_v61, 16  ;;  %v4639_v38 = vld [vmem:[%s5901_s25 + $0xa0] sm:$0xf] }
  0x37   : > { %5162 = vmatprep.mubr.msk.bf16.mxu0 %vm246_vm1, %v4595_v49  ;;  %5167 = vmatpush3.bf16.msra.mxu0 %v6022_v59  ;;  %v4743_v49 = vld [vmem:[%s5901_s25 + $0x80] sm:$0xf]  ;;  %v1857_v17 = vrot.slane %v1856_v57, 4  ;;  %v1887_v22 = vshll.u32 %v4744_v62, 16  ;;  %v1820_v24 = vsel %vm5946_vm4, %v1815_v11, %v1819_v45  ;;  %v1834_v25 = vsel %vm5946_vm4, %v1829_v14, %v1833_v51  ;;  %v4641_v39 = vld [vmem:[%s5901_s25 + $0xa8] sm:$0xf] }
  0x38   : > { %5756 = vmatprep.subr.msk.bf16.mxu0 %vm259_vm0, %v6027_v23  ;;  %5239 = vmatmul.mubr.msk.bf16.vlgmr.msra.gmra.mrb[0].mxu1 %vm246_vm1, %v5915_v6  ;;  %v1842_v6 = vor.u32 %v1841_v44, %v1838_v43  ;;  %v1878_v58 = vshrl.u32 %v4743_v49, 16  ;;  %v1881_v60 = vshll.u32 %v4743_v49, 16  ;;  %v1870_v18 = vor.u32 %v1869_v0, %v1866_v63  ;;  %v6094_v44 = vld [vmem:[%s5901_s25 + $0xc0] ss:$8 sps:$4 sm:$0xff]   ;;  %v4636_v51 = vld [vmem:[%s5901_s25 + $0x94] sm:$0x1] }
  0x39   : > { %5247 = vmatpush3.bf16.msra.mxu1 %v5926_v8  ;;  %5242 = vmatprep.mubr.msk.bf16.mxu1 %vm246_vm1, %v5920_v7  ;;  %v4745_v7 = vcombine.low %v1792_v19, %v1806_v50  ;;  %v1862_v28 = vsel %vm5946_vm4, %v1857_v17, %v1861_v15  ;;  %v1875_v30 = vrot.slane %v1873_v20, 5  ;;  %v1889_v32 = vrot.slane %v1887_v22, 5  ;;  %v4643_v50 = vld [vmem:[%s5901_s25 + $0xb0] sm:$0xf]  ;;  %v6101_v4 = vld [vmem:[%s5901_s25 + $0xd8] ss:$8 sps:$4 sm:$0xff]  }
  0x3a   : > { %5764 = vmatprep.subr.msk.bf16.mxu1 %vm259_vm0, %v5972_v13  ;;  %v1880_v9 = vrot.slane %v1878_v58, 4  ;;  %v1883_v10 = vrot.slane %v1881_v60, 5  ;;  %v1847_v13 = vrot.slane %v1845_v54, 5  ;;  %v1843_v16 = vrot.slane %v1842_v6, 4  ;;  %v4638_v52 = vld [vmem:[%s5901_s25 + $0x9c] sm:$0x1] }
  0x3b   : > { %v1871_v5 = vrot.slane %v1870_v18, 4  ;;  %v4746_v34 = vcombine.low %v1820_v24, %v1834_v25  ;;  %v916_v40 = vshrl.u32 %v4635_v33, 16  ;;  %v919_v41 = vshll.u32 %v4635_v33, 16  ;;  %v4640_v56 = vld [vmem:[%s5901_s25 + $0xa4] sm:$0x1] }
  0x3c   : > { %v1884_v21 = vor.u32 %v1883_v10, %v1880_v9  ;;  %v1848_v27 = vsel %vm5946_vm4, %v1843_v16, %v1847_v13  ;;  %v930_v19 = vshrl.u32 %v4637_v35, 16  ;;  %v933_v45 = vshll.u32 %v4637_v35, 16  ;;  %v4645_v6 = vld [vmem:[%s5901_s25 + $0xb8] sm:$0xf]  ;;  %v4642_v60 = vld [vmem:[%s5901_s25 + $0xac] sm:$0x1] }
  0x3d   : > { %v4747_v37 = vcombine.low %v1848_v27, %v1862_v28  ;;  %v1876_v42 = vsel %vm5946_vm4, %v1871_v5, %v1875_v30  ;;  %v947_v47 = vshll.u32 %v4639_v38, 16  ;;  %v958_v48 = vshrl.u32 %v4641_v39, 16  ;;  %v6117_v13 = vld [vmem:[%s6834_s1 + $0xc] sm:$0x3]  ;;  %v4644_v20 = vld [vmem:[%s5901_s25 + $0xb4] sm:$0x1] }
  0x3e   : > { %5163 = vmatmul.mubr.msk.bf16.gmra.mrb[4].mxu0 %vm246_vm1, %v6011_v2  ;;  %v5806_v2 = vld [vmem:[%s5901_s25 + $0xa0] ss:$8 sps:$4 sm:$0xff]   ;;  %v1885_v31 = vrot.slane %v1884_v21, 4  ;;  %v961_v49 = vshll.u32 %v4641_v39, 16  ;;  %v918_v54 = vrot.slane %v916_v40, 4  ;;  %v921_v55 = vrot.slane %v919_v41, 5 }
  0x3f   : > { %5168 = vmatprep.mubr.msk.bf16.mxu0 %vm246_vm1, %v5805_v46  ;;  %v944_v46 = vshrl.u32 %v4639_v38, 16  ;;  %v932_v57 = vrot.slane %v930_v19, 4  ;;  %v935_v58 = vrot.slane %v933_v45, 5  ;;  %v972_v61 = vshrl.u32 %v4643_v50, 16  ;;  %6849 = vst [vmem:[#allocation2_spill] sm:$0xff] %v6117_v13 }
  0x40   : > { %5243 = vmatmul.mubr.msk.bf16.gmra.mrb[4].mxu1 %vm246_vm1, %v5935_v12  ;;  %v6073_v12 = vsel %vm259_vm0, %v6027_v23, 0  ;;  %v1890_v43 = vsel %vm5946_vm4, %v1885_v31, %v1889_v32  ;;  %v975_v62 = vshll.u32 %v4643_v50, 16  ;;  %v949_v0 = vrot.slane %v947_v47, 5  ;;  %v4646_v21 = vld [vmem:[%s5901_s25 + $0xbc] sm:$0x1] }
  0x41   : > { %5248 = vmatprep.mubr.msk.bf16.mxu1 %vm246_vm1, %v4745_v7  ;;  %v4748_v53 = vcombine.low %v1876_v42, %v1890_v43  ;;  %v946_v63 = vrot.slane %v944_v46, 4  ;;  %v960_v7 = vrot.slane %v958_v48, 4  ;;  %v963_v9 = vrot.slane %v961_v49, 5  ;;  %v6123_v24 = vld [vmem:[%s5901_s25 + $0xe8] ss:$8 sps:$4 sm:$0xff]  }
  0x42   : > { %v939_v10 = vshll.u32 %v4638_v52, 16  ;;  %v986_v11 = vshrl.u32 %v4645_v6, 16  ;;  %v989_v14 = vshll.u32 %v4645_v6, 16  ;;  %v922_v15 = vor.u32 %v921_v55, %v918_v54  ;;  %v6136_v5 = vld [vmem:[%s5901_s25 + $0xf8] ss:$8 sps:$4 sm:$0xff]  }
  0x43   : > { %v953_v16 = vshll.u32 %v4640_v56, 16  ;;  %v967_v17 = vshll.u32 %v4642_v60, 16  ;;  %v936_v18 = vor.u32 %v935_v58, %v932_v57  ;;  %v974_v22 = vrot.slane %v972_v61, 4  ;;  %v4649_v40 = vld [vmem:[%s5901_s25 + $0xc8] sm:$0xf] }
  0x44   : > { %v6127_v25 = vsel %vm259_vm0, %v6078_v29, 0  ;;  %v964_v27 = vor.u32 %v963_v9, %v960_v7  ;;  %v6131_v28 = vsel %vm259_vm0, %v6117_v13, 0  ;;  %v941_v31 = vrot.slane %v939_v10, 5  ;;  %v4648_v19 = vld [vmem:[%s5901_s25 + $0xc4] sm:$0x1] }
  0x45   : > { %6850 = vst [vmem:[#allocation3_spill] sm:$0xff] %v6127_v25  ;;  %6851 = vst [vmem:[#allocation4_spill] sm:$0xff] %v6131_v28  ;;  %v988_v32 = vrot.slane %v986_v11, 4  ;;  %v991_v33 = vrot.slane %v989_v14, 5  ;;  %v923_v35 = vrot.slane %v922_v15, 4  ;;  %v981_v38 = vshll.u32 %v4644_v20, 16 }
  0x46   : > { %5169 = vmatmul.mubr.msk.bf16.vlgmr.msra.gmra.mrb[0].mxu0 %vm246_vm1, %v5806_v2  ;;  %v977_v2 = vrot.slane %v975_v62, 5  ;;  %v995_v39 = vshll.u32 %v4646_v21, 16  ;;  %v937_v41 = vrot.slane %v936_v18, 4  ;;  %v6142_v42 = vrot.slane %v967_v17, 5  ;;  %v4761_v45 = vld [vmem:[%s5901_s25 + $0xd8] sm:$0xf] }
  0x47   : > { %5172 = vmatprep.mubr.msk.bf16.mxu0 %vm246_vm1, %v5807_v26  ;;  %5177 = vmatpush3.bf16.msra.mxu0 %v6073_v12  ;;  %v950_v26 = vor.u32 %v949_v0, %v946_v63  ;;  %v965_v47 = vrot.slane %v964_v27, 4  ;;  %v4763_v50 = vld [vmem:[%s5901_s25 + $0xe0] sm:$0xf]  ;;  %v1014_v52 = vshrl.u32 %v4649_v40, 16  ;;  %v983_v54 = vrot.slane %v981_v38, 5 }
  0x48   : > { %5757 = vmatprep.subr.msk.bf16.mxu0 %vm259_vm0, %v6078_v29  ;;  %5249 = vmatmul.mubr.msk.bf16.vlgmr.msra.gmra.mrb[0].mxu1 %vm246_vm1, %v4746_v34  ;;  %v4647_v34 = vld [vmem:[%s5901_s25 + $0xc0] sm:$0xf]  ;;  %v978_v43 = vor.u32 %v977_v2, %v974_v22  ;;  %v997_v55 = vrot.slane %v995_v39, 5  ;;  %v4650_v56 = vld [vmem:[%s5901_s25 + $0xcc] sm:$0x1]  ;;  %v2151_v6 = vshrl.u32 %v4761_v45, 16  ;;  %v942_v60 = vsel %vm5946_vm4, %v937_v41, %v941_v31 }
  0x49   : > { %5257 = vmatpush3.bf16.msra.mxu1 %v6022_v59  ;;  %5252 = vmatprep.mubr.msk.bf16.mxu1 %vm246_vm1, %v4747_v37  ;;  %v6139_v37 = vrot.slane %v953_v16, 5  ;;  %v951_v46 = vrot.slane %v950_v26, 4  ;;  %v1000_v48 = vshrl.u32 %v4647_v34, 16  ;;  %v1003_v49 = vshll.u32 %v4647_v34, 16  ;;  %v4762_v15 = vld [vmem:[%s5901_s25 + $0xdc] sm:$0x1] }
  0x4a   : > { %5765 = vmatprep.subr.msk.bf16.mxu1 %vm259_vm0, %v6027_v23  ;;  %v925_v23 = vshll.u32 %v4636_v51, 16  ;;  %v992_v51 = vor.u32 %v991_v33, %v988_v32  ;;  %v2154_v57 = vshll.u32 %v4761_v45, 16  ;;  %v979_v61 = vrot.slane %v978_v43, 4  ;;  %v6166_v16 = vld [vmem:[%s5901_s25 + $0x108] ss:$8 sps:$4 sm:$0xff]  }
  0x4b   : > { %v1009_v62 = vshll.u32 %v4648_v19, 16  ;;  %v1002_v63 = vrot.slane %v1000_v48, 4  ;;  %v1005_v0 = vrot.slane %v1003_v49, 5  ;;  %v2165_v7 = vshrl.u32 %v4763_v50, 16  ;;  %v4764_v18 = vld [vmem:[%s5901_s25 + $0xe4] sm:$0x1] }
  0x4c   : > { %v927_v30 = vrot.slane %v925_v23, 5  ;;  %v2168_v9 = vshll.u32 %v4763_v50, 16  ;;  %v993_v23 = vrot.slane %v992_v51, 4  ;;  %v1016_v10 = vrot.slane %v1014_v52, 4  ;;  %v4766_v31 = vld [vmem:[%s5901_s25 + $0xec] sm:$0x1] }
  0x4d   : > { %v1023_v14 = vshll.u32 %v4650_v56, 16  ;;  %v2153_v20 = vrot.slane %v2151_v6, 4  ;;  %v2156_v21 = vrot.slane %v2154_v57, 5  ;;  %v956_v22 = vsel %vm5946_vm4, %v951_v46, %v6139_v37  ;;  %v4769_v45 = vld [vmem:[%s5901_s25 + $0xf8] sm:$0xf] }
  0x4e   : > { %5173 = vmatmul.mubr.msk.bf16.gmra.mrb[4].mxu0 %vm246_vm1, %v6094_v44  ;;  %v928_v58 = vsel %vm5946_vm4, %v923_v35, %v927_v30  ;;  %v970_v2 = vsel %vm5946_vm4, %v965_v47, %v6142_v42  ;;  %v984_v26 = vsel %vm5946_vm4, %v979_v61, %v983_v54  ;;  %v6181_v27 = vrot.slane %v1009_v62, 5  ;;  %v4765_v30 = vld [vmem:[%s5901_s25 + $0xe8] sm:$0xf]  ;;  %v4767_v35 = vld [vmem:[%s5901_s25 + $0xf0] sm:$0xf] }
  0x4f   : > { %5178 = vmatprep.mubr.msk.bf16.mxu0 %vm246_vm1, %v6101_v4  ;;  %v6168_v17 = vcombine.low %v928_v58, %v942_v60  ;;  %v2160_v32 = vshll.u32 %v4762_v15, 16  ;;  %v2167_v33 = vrot.slane %v2165_v7, 4  ;;  %v2170_v34 = vrot.slane %v2168_v9, 5  ;;  %v4771_v49 = vld [vmem:[%s5901_s25 + $0x100] sm:$0xf] }
  0x50   : > { %5253 = vmatmul.mubr.msk.bf16.gmra.mrb[4].mxu1 %vm246_vm1, %v4748_v53  ;;  %v1017_v53 = vshll.u32 %v4649_v40, 16  ;;  %v998_v37 = vsel %vm5946_vm4, %v993_v23, %v997_v55  ;;  %v1025_v39 = vrot.slane %v1023_v14, 5  ;;  %v2174_v40 = vshll.u32 %v4764_v18, 16  ;;  %v4768_v56 = vld [vmem:[%s5901_s25 + $0xf4] sm:$0x1] }
  0x51   : > { %5258 = vmatprep.mubr.msk.bf16.mxu1 %vm246_vm1, %v6101_v4  ;;  %v2157_v41 = vor.u32 %v2156_v21, %v2153_v20  ;;  %v2179_v42 = vshrl.u32 %v4765_v30, 16  ;;  %v2182_v43 = vshll.u32 %v4765_v30, 16  ;;  %v2188_v19 = vshll.u32 %v4766_v31, 16  ;;  %v6206_v58 = vld [vmem:[%s6834_s1 + $0xe] sm:$0x3] }
  0x52   : > { %v1019_v11 = vrot.slane %v1017_v53, 5  ;;  %v6193_v46 = vcombine.low %v956_v22, %v970_v2  ;;  %v2193_v47 = vshrl.u32 %v4767_v35, 16  ;;  %v2196_v48 = vshll.u32 %v4767_v35, 16  ;;  %6852 = vst [vmem:[#allocation5_spill] sm:$0xff] %v6206_v58  ;;  %v4770_v14 = vld [vmem:[%s5901_s25 + $0xfc] sm:$0x1] }
  0x53   : > { %v6198_v50 = vcombine.low %v984_v26, %v998_v37  ;;  %v2162_v52 = vrot.slane %v2160_v32, 5  ;;  %v2171_v53 = vor.u32 %v2170_v34, %v2167_v33  ;;  %v2176_v55 = vrot.slane %v2174_v40, 5  ;;  %v4773_v15 = vld [vmem:[%s5901_s25 + $0x108] sm:$0xf]  ;;  %v4775_v21 = vld [vmem:[%s5901_s25 + $0x110] sm:$0xf] }
  0x54   : > { %v1020_v38 = vor.u32 %v1019_v11, %v1016_v10  ;;  %v2207_v6 = vshrl.u32 %v4769_v45, 16  ;;  %v2210_v57 = vshll.u32 %v4769_v45, 16  ;;  %v2158_v60 = vrot.slane %v2157_v41, 4  ;;  %v6226_v32 = vld [vmem:[%s5901_s25 + $0x8] ss:$8 sps:$4 sm:$0xff]  }
  0x55   : > { %v2181_v61 = vrot.slane %v2179_v42, 4  ;;  %v2221_v62 = vshrl.u32 %v4771_v49, 16  ;;  %v6208_v7 = vrot.slane %v2188_v19, 5  ;;  %v2195_v9 = vrot.slane %v2193_v47, 4  ;;  %v4772_v33 = vld [vmem:[%s5901_s25 + $0x104] sm:$0x1] }
  0x56   : > { %5179 = vmatmul.mubr.msk.bf16.vlgmr.msra.gmra.mrb[0].mxu0 %vm246_vm1, %v6123_v24  ;;  %v1021_v54 = vrot.slane %v1020_v38, 4  ;;  %v2198_v23 = vrot.slane %v2196_v48, 5  ;;  %v2172_v10 = vrot.slane %v2171_v53, 4  ;;  %v2202_v11 = vshll.u32 %v4768_v56, 16 }
  0x57   : > { %5182 = vmatprep.mubr.msk.bf16.mxu0 %vm246_vm1, %v6136_v5  ;;  %5187 = vmatpush3.bf16.msra.mxu0 %v6127_v25  ;;  %v2209_v18 = vrot.slane %v2207_v6, 4  ;;  %v2212_v20 = vrot.slane %v2210_v57, 5  ;;  %v2223_v26 = vrot.slane %v2221_v62, 4  ;;  %v2235_v34 = vshrl.u32 %v4773_v15, 16 }
  0x58   : > { %5758 = vmatprep.subr.msk.bf16.mxu0 %vm259_vm0, %v6117_v13  ;;  %5259 = vmatmul.mubr.msk.bf16.vlgmr.msra.gmra.mrb[0].mxu1 %vm246_vm1, %v6123_v24  ;;  %v1026_v2 = vsel %vm5946_vm4, %v1021_v54, %v1025_v39  ;;  %v2238_v35 = vshll.u32 %v4773_v15, 16  ;;  %v2249_v37 = vshrl.u32 %v4775_v21, 16  ;;  %v2163_v39 = vsel %vm5946_vm4, %v2158_v60, %v2162_v52  ;;  %v4774_v52 = vld [vmem:[%s5901_s25 + $0x10c] sm:$0x1]  ;;  %v6264_v15 = vld [vmem:[%s5901_s25 + $0x28] ss:$8 sps:$4 sm:$0xff]  }
  0x59   : > { %5267 = vmatpush3.bf16.msra.mxu1 %v6073_v12  ;;  %5262 = vmatprep.mubr.msk.bf16.mxu1 %vm246_vm1, %v6136_v5  ;;  %v2204_v40 = vrot.slane %v2202_v11, 5  ;;  %v2216_v41 = vshll.u32 %v4770_v14, 16  ;;  %v2177_v42 = vsel %vm5946_vm4, %v2172_v10, %v2176_v55  ;;  %v2230_v45 = vshll.u32 %v4772_v33, 16  ;;  %v4776_v55 = vld [vmem:[%s5901_s25 + $0x114] sm:$0x1] }
  0x5a   : > { %5766 = vmatprep.subr.msk.bf16.mxu1 %vm259_vm0, %v6078_v29  ;;  %v1006_v29 = vor.u32 %v1005_v0, %v1002_v63  ;;  %v2224_v63 = vshll.u32 %v4771_v49, 16  ;;  %v2184_v0 = vrot.slane %v2182_v43, 5  ;;  %v2213_v43 = vor.u32 %v2212_v20, %v2209_v18  ;;  %v4694_v14 = vld [vmem:[%s5901_s25 + $0x8] sm:$0xf]  ;;  %v4696_v18 = vld [vmem:[%s5901_s25 + $0x10] sm:$0xf] }
  0x5b   : > { %v2237_v49 = vrot.slane %v2235_v34, 4  ;;  %v2251_v53 = vrot.slane %v2249_v37, 4  ;;  %v6245_v56 = vcombine.low %v2163_v39, %v2177_v42  ;;  %v2218_v57 = vrot.slane %v2216_v41, 5  ;;  %v6290_v39 = vld [vmem:[%s5901_s25 + $0x38] ss:$8 sps:$4 sm:$0xff]  }
  0x5c   : > { %v1007_v51 = vrot.slane %v1006_v29, 4  ;;  %v2226_v30 = vrot.slane %v2224_v63, 5  ;;  %v2185_v31 = vor.u32 %v2184_v0, %v2181_v61  ;;  %v2199_v29 = vor.u32 %v2198_v23, %v2195_v9  ;;  %v6258_v23 = vld [vmem:[%s5901_s25 + $0x18] ss:$8 sps:$4 sm:$0xff]  }
  0x5d   : > { %v2214_v6 = vrot.slane %v2213_v43, 4  ;;  %v2232_v61 = vrot.slane %v2230_v45, 5  ;;  %v2244_v9 = vshll.u32 %v4774_v52, 16  ;;  %v2258_v11 = vshll.u32 %v4776_v55, 16  ;;  %v4698_v43 = vld [vmem:[%s5901_s25 + $0x18] sm:$0xf] }
  0x5e   : > { %5183 = vmatmul.mubr.msk.bf16.gmra.mrb[4].mxu0 %vm246_vm1, %v6166_v16  ;;  %v1012_v22 = vsel %vm5946_vm4, %v1007_v51, %v6181_v27  ;;  %v2252_v27 = vshll.u32 %v4775_v21, 16  ;;  %v2227_v19 = vor.u32 %v2226_v30, %v2223_v26  ;;  %v2186_v47 = vrot.slane %v2185_v31, 4  ;;  %v6280_v30 = vld [vmem:[%s6834_s1 + $0x10] sm:$0x3]  ;;  %v4700_v52 = vld [vmem:[%s5901_s25 + $0x20] sm:$0xf] }
  0x5f   : > { %5188 = vmatprep.mubr.msk.bf16.mxu0 %vm246_vm1, %v6168_v17  ;;  %v6234_v38 = vcombine.low %v1012_v22, %v1026_v2  ;;  %v2200_v48 = vrot.slane %v2199_v29, 4  ;;  %v2240_v51 = vrot.slane %v2238_v35, 5  ;;  %v2219_v20 = vsel %vm5946_vm4, %v2214_v6, %v2218_v57  ;;  %v4702_v57 = vld [vmem:[%s5901_s25 + $0x28] sm:$0xf] }
  0x60   : > { %5263 = vmatmul.mubr.msk.bf16.gmra.mrb[4].mxu1 %vm246_vm1, %v6166_v16  ;;  %v2254_v54 = vrot.slane %v2252_v27, 5  ;;  %v2228_v60 = vrot.slane %v2227_v19, 4  ;;  %v2191_v62 = vsel %vm5946_vm4, %v2186_v47, %v6208_v7  ;;  %v6275_v22 = vsel %vm259_vm0, %v6206_v58, 0  ;;  %v4697_v47 = vld [vmem:[%s5901_s25 + $0x14] sm:$0x1] }
  0x61   : > { %5268 = vmatprep.mubr.msk.bf16.mxu1 %vm246_vm1, %v6168_v17  ;;  %v2205_v63 = vsel %vm5946_vm4, %v2200_v48, %v2204_v40  ;;  %v2241_v0 = vor.u32 %v2240_v51, %v2237_v49  ;;  %6853 = vst [vmem:[#allocation6_spill] sm:$0xff] %v6275_v22  ;;  %v2246_v26 = vrot.slane %v2244_v9, 5  ;;  %v1384_v31 = vshrl.u32 %v4694_v14, 16  ;;  %v4695_v40 = vld [vmem:[%s5901_s25 + $0xc] sm:$0x1] }
  0x62   : > { %v2255_v10 = vor.u32 %v2254_v54, %v2251_v53  ;;  %v6267_v7 = vcombine.low %v2191_v62, %v2205_v63  ;;  %v2233_v21 = vsel %vm5946_vm4, %v2228_v60, %v2232_v61  ;;  %v1387_v29 = vshll.u32 %v4694_v14, 16  ;;  %v4699_v51 = vld [vmem:[%s5901_s25 + $0x1c] sm:$0x1]  ;;  %v4701_v53 = vld [vmem:[%s5901_s25 + $0x24] sm:$0x1] }
  0x63   : > { %v2242_v2 = vrot.slane %v2241_v0, 4  ;;  %v2260_v34 = vrot.slane %v2258_v11, 5  ;;  %v1398_v35 = vshrl.u32 %v4696_v18, 16  ;;  %v1401_v37 = vshll.u32 %v4696_v18, 16  ;;  %v6315_v61 = vld [vmem:[%s5901_s25 + $0x50] ss:$8 sps:$4 sm:$0xff]  }
  0x64   : > { %v2256_v33 = vrot.slane %v2255_v10, 4  ;;  %v6284_v27 = vcombine.low %v2219_v20, %v2233_v21  ;;  %v1386_v41 = vrot.slane %v1384_v31, 4  ;;  %v1389_v42 = vrot.slane %v1387_v29, 5  ;;  %v4704_v9 = vld [vmem:[%s5901_s25 + $0x30] sm:$0xf] }
  0x65   : > { %v2247_v19 = vsel %vm5946_vm4, %v2242_v2, %v2246_v26  ;;  %v1400_v48 = vrot.slane %v1398_v35, 4  ;;  %v1403_v49 = vrot.slane %v1401_v37, 5  ;;  %v1393_v54 = vshll.u32 %v4695_v40, 16 }
  0x66   : > { %5189 = vmatmul.mubr.msk.bf16.vlgmr.msra.gmra.mrb[0].mxu0 %vm246_vm1, %v6193_v46  ;;  %v2261_v45 = vsel %vm5946_vm4, %v2256_v33, %v2260_v34  ;;  %v1412_v55 = vshrl.u32 %v4698_v43, 16  ;;  %v1415_v6 = vshll.u32 %v4698_v43, 16  ;;  %v1390_v62 = vor.u32 %v1389_v42, %v1386_v41  ;;  %v4706_v34 = vld [vmem:[%s5901_s25 + $0x38] sm:$0xf]  ;;  %v4703_v42 = vld [vmem:[%s5901_s25 + $0x2c] sm:$0x1] }
  0x67   : > { %5192 = vmatprep.mubr.msk.bf16.mxu0 %vm246_vm1, %v6198_v50  ;;  %5197 = vmatpush3.bf16.msra.mxu0 %v6131_v28  ;;  %v6312_v60 = vcombine.low %v2247_v19, %v2261_v45  ;;  %v1407_v63 = vshll.u32 %v4697_v47, 16  ;;  %v1421_v0 = vshll.u32 %v4699_v51, 16  ;;  %v1404_v10 = vor.u32 %v1403_v49, %v1400_v48  ;;  %v6339_v43 = vld [vmem:[%s5901_s25 + $0x60] ss:$8 sps:$4 sm:$0xff]   ;;  %v6347_v51 = vld [vmem:[%s5901_s25 + $0x70] ss:$8 sps:$4 sm:$0xff]  }
  0x68   : > { %5759 = vmatprep.subr.msk.bf16.mxu0 %vm259_vm0, %v6206_v58  ;;  %5269 = vmatmul.mubr.msk.bf16.vlgmr.msra.gmra.mrb[0].mxu1 %vm246_vm1, %v6193_v46  ;;  %v1426_v11 = vshrl.u32 %v4700_v52, 16  ;;  %v1429_v14 = vshll.u32 %v4700_v52, 16  ;;  %v1435_v18 = vshll.u32 %v4701_v53, 16  ;;  %v6324_v20 = vsel %vm259_vm0, %v6280_v30, 0  ;;  %v4708_v49 = vld [vmem:[%s5901_s25 + $0x40] sm:$0xf] }
  0x69   : > { %5277 = vmatpush3.bf16.msra.mxu1 %v6127_v25  ;;  %5272 = vmatprep.mubr.msk.bf16.mxu1 %vm246_vm1, %v6198_v50  ;;  %v1440_v21 = vshrl.u32 %v4702_v57, 16  ;;  %v1443_v2 = vshll.u32 %v4702_v57, 16  ;;  %v1414_v26 = vrot.slane %v1412_v55, 4  ;;  %v1417_v31 = vrot.slane %v1415_v6, 5  ;;  %v4705_v57 = vld [vmem:[%s5901_s25 + $0x34] sm:$0x1] }
  0x6a   : > { %5767 = vmatprep.subr.msk.bf16.mxu1 %vm259_vm0, %v6117_v13  ;;  %v1454_v29 = vshrl.u32 %v4704_v9, 16  ;;  %v1457_v33 = vshll.u32 %v4704_v9, 16  ;;  %v6327_v35 = vrot.slane %v1390_v62, 4  ;;  %v6329_v37 = vrot.slane %v1393_v54, 5  ;;  %v4707_v9 = vld [vmem:[%s5901_s25 + $0x3c] sm:$0x1] }
  0x6b   : > { %v6331_v40 = vrot.slane %v1407_v63, 5  ;;  %v6333_v41 = vrot.slane %v1421_v0, 5  ;;  %v1405_v19 = vrot.slane %v1404_v10, 4  ;;  %v1428_v45 = vrot.slane %v1426_v11, 4  ;;  %v4709_v10 = vld [vmem:[%s5901_s25 + $0x44] sm:$0x1] }
  0x6c   : > { %v1431_v47 = vrot.slane %v1429_v14, 5  ;;  %v6341_v48 = vrot.slane %v1435_v18, 5  ;;  %v1442_v52 = vrot.slane %v1440_v21, 4  ;;  %v1445_v53 = vrot.slane %v1443_v2, 5  ;;  %v4793_v21 = vld [vmem:[%s5901_s25 + $0x50] sm:$0xf] }
  0x6d   : > { %v1468_v54 = vshrl.u32 %v4706_v34, 16  ;;  %v1471_v55 = vshll.u32 %v4706_v34, 16  ;;  %v1418_v6 = vor.u32 %v1417_v31, %v1414_v26  ;;  %v1449_v62 = vshll.u32 %v4703_v42, 16  ;;  %v4799_v25 = vld [vmem:[%s5901_s25 + $0x68] sm:$0xf] }
  0x6e   : > { %5193 = vmatmul.mubr.msk.bf16.gmra.mrb[4].mxu0 %vm246_vm1, %v6234_v38  ;;  %v1456_v63 = vrot.slane %v1454_v29, 4  ;;  %v1459_v0 = vrot.slane %v1457_v33, 5  ;;  %v1482_v11 = vshrl.u32 %v4708_v49, 16  ;;  %v1485_v14 = vshll.u32 %v4708_v49, 16  ;;  %v4795_v33 = vld [vmem:[%s5901_s25 + $0x58] sm:$0xf] }
  0x6f   : > { %5198 = vmatprep.mubr.msk.bf16.mxu0 %vm246_vm1, %v6226_v32  ;;  %v1396_v18 = vsel %vm5946_vm4, %v6327_v35, %v6329_v37  ;;  %v1432_v2 = vor.u32 %v1431_v47, %v1428_v45  ;;  %v1446_v26 = vor.u32 %v1445_v53, %v1442_v52  ;;  %v1470_v31 = vrot.slane %v1468_v54, 4  ;;  %v6369_v35 = vld [vmem:[%s6834_s1 + $0x2] sm:$0x3] }
  0x70   : > { %5273 = vmatmul.mubr.msk.bf16.gmra.mrb[4].mxu1 %vm246_vm1, %v6234_v38  ;;  %v1473_v29 = vrot.slane %v1471_v55, 5  ;;  %v1410_v34 = vsel %vm5946_vm4, %v1405_v19, %v6331_v40  ;;  %v1419_v42 = vrot.slane %v1418_v6, 4  ;;  %v1460_v49 = vor.u32 %v1459_v0, %v1456_v63  ;;  %v6376_v40 = vld [vmem:[%s5901_s25 + $0x80] ss:$8 sps:$4 sm:$0xff]  }
  0x71   : > { %5278 = vmatprep.mubr.msk.bf16.mxu1 %vm246_vm1, %v6245_v56  ;;  %v1484_v37 = vrot.slane %v1482_v11, 4  ;;  %v1487_v45 = vrot.slane %v1485_v14, 5  ;;  %v2522_v47 = vshrl.u32 %v4793_v21, 16  ;;  %v2525_v52 = vshll.u32 %v4793_v21, 16  ;;  %v4794_v11 = vld [vmem:[%s5901_s25 + $0x54] sm:$0x1] }
  0x72   : > { %v1477_v19 = vshll.u32 %v4707_v9, 16  ;;  %v1491_v53 = vshll.u32 %v4709_v10, 16  ;;  %v2536_v54 = vshrl.u32 %v4795_v33, 16  ;;  %v2539_v55 = vshll.u32 %v4795_v33, 16  ;;  %v4796_v9 = vld [vmem:[%s5901_s25 + $0x5c] sm:$0x1] }
  0x73   : > { %v1433_v6 = vrot.slane %v1432_v2, 4  ;;  %v1451_v63 = vrot.slane %v1449_v62, 5  ;;  %v1474_v0 = vor.u32 %v1473_v29, %v1470_v31  ;;  %v1461_v14 = vrot.slane %v1460_v49, 4  ;;  %v4797_v10 = vld [vmem:[%s5901_s25 + $0x60] sm:$0xf] }
  0x74   : > { %v6386_v33 = vcombine.low %v1396_v18, %v1410_v34  ;;  %v2527_v13 = vrot.slane %v2525_v52, 5  ;;  %v1479_v62 = vrot.slane %v1477_v19, 5  ;;  %v1493_v2 = vrot.slane %v1491_v53, 5  ;;  %v4801_v49 = vld [vmem:[%s5901_s25 + $0x70] sm:$0xf] }
  0x75   : > { %v2541_v31 = vrot.slane %v2539_v55, 5  ;;  %v2531_v29 = vshll.u32 %v4794_v11, 16  ;;  %v1424_v18 = vsel %vm5946_vm4, %v1419_v42, %v6333_v41  ;;  %v1438_v34 = vsel %vm5946_vm4, %v1433_v6, %v6341_v48 }
  0x76   : > { %5199 = vmatmul.mubr.msk.bf16.vlgmr.msra.gmra.mrb[0].mxu0 %vm246_vm1, %v6258_v23  ;;  %v2545_v53 = vshll.u32 %v4796_v9, 16  ;;  %v2553_v41 = vshll.u32 %v4797_v10, 16  ;;  %v2564_v42 = vshrl.u32 %v4799_v25, 16  ;;  %v6409_v48 = vcombine.low %v1424_v18, %v1438_v34 }
  0x77   : > { %5202 = vmatprep.mubr.msk.bf16.mxu0 %vm246_vm1, %v6264_v15  ;;  %5207 = vmatpush3.bf16.msra.mxu0 %v6275_v22 }
  0x78   : > { %5760 = vmatprep.subr.msk.bf16.mxu0 %vm259_vm0, %v6280_v30  ;;  %5279 = vmatmul.mubr.msk.bf16.vlgmr.msra.gmra.mrb[0].mxu1 %vm246_vm1, %v6267_v7 }
  0x79   : > { %5287 = vmatpush3.bf16.msra.mxu1 %v6131_v28  ;;  %5282 = vmatprep.mubr.msk.bf16.mxu1 %vm246_vm1, %v6284_v27  ;;  %v2524_v28 = vrot.slane %v2522_v47, 4  ;;  %v4803_v47 = vld [vmem:[%s5901_s25 + $0x78] sm:$0xf] }
  0x7a   : > { %5768 = vmatprep.subr.msk.bf16.mxu1 %vm259_vm0, %v6206_v58  ;;  %v1463_v58 = vshll.u32 %v4705_v57, 16  ;;  %v1447_v57 = vrot.slane %v1446_v26, 4  ;;  %v2538_v26 = vrot.slane %v2536_v54, 4  ;;  %v2550_v54 = vshrl.u32 %v4797_v10, 16 }
  0x7b   : > { %v2528_v19 = vor.u32 %v2527_v13, %v2524_v28  ;;  %v2533_v28 = vrot.slane %v2531_v29, 5  ;;  %v2595_v11 = vshll.u32 %v4803_v47, 16  ;;  %v4805_v29 = vld [vmem:[%s5901_s25 + $0x80] sm:$0xf] }
  0x7c   : > { %v1465_v21 = vrot.slane %v1463_v58, 5  ;;  %v1475_v58 = vrot.slane %v1474_v0, 4  ;;  %v2542_v55 = vor.u32 %v2541_v31, %v2538_v26  ;;  %v2567_v0 = vshll.u32 %v4799_v25, 16  ;;  %v4798_v26 = vld [vmem:[%s5901_s25 + $0x64] sm:$0x1] }
  0x7d   : > { %v2552_v9 = vrot.slane %v2550_v54, 4  ;;  %v2566_v31 = vrot.slane %v2564_v42, 4  ;;  %v4802_v54 = vld [vmem:[%s5901_s25 + $0x74] sm:$0x1] }
  0x7e   : > { %5203 = vmatmul.mubr.msk.bf16.gmra.mrb[4].mxu0 %vm246_vm1, %v6290_v39  ;;  %v1480_v13 = vsel %vm5946_vm4, %v1475_v58, %v1479_v62  ;;  %v2543_v10 = vrot.slane %v2542_v55, 4  ;;  %v2555_v62 = vrot.slane %v2553_v41, 5  ;;  %v2569_v58 = vrot.slane %v2567_v0, 5  ;;  %v4804_v55 = vld [vmem:[%s5901_s25 + $0x7c] sm:$0x1] }
  0x7f   : > { %5208 = vmatprep.mubr.msk.bf16.mxu0 %vm246_vm1, %v6315_v61 }
  0x80   : > { %5283 = vmatmul.mubr.msk.bf16.gmra.mrb[4].mxu1 %vm246_vm1, %v6312_v60  ;;  %v2556_v42 = vor.u32 %v2555_v62, %v2552_v9  ;;  %v2570_v0 = vor.u32 %v2569_v58, %v2566_v31  ;;  %v4806_v58 = vld [vmem:[%s5901_s25 + $0x84] sm:$0x1] }
  0x81   : > { %5288 = vmatprep.mubr.msk.bf16.mxu1 %vm246_vm1, %v6315_v61 }
  0x82   : > { %v2571_v62 = vrot.slane %v2570_v0, 4 }
  0x86   : > { %5209 = vmatmul.mubr.msk.bf16.vlgmr.msra.gmra.mrb[0].mxu0 %vm246_vm1, %v6339_v43 }
  0x87   : > { %5212 = vmatprep.mubr.msk.bf16.mxu0 %vm246_vm1, %v6347_v51  ;;  %5217 = vmatpush3.bf16.msra.mxu0 %v6324_v20 }
  0x88   : > { %5770 = vmatprep.subr.msk.bf16.mxu0 %vm259_vm0, %v6369_v35  ;;  %5289 = vmatmul.mubr.msk.bf16.vlgmr.msra.gmra.mrb[0].mxu1 %vm246_vm1, %v6339_v43 }
  0x89   : > { %5297 = vmatpush3.bf16.msra.mxu1 %v6275_v22  ;;  %5292 = vmatprep.mubr.msk.bf16.mxu1 %vm246_vm1, %v6347_v51  ;;  %v1488_v22 = vor.u32 %v1487_v45, %v1484_v37  ;;  %v1452_v37 = vsel %vm5946_vm4, %v1447_v57, %v1451_v63  ;;  %v1466_v45 = vsel %vm5946_vm4, %v1461_v14, %v1465_v21  ;;  %v2581_v57 = vshll.u32 %v4801_v49, 16 }
  0x8a   : > { %5769 = vmatprep.subr.msk.bf16.mxu1 %vm259_vm0, %v6280_v30  ;;  %v6411_v6 = vcombine.low %v1452_v37, %v1466_v45  ;;  %v2592_v63 = vshrl.u32 %v4803_v47, 16  ;;  %v2529_v14 = vrot.slane %v2528_v19, 4  ;;  %v2547_v21 = vrot.slane %v2545_v53, 5  ;;  %v4807_v45 = vld [vmem:[%s5901_s25 + $0x88] sm:$0xf] }
  0x8b   : > { %v1489_v52 = vrot.slane %v1488_v22, 4  ;;  %v2578_v22 = vshrl.u32 %v4801_v49, 16  ;;  %v2583_v18 = vrot.slane %v2581_v57, 5  ;;  %v2597_v37 = vrot.slane %v2595_v11, 5  ;;  %v6429_v47 = vld [vmem:[%s6834_s1] sm:$0x3] }
  0x8c   : > { %v2594_v34 = vrot.slane %v2592_v63, 4  ;;  %v2534_v19 = vsel %vm5946_vm4, %v2529_v14, %v2533_v28  ;;  %v2559_v53 = vshll.u32 %v4798_v26, 16  ;;  %v2548_v41 = vsel %vm5946_vm4, %v2543_v10, %v2547_v21 }
  0x8d   : > { %v1494_v25 = vsel %vm5946_vm4, %v1489_v52, %v1493_v2  ;;  %v4800_v2 = vld [vmem:[%s5901_s25 + $0x6c] sm:$0x1]  ;;  %v2580_v49 = vrot.slane %v2578_v22, 4  ;;  %v2609_v28 = vshll.u32 %v4805_v29, 16  ;;  %v2620_v57 = vshrl.u32 %v4807_v45, 16 }
  0x8e   : > { %5213 = vmatmul.mubr.msk.bf16.gmra.mrb[4].mxu0 %vm246_vm1, %v6376_v40  ;;  %v6433_v52 = vcombine.low %v1480_v13, %v1494_v25  ;;  %v2573_v22 = vshll.u32 %v4800_v2, 16  ;;  %v2606_v13 = vshrl.u32 %v4805_v29, 16  ;;  %v2623_v63 = vshll.u32 %v4807_v45, 16 }
  0x8f   : > { %5218 = vmatprep.mubr.msk.bf16.mxu0 %vm246_vm1, %v6386_v33  ;;  %v2584_v11 = vor.u32 %v2583_v18, %v2580_v49  ;;  %v2587_v25 = vshll.u32 %v4802_v54, 16  ;;  %v2598_v14 = vor.u32 %v2597_v37, %v2594_v34  ;;  %v2601_v21 = vshll.u32 %v4804_v55, 16 }
  0x90   : > { %5293 = vmatmul.mubr.msk.bf16.gmra.mrb[4].mxu1 %vm246_vm1, %v6376_v40  ;;  %v2561_v9 = vrot.slane %v2559_v53, 5  ;;  %v6450_v10 = vcombine.low %v2534_v19, %v2548_v41  ;;  %v2557_v26 = vrot.slane %v2556_v42, 4  ;;  %v2575_v31 = vrot.slane %v2573_v22, 5  ;;  %v4808_v53 = vld [vmem:[%s5901_s25 + $0x8c] sm:$0x1] }
  0x91   : > { %5298 = vmatprep.mubr.msk.bf16.mxu1 %vm246_vm1, %v6386_v33  ;;  %v2608_v2 = vrot.slane %v2606_v13, 4  ;;  %v2622_v29 = vrot.slane %v2620_v57, 4  ;;  %v2625_v49 = vrot.slane %v2623_v63, 5  ;;  %v2585_v18 = vrot.slane %v2584_v11, 4 }
  0x92   : > { %v2589_v34 = vrot.slane %v2587_v25, 5  ;;  %v2599_v37 = vrot.slane %v2598_v14, 4  ;;  %v2603_v45 = vrot.slane %v2601_v21, 5  ;;  %v2562_v19 = vsel %vm5946_vm4, %v2557_v26, %v2561_v9  ;;  %v5831_v21 = vld [vmem:[%s6834_s1 + $0x4] sm:$0x3] }
  0x93   : > { %v2615_v54 = vshll.u32 %v4806_v58, 16  ;;  %v2576_v55 = vsel %vm5946_vm4, %v2571_v62, %v2575_v31  ;;  %v2626_v42 = vor.u32 %v2625_v49, %v2622_v29  ;;  %v2629_v0 = vshll.u32 %v4808_v53, 16  ;;  %v5832_v31 = vld [vmem:[%s5901_s25 + $0x90] ss:$8 sps:$4 sm:$0xff]   ;;  %v4883_v29 = vld [vmem:[%s5901_s25 + $0xc0] sm:$0xf] }
  0x94   : > { %v2590_v22 = vsel %vm5946_vm4, %v2585_v18, %v2589_v34  ;;  %v2604_v13 = vsel %vm5946_vm4, %v2599_v37, %v2603_v45  ;;  %v5834_v58 = vld [vmem:[%s5901_s25 + $0xb0] ss:$8 sps:$4 sm:$0xff]   ;;  %v4878_v45 = vld [vmem:[%s5901_s25 + $0xac] sm:$0x1] }
  0x95   : > { %v2617_v57 = vrot.slane %v2615_v54, 5  ;;  %v6472_v63 = vcombine.low %v2590_v22, %v2604_v13  ;;  %v2627_v25 = vrot.slane %v2626_v42, 4  ;;  %v2631_v14 = vrot.slane %v2629_v0, 5  ;;  %v4885_v0 = vld [vmem:[%s5901_s25 + $0xc8] sm:$0xf] }
  0x96   : > { %5219 = vmatmul.mubr.msk.bf16.vlgmr.msra.gmra.mrb[0].mxu0 %vm246_vm1, %v6409_v48  ;;  %v3502_v42 = vshll.u32 %v4883_v29, 16  ;;  %v4880_v22 = vld [vmem:[%s5901_s25 + $0xb4] sm:$0x1] }
  0x97   : > { %5222 = vmatprep.mubr.msk.bf16.mxu0 %vm246_vm1, %v6411_v6  ;;  %5317 = vmatpush3.bf16.msra.mxu0 %v5888_v1  ;;  %v2632_v26 = vsel %vm5946_vm4, %v2627_v25, %v2631_v14  ;;  %v3466_v14 = vshll.u32 %v4878_v45, 16 }
  0x98   : > { %5771 = vmatprep.subr.msk.bf16.mxu0 %vm259_vm0, %v6429_v47  ;;  %5299 = vmatmul.mubr.msk.bf16.vlgmr.msra.gmra.mrb[0].mxu1 %vm246_vm1, %v6409_v48 }
  0x99   : > { %5307 = vmatpush3.bf16.msra.mxu1 %v6324_v20  ;;  %5302 = vmatprep.mubr.msk.bf16.mxu1 %vm246_vm1, %v6411_v6 }
  0x9a   : > { %5779 = vmatprep.subr.msk.bf16.mxu1 %vm259_vm0, %v6369_v35  ;;  %v2611_v35 = vrot.slane %v2609_v28, 5  ;;  %v6468_v28 = vcombine.low %v2562_v19, %v2576_v55 }
  0x9c   : > { %v2612_v41 = vor.u32 %v2611_v35, %v2608_v2 }
  0x9e   : > { %5223 = vmatmul.mubr.msk.bf16.gmra.mrb[4].mxu0 %vm246_vm1, %v6433_v52  ;;  %v2613_v11 = vrot.slane %v2612_v41, 4  ;;  %v3499_v41 = vshrl.u32 %v4883_v29, 16 }
  0x9f   : > { %5318 = vmatprep.mubr.msk.bf16.mxu0 %vm246_vm1, %v6101_v4 }
  0xa0   : > { %5303 = vmatmul.mubr.msk.bf16.gmra.mrb[4].mxu1 %vm246_vm1, %v6433_v52  ;;  %v2618_v9 = vsel %vm5946_vm4, %v2613_v11, %v2617_v57  ;;  %v5826_v57 = vld [vmem:[%s5901_s25 + $0xf0] ss:$8 sps:$4 sm:$0xff]  }
  0xa1   : > { %5308 = vmatprep.mubr.msk.bf16.mxu1 %vm246_vm1, %v6450_v10  ;;  %v6492_v62 = vcombine.low %v2618_v9, %v2632_v26  ;;  %v4882_v9 = vld [vmem:[%s5901_s25 + $0xbc] sm:$0x1] }
  0xa6   : > { %5319 = vmatmul.mubr.msk.bf16.vlgmr.msra.gmra.mrb[8].mxu0 %vm246_vm1, %v6123_v24 }
  0xa7   : > { %5322 = vmatprep.mubr.msk.bf16.mxu0 %vm246_vm1, %v6136_v5  ;;  %5327 = vmatpush3.bf16.msra.mxu0 %v5904_v3 }
  0xa8   : > { %5772 = vmatprep.subr.msk.bf16.mxu0 %vm259_vm0, %v5831_v21  ;;  %5309 = vmatmul.mubr.msk.bf16.vlgmr.msra.gmra.mrb[0].mxu1 %vm246_vm1, %v6468_v28 }
  0xa9   : > { %5407 = vmatpush3.bf16.msra.mxu1 %v5888_v1  ;;  %5312 = vmatprep.mubr.msk.bf16.mxu1 %vm246_vm1, %v6472_v63  ;;  %v5833_v1 = vld [vmem:[%s5901_s25 + $0xa0] ss:$8 sps:$4 sm:$0xff]  }
  0xaa   : > { %5780 = vmatprep.subr.msk.bf16.mxu1 %vm259_vm0, %v6429_v47  ;;  %v5835_v47 = vld [vmem:[%s6834_s1 + $0x6] sm:$0x3] }
  0xae   : > { %5323 = vmatmul.mubr.msk.bf16.gmra.mrb[12].mxu0 %vm246_vm1, %v6166_v16 }
  0xaf   : > { %5328 = vmatprep.mubr.msk.bf16.mxu0 %vm246_vm1, %v5832_v31 }
  0xb0   : > { %5313 = vmatmul.mubr.msk.bf16.gmra.mrb[4].mxu1 %vm246_vm1, %v6492_v62 }
  0xb1   : > { %5408 = vmatprep.mubr.msk.bf16.mxu1 %vm246_vm1, %v6168_v17 }
  0xb6   : > { %5329 = vmatmul.mubr.msk.bf16.vlgmr.msra.gmra.mrb[8].mxu0 %vm246_vm1, %v5833_v1  ;;  %v3513_v1 = vshrl.u32 %v4885_v0, 16 }
  0xb7   : > { %5332 = vmatprep.mubr.msk.bf16.mxu0 %vm246_vm1, %v5834_v58  ;;  %5337 = vmatpush3.bf16.msra.mxu0 %v5926_v8  ;;  %v3516_v58 = vshll.u32 %v4885_v0, 16  ;;  %v4933_v0 = vld [vmem:[%s5901_s25 + $0xf0] sm:$0xf] }
  0xb8   : > { %5773 = vmatprep.subr.msk.bf16.mxu0 %vm259_vm0, %v5835_v47  ;;  %5409 = vmatmul.mubr.msk.bf16.vlgmr.msra.gmra.mrb[8].mxu1 %vm246_vm1, %v6193_v46 }
  0xb9   : > { %5417 = vmatpush3.bf16.msra.mxu1 %v5904_v3  ;;  %5412 = vmatprep.mubr.msk.bf16.mxu1 %vm246_vm1, %v6198_v50  ;;  %v5836_v3 = vld [vmem:[%s6834_s1 + $0x8] sm:$0x3] }
  0xba   : > { %5781 = vmatprep.subr.msk.bf16.mxu1 %vm259_vm0, %v5831_v21  ;;  %v4887_v21 = vld [vmem:[%s5901_s25 + $0xd0] sm:$0xf] }
  0xbe   : > { %5333 = vmatmul.mubr.msk.bf16.gmra.mrb[12].mxu0 %vm246_vm1, %v6094_v44  ;;  %v6855_v44 = vld [vmem:[#allocation2_spill] sm:$0xff] }
  0xbf   : > { %5338 = vmatprep.mubr.msk.bf16.mxu0 %vm246_vm1, %v6168_v17  ;;  %v5823_v17 = vld [vmem:[%s5901_s25 + $0xb8] ss:$8 sps:$4 sm:$0xff]  }
  0xc0   : > { %5413 = vmatmul.mubr.msk.bf16.gmra.mrb[12].mxu1 %vm246_vm1, %v6234_v38 }
  0xc1   : > { %5418 = vmatprep.mubr.msk.bf16.mxu1 %vm246_vm1, %v6101_v4  ;;  %v6857_v4 = vld [vmem:[#allocation5_spill] sm:$0xff] }
  0xc6   : > { %5339 = vmatmul.mubr.msk.bf16.vlgmr.msra.gmra.mrb[8].mxu0 %vm246_vm1, %v6193_v46  ;;  %v4873_v46 = vld [vmem:[%s5901_s25 + $0x98] sm:$0xf] }
  0xc7   : > { %5342 = vmatprep.mubr.msk.bf16.mxu0 %vm246_vm1, %v6198_v50  ;;  %5347 = vmatpush3.bf16.msra.mxu0 %v6022_v59  ;;  %v4875_v50 = vld [vmem:[%s5901_s25 + $0xa0] sm:$0xf] }
  0xc8   : > { %5774 = vmatprep.subr.msk.bf16.mxu0 %vm259_vm0, %v5836_v3  ;;  %5419 = vmatmul.mubr.msk.bf16.vlgmr.msra.gmra.mrb[8].mxu1 %vm246_vm1, %v6123_v24  ;;  %v5821_v24 = vld [vmem:[%s5901_s25 + $0x98] ss:$8 sps:$4 sm:$0xff]  }
  0xc9   : > { %5427 = vmatpush3.bf16.msra.mxu1 %v5926_v8  ;;  %5422 = vmatprep.mubr.msk.bf16.mxu1 %vm246_vm1, %v6136_v5  ;;  %v5837_v8 = vld [vmem:[%s6834_s1 + $0xa] sm:$0x3]  ;;  %v5838_v5 = vld [vmem:[%s6834_s1 + $0xc] sm:$0x3] }
  0xca   : > { %5782 = vmatprep.subr.msk.bf16.mxu1 %vm259_vm0, %v5835_v47  ;;  %v5827_v47 = vld [vmem:[%s5901_s25 + $0x100] ss:$8 sps:$4 sm:$0xff]  }
  0xce   : > { %5343 = vmatmul.mubr.msk.bf16.gmra.mrb[12].mxu0 %vm246_vm1, %v6234_v38  ;;  %v3432_v38 = vshll.u32 %v4873_v46, 16 }
  0xcf   : > { %5348 = vmatprep.mubr.msk.bf16.mxu0 %vm246_vm1, %v6226_v32  ;;  %v3429_v32 = vshrl.u32 %v4873_v46, 16  ;;  %v3494_v46 = vshll.u32 %v4882_v9, 16 }
  0xd0   : > { %5423 = vmatmul.mubr.msk.bf16.gmra.mrb[12].mxu1 %vm246_vm1, %v6166_v16  ;;  %v5822_v16 = vld [vmem:[%s5901_s25 + $0xa8] ss:$8 sps:$4 sm:$0xff]  }
  0xd1   : > { %5428 = vmatprep.mubr.msk.bf16.mxu1 %vm246_vm1, %v6245_v56  ;;  %v6858_v56 = vld [vmem:[#allocation6_spill] sm:$0xff] }
  0xd6   : > { %5349 = vmatmul.mubr.msk.bf16.vlgmr.msra.gmra.mrb[8].mxu0 %vm246_vm1, %v6258_v23  ;;  %v4877_v23 = vld [vmem:[%s5901_s25 + $0xa8] sm:$0xf] }
  0xd7   : > { %5352 = vmatprep.mubr.msk.bf16.mxu0 %vm246_vm1, %v6264_v15  ;;  %5357 = vmatpush3.bf16.msra.mxu0 %v6073_v12  ;;  %v3443_v15 = vshrl.u32 %v4875_v50, 16 }
  0xd8   : > { %5775 = vmatprep.subr.msk.bf16.mxu0 %vm259_vm0, %v5837_v8  ;;  %5429 = vmatmul.mubr.msk.bf16.vlgmr.msra.gmra.mrb[8].mxu1 %vm246_vm1, %v6267_v7  ;;  %v3446_v7 = vshll.u32 %v4875_v50, 16 }
  0xd9   : > { %5437 = vmatpush3.bf16.msra.mxu1 %v6022_v59  ;;  %5432 = vmatprep.mubr.msk.bf16.mxu1 %vm246_vm1, %v6284_v27  ;;  %v6854_v59 = vld [vmem:[#allocation3_spill] sm:$0xff] }
  0xda   : > { %5783 = vmatprep.subr.msk.bf16.mxu1 %vm259_vm0, %v5836_v3  ;;  %v5824_v27 = vld [vmem:[%s5901_s25 + $0xc8] ss:$8 sps:$4 sm:$0xff]  }
  0xde   : > { %5353 = vmatmul.mubr.msk.bf16.gmra.mrb[12].mxu0 %vm246_vm1, %v6290_v39  ;;  %v3431_v39 = vrot.slane %v3429_v32, 4  ;;  %v3515_v32 = vrot.slane %v3513_v1, 4 }
  0xdf   : > { %5358 = vmatprep.mubr.msk.bf16.mxu0 %vm246_vm1, %v6315_v61 }
  0xe0   : > { %5433 = vmatmul.mubr.msk.bf16.gmra.mrb[12].mxu1 %vm246_vm1, %v6312_v60  ;;  %v3434_v60 = vrot.slane %v3432_v38, 5  ;;  %v3518_v38 = vrot.slane %v3516_v58, 5  ;;  %v4285_v58 = vshll.u32 %v4933_v0, 16 }
  0xe1   : > { %5438 = vmatprep.mubr.msk.bf16.mxu1 %vm246_vm1, %v6315_v61  ;;  %v4879_v61 = vld [vmem:[%s5901_s25 + $0xb0] sm:$0xf] }
  0xe2   : > { %v3471_v2 = vshrl.u32 %v4879_v61, 16  ;;  %v3474_v35 = vshll.u32 %v4879_v61, 16  ;;  %v3435_v49 = vor.u32 %v3434_v60, %v3431_v39  ;;  %v4886_v61 = vld [vmem:[%s5901_s25 + $0xcc] sm:$0x1] }
  0xe4   : > { %v3473_v13 = vrot.slane %v3471_v2, 4 }
  0xe6   : > { %5359 = vmatmul.mubr.msk.bf16.vlgmr.msra.gmra.mrb[8].mxu0 %vm246_vm1, %v6339_v43 }
  0xe7   : > { %5362 = vmatprep.mubr.msk.bf16.mxu0 %vm246_vm1, %v6347_v51  ;;  %5367 = vmatpush3.bf16.msra.mxu0 %v6854_v59 }
  0xe8   : > { %5776 = vmatprep.subr.msk.bf16.mxu0 %vm259_vm0, %v6855_v44  ;;  %5439 = vmatmul.mubr.msk.bf16.vlgmr.msra.gmra.mrb[8].mxu1 %vm246_vm1, %v6339_v43  ;;  %v3457_v43 = vshrl.u32 %v4877_v23, 16 }
  0xe9   : > { %5447 = vmatpush3.bf16.msra.mxu1 %v6073_v12  ;;  %5442 = vmatprep.mubr.msk.bf16.mxu1 %vm246_vm1, %v6347_v51  ;;  %v6856_v12 = vld [vmem:[#allocation4_spill] sm:$0xff]  ;;  %v3460_v51 = vshll.u32 %v4877_v23, 16  ;;  %v4929_v23 = vld [vmem:[%s5901_s25 + $0xe0] sm:$0xf] }
  0xea   : > { %5784 = vmatprep.subr.msk.bf16.mxu1 %vm259_vm0, %v5837_v8  ;;  %v3459_v34 = vrot.slane %v3457_v43, 4 }
  0xeb   : > { %v3462_v37 = vrot.slane %v3460_v51, 5 }
  0xed   : > { %v3463_v25 = vor.u32 %v3462_v37, %v3459_v34  ;;  %v3522_v34 = vshll.u32 %v4886_v61, 16 }
  0xee   : > { %5363 = vmatmul.mubr.msk.bf16.gmra.mrb[12].mxu0 %vm246_vm1, %v6376_v40 }
  0xef   : > { %5368 = vmatprep.mubr.msk.bf16.mxu0 %vm246_vm1, %v6386_v33 }
  0xf0   : > { %5443 = vmatmul.mubr.msk.bf16.gmra.mrb[12].mxu1 %vm246_vm1, %v6376_v40  ;;  %v4874_v40 = vld [vmem:[%s5901_s25 + $0x9c] sm:$0x1] }
  0xf1   : > { %5448 = vmatprep.mubr.msk.bf16.mxu1 %vm246_vm1, %v6386_v33  ;;  %v5825_v33 = vld [vmem:[%s5901_s25 + $0xe0] ss:$8 sps:$4 sm:$0xff]   ;;  %v3438_v18 = vshll.u32 %v4874_v40, 16  ;;  %v4888_v40 = vld [vmem:[%s5901_s25 + $0xd4] sm:$0x1] }
  0xf3   : > { %v3440_v11 = vrot.slane %v3438_v18, 5  ;;  %v3519_v18 = vor.u32 %v3518_v38, %v3515_v32 }
  0xf6   : > { %5369 = vmatmul.mubr.msk.bf16.vlgmr.msra.gmra.mrb[8].mxu0 %vm246_vm1, %v6409_v48 }
  0xf7   : > { %5372 = vmatprep.mubr.msk.bf16.mxu0 %vm246_vm1, %v6411_v6  ;;  %5377 = vmatpush3.bf16.msra.mxu0 %v6856_v12 }
  0xf8   : > { %5777 = vmatprep.subr.msk.bf16.mxu0 %vm259_vm0, %v6857_v4  ;;  %5449 = vmatmul.mubr.msk.bf16.vlgmr.msra.gmra.mrb[8].mxu1 %vm246_vm1, %v6409_v48  ;;  %v3445_v48 = vrot.slane %v3443_v15, 4  ;;  %v4931_v15 = vld [vmem:[%s5901_s25 + $0xe8] sm:$0xf] }
  0xf9   : > { %5457 = vmatpush3.bf16.msra.mxu1 %v6854_v59  ;;  %5452 = vmatprep.mubr.msk.bf16.mxu1 %vm246_vm1, %v6411_v6  ;;  %v3448_v6 = vrot.slane %v3446_v7, 5  ;;  %v3501_v59 = vrot.slane %v3499_v41, 4  ;;  %v4271_v2 = vshll.u32 %v4931_v15, 16 }
  0xfa   : > { %5785 = vmatprep.subr.msk.bf16.mxu1 %vm259_vm0, %v5838_v5  ;;  %v3530_v5 = vshll.u32 %v4887_v21, 16 }
  0xfb   : > { %v3449_v54 = vor.u32 %v3448_v6, %v3445_v48  ;;  %v4254_v6 = vshrl.u32 %v4929_v23, 16 }
  0xfc   : > { %v3532_v48 = vrot.slane %v3530_v5, 5 }
  0xfd   : > { %v3450_v3 = vrot.slane %v3449_v54, 4 }
  0xfe   : > { %5373 = vmatmul.mubr.msk.bf16.gmra.mrb[12].mxu0 %vm246_vm1, %v6433_v52 }
  0xff   : > { %5378 = vmatprep.mubr.msk.bf16.mxu0 %vm246_vm1, %v5821_v24  ;;  %v3527_v24 = vshrl.u32 %v4887_v21, 16 }
 0x100   : > { %5453 = vmatmul.mubr.msk.bf16.gmra.mrb[12].mxu1 %vm246_vm1, %v6433_v52  ;;  %v4881_v52 = vld [vmem:[%s5901_s25 + $0xb8] sm:$0xf] }
 0x101   : > { %5458 = vmatprep.mubr.msk.bf16.mxu1 %vm246_vm1, %v6450_v10  ;;  %v4876_v10 = vld [vmem:[%s5901_s25 + $0xa4] sm:$0x1]  ;;  %v3485_v53 = vshrl.u32 %v4881_v52, 16  ;;  %v3488_v19 = vshll.u32 %v4881_v52, 16  ;;  %v4257_v52 = vshll.u32 %v4929_v23, 16 }
 0x102   : > { %v3452_v55 = vshll.u32 %v4876_v10, 16  ;;  %v4268_v10 = vshrl.u32 %v4931_v15, 16  ;;  %v4934_v23 = vld [vmem:[%s5901_s25 + $0xf4] sm:$0x1] }
 0x103   : > { %v3487_v26 = vrot.slane %v3485_v53, 4  ;;  %v3490_v31 = vrot.slane %v3488_v19, 5  ;;  %v3536_v53 = vshll.u32 %v4888_v40, 16  ;;  %v4930_v19 = vld [vmem:[%s5901_s25 + $0xe4] sm:$0x1] }
 0x104   : > { %v3454_v8 = vrot.slane %v3452_v55, 5 }
 0x105   : > { %v3491_v50 = vor.u32 %v3490_v31, %v3487_v26  ;;  %v3538_v9 = vrot.slane %v3536_v53, 5  ;;  %v4282_v31 = vshrl.u32 %v4933_v0, 16 }
 0x106   : > { %5379 = vmatmul.mubr.msk.bf16.vlgmr.msra.gmra.mrb[8].mxu0 %vm246_vm1, %v5822_v16  ;;  %v6654_v16 = vrot.slane %v3463_v25, 4  ;;  %v4263_v25 = vshll.u32 %v4930_v19, 16 }
 0x107   : > { %5382 = vmatprep.mubr.msk.bf16.mxu0 %vm246_vm1, %v5823_v17  ;;  %5387 = vmatpush3.bf16.msra.mxu0 %v6858_v56  ;;  %v6656_v17 = vrot.slane %v3466_v14, 5  ;;  %v3492_v29 = vrot.slane %v3491_v50, 4  ;;  %v4935_v14 = vld [vmem:[%s5901_s25 + $0xf8] sm:$0xf]  ;;  %v4284_v15 = vrot.slane %v4282_v31, 4 }
 0x108   : > { %5778 = vmatprep.subr.msk.bf16.mxu0 %vm259_vm0, %v6280_v30  ;;  %5459 = vmatmul.mubr.msk.bf16.vlgmr.msra.gmra.mrb[8].mxu1 %vm246_vm1, %v6468_v28  ;;  %v3476_v28 = vrot.slane %v3474_v35, 5  ;;  %v5828_v35 = vld [vmem:[%s5901_s25 + $0x110] ss:$8 sps:$4 sm:$0xff]   ;;  %v4265_v5 = vrot.slane %v4263_v25, 5 }
 0x109   : > { %5467 = vmatpush3.bf16.msra.mxu1 %v6856_v12  ;;  %5462 = vmatprep.mubr.msk.bf16.mxu1 %vm246_vm1, %v6472_v63  ;;  %v3436_v63 = vrot.slane %v3435_v49, 4  ;;  %v3480_v12 = vshll.u32 %v4880_v22, 16  ;;  %v3496_v49 = vrot.slane %v3494_v46, 5  ;;  %v4259_v22 = vrot.slane %v4257_v52, 5  ;;  %v4943_v52 = vld [vmem:[%s5901_s25 + $0x118] sm:$0xf] }
 0x10a   : > { %5786 = vmatprep.subr.msk.bf16.mxu1 %vm259_vm0, %v6857_v4  ;;  %v3477_v44 = vor.u32 %v3476_v28, %v3473_v13  ;;  %v4884_v4 = vld [vmem:[%s5901_s25 + $0xc4] sm:$0x1]  ;;  %v4270_v13 = vrot.slane %v4268_v10, 4  ;;  %v4273_v28 = vrot.slane %v4271_v2, 5  ;;  %v4291_v2 = vshll.u32 %v4934_v23, 16 }
 0x10b   : > { %v3441_v7 = vsel %vm5946_vm4, %v3436_v63, %v3440_v11  ;;  %v3508_v60 = vshll.u32 %v4884_v4, 16  ;;  %v3482_v51 = vrot.slane %v3480_v12, 5  ;;  %v3520_v63 = vrot.slane %v3519_v18, 4 }
 0x10c   : > { %v3478_v43 = vrot.slane %v3477_v44, 4  ;;  %v3524_v11 = vrot.slane %v3522_v34, 5  ;;  %v4299_v44 = vshll.u32 %v4935_v14, 16 }
 0x10d   : > { %v3510_v45 = vrot.slane %v3508_v60, 5  ;;  %v4936_v60 = vld [vmem:[%s5901_s25 + $0xfc] sm:$0x1] }
 0x10e   : > { %5383 = vmatmul.mubr.msk.bf16.gmra.mrb[12].mxu0 %vm246_vm1, %v5824_v27  ;;  %v3455_v27 = vsel %vm5946_vm4, %v3450_v3, %v3454_v8  ;;  %v3483_v55 = vsel %vm5946_vm4, %v3478_v43, %v3482_v51  ;;  %v4939_v3 = vld [vmem:[%s5901_s25 + $0x108] sm:$0xf]  ;;  %v4301_v43 = vrot.slane %v4299_v44, 5  ;;  %v4941_v51 = vld [vmem:[%s5901_s25 + $0x110] sm:$0xf] }
 0x10f   : > { %5388 = vmatprep.mubr.msk.bf16.mxu0 %vm246_vm1, %v5825_v33  ;;  %v4889_v54 = vcombine.low %v3441_v7, %v3455_v27  ;;  %v4324_v46 = vshrl.u32 %v4939_v3, 16  ;;  %v4327_v50 = vshll.u32 %v4939_v3, 16  ;;  %v4287_v7 = vrot.slane %v4285_v58, 5 }
 0x110   : > { %5463 = vmatmul.mubr.msk.bf16.gmra.mrb[12].mxu1 %vm246_vm1, %v6492_v62  ;;  %v3504_v62 = vrot.slane %v3502_v42, 5  ;;  %v4932_v42 = vld [vmem:[%s5901_s25 + $0xec] sm:$0x1]  ;;  %v4338_v53 = vshrl.u32 %v4941_v51, 16  ;;  %v4341_v19 = vshll.u32 %v4941_v51, 16 }
 0x111   : > { %5468 = vmatprep.mubr.msk.bf16.mxu1 %vm246_vm1, %v5825_v33  ;;  %v3529_v33 = vrot.slane %v3527_v24, 4  ;;  %v4277_v26 = vshll.u32 %v4932_v42, 16  ;;  %v3525_v24 = vsel %vm5946_vm4, %v3520_v63, %v3524_v11  ;;  %v6736_v51 = vld [vmem:[%s6835_s2] ss:$0 sm:$0xff] }
 0x112   : > { %v3505_v39 = vor.u32 %v3504_v62, %v3501_v59  ;;  %v4274_v59 = vor.u32 %v4273_v28, %v4270_v13  ;;  %v4296_v62 = vshrl.u32 %v4935_v14, 16  ;;  %v4340_v63 = vrot.slane %v4338_v53, 4 }
 0x113   : > { %v3533_v41 = vor.u32 %v3532_v48, %v3529_v33  ;;  %v4279_v38 = vrot.slane %v4277_v26, 5  ;;  %v4326_v48 = vrot.slane %v4324_v46, 4  ;;  %v4343_v11 = vrot.slane %v4341_v19, 5 }
 0x114   : > { %v3506_v37 = vrot.slane %v3505_v39, 4  ;;  %v4275_v39 = vrot.slane %v4274_v59, 4  ;;  %v4298_v61 = vrot.slane %v4296_v62, 4 }
 0x115   : > { %v3534_v1 = vrot.slane %v3533_v41, 4 }
 0x116   : > { %5389 = vmatmul.mubr.msk.bf16.vlgmr.msra.gmra.mrb[8].mxu0 %vm246_vm1, %v5826_v57  ;;  %v3511_v21 = vsel %vm5946_vm4, %v3506_v37, %v3510_v45  ;;  %v4280_v34 = vsel %vm5946_vm4, %v4275_v39, %v4279_v38  ;;  %v4288_v37 = vor.u32 %v4287_v7, %v4284_v15  ;;  %v4302_v45 = vor.u32 %v4301_v43, %v4298_v61 }
 0x117   : > { %5392 = vmatprep.mubr.msk.bf16.mxu0 %vm246_vm1, %v5827_v47  ;;  %5397 = vmatpush3.bf16.msra.mxu0 %v6324_v20  ;;  %v3539_v32 = vsel %vm5946_vm4, %v3534_v1, %v3538_v9  ;;  %v4944_v1 = vld [vmem:[%s5901_s25 + $0x11c] sm:$0x1] }
 0x118   : > { %5469 = vmatmul.mubr.msk.bf16.vlgmr.msra.gmra.mrb[8].mxu1 %vm246_vm1, %v5826_v57  ;;  %v3497_v57 = vsel %vm5946_vm4, %v3492_v29, %v3496_v49  ;;  %v4892_v10 = vcombine.low %v3525_v24, %v3539_v32  ;;  %v4938_v29 = vld [vmem:[%s5901_s25 + $0x104] sm:$0x1]  ;;  %v4940_v49 = vld [vmem:[%s5901_s25 + $0x10c] sm:$0x1]  ;;  %v4289_v13 = vrot.slane %v4288_v37, 4  ;;  %v4303_v28 = vrot.slane %v4302_v45, 4 }
 0x119   : > { %5477 = vmatpush3.bf16.msra.mxu1 %v6858_v56  ;;  %5472 = vmatprep.mubr.msk.bf16.mxu1 %vm246_vm1, %v5827_v47  ;;  %v3469_v56 = vsel %vm5946_vm4, %v6654_v16, %v6656_v17  ;;  %v4937_v47 = vld [vmem:[%s5901_s25 + $0x100] sm:$0xf]  ;;  %v4891_v4 = vcombine.low %v3497_v57, %v3511_v21  ;;  %v4319_v41 = vshll.u32 %v4938_v29, 16  ;;  %v4333_v0 = vshll.u32 %v4940_v49, 16 }
 0x11a   : > { %5787 = vmatprep.subr.msk.bf16.mxu1 %vm259_vm0, %v6280_v30  ;;  %v4256_v30 = vrot.slane %v4254_v6, 4  ;;  %v4890_v12 = vcombine.low %v3469_v56, %v3483_v55  ;;  %v4310_v16 = vshrl.u32 %v4937_v47, 16  ;;  %v4313_v17 = vshll.u32 %v4937_v47, 16 }
 0x11b   : > { %v4329_v6 = vrot.slane %v4327_v50, 5  ;;  %v4355_v56 = vshll.u32 %v4943_v52, 16  ;;  %v4321_v9 = vrot.slane %v4319_v41, 5  ;;  %v4335_v31 = vrot.slane %v4333_v0, 5 }
 0x11c   : > { %v4260_v8 = vor.u32 %v4259_v22, %v4256_v30  ;;  %v4312_v40 = vrot.slane %v4310_v16, 4  ;;  %v4315_v33 = vrot.slane %v4313_v17, 5  ;;  %v4293_v30 = vrot.slane %v4291_v2, 5 }
 0x11d   : > { %v4330_v42 = vor.u32 %v4329_v6, %v4326_v48  ;;  %v4357_v14 = vrot.slane %v4355_v56, 5  ;;  %v4361_v62 = vshll.u32 %v4944_v1, 16 }
 0x11e   : > { %5393 = vmatmul.mubr.msk.bf16.gmra.mrb[12].mxu0 %vm246_vm1, %v5828_v35  ;;  %v4261_v27 = vrot.slane %v4260_v8, 4  ;;  %v4316_v55 = vor.u32 %v4315_v33, %v4312_v40  ;;  %v4294_v58 = vsel %vm5946_vm4, %v4289_v13, %v4293_v30  ;;  %v4344_v8 = vor.u32 %v4343_v11, %v4340_v63 }
 0x11f   : > { %5398 = vmatprep.mubr.msk.bf16.mxu0 %vm246_vm1, %v4889_v54  ;;  %v4331_v26 = vrot.slane %v4330_v42, 4  ;;  %v4363_v46 = vrot.slane %v4361_v62, 5 }
 0x120   : > { %5473 = vmatmul.mubr.msk.bf16.gmra.mrb[12].mxu1 %vm246_vm1, %v5828_v35  ;;  %v4305_v35 = vshll.u32 %v4936_v60, 16  ;;  %v4266_v18 = vsel %vm5946_vm4, %v4261_v27, %v4265_v5  ;;  %v4317_v21 = vrot.slane %v4316_v55, 4  ;;  %v4345_v16 = vrot.slane %v4344_v8, 4 }
 0x121   : > { %5478 = vmatprep.mubr.msk.bf16.mxu1 %vm246_vm1, %v4889_v54  ;;  %v4352_v54 = vshrl.u32 %v4943_v52, 16  ;;  %v4945_v22 = vcombine.low %v4266_v18, %v4280_v34 }
 0x122   : > { %v4307_v57 = vrot.slane %v4305_v35, 5  ;;  %v4322_v44 = vsel %vm5946_vm4, %v4317_v21, %v4321_v9 }
 0x123   : > { %v4354_v25 = vrot.slane %v4352_v54, 4 }
 0x124   : > { %v4308_v3 = vsel %vm5946_vm4, %v4303_v28, %v4307_v57 }
 0x125   : > { %v4358_v59 = vor.u32 %v4357_v14, %v4354_v25 }
 0x126   : > { %5399 = vmatmul.mubr.msk.bf16.vlgmr.msra.gmra.mrb[8].mxu0 %vm246_vm1, %v4890_v12 }
 0x127   : > { %5402 = vmatprep.mubr.msk.bf16.mxu0 %vm246_vm1, %v4891_v4  ;;  %v4359_v17 = vrot.slane %v4358_v59, 4 }
 0x128   : > { %5479 = vmatmul.mubr.msk.bf16.vlgmr.msra.gmra.mrb[8].mxu1 %vm246_vm1, %v4890_v12  ;;  %v4336_v12 = vsel %vm5946_vm4, %v4331_v26, %v4335_v31 }
 0x129   : > { %5487 = vmatpush3.bf16.msra.mxu1 %v6324_v20  ;;  %5482 = vmatprep.mubr.msk.bf16.mxu1 %vm246_vm1, %v4891_v4  ;;  %v4942_v20 = vld [vmem:[%s5901_s25 + $0x114] sm:$0x1]  ;;  %v4946_v4 = vcombine.low %v4294_v58, %v4308_v3  ;;  %v4947_v5 = vcombine.low %v4322_v44, %v4336_v12  ;;  %v4364_v32 = vsel %vm5946_vm4, %v4359_v17, %v4363_v46 }
 0x12a   : > { %v4347_v47 = vshll.u32 %v4942_v20, 16 }
 0x12c   : > { %v4349_v24 = vrot.slane %v4347_v47, 5 }
 0x12e   : > { %5403 = vmatmul.mubr.msk.bf16.gmra.mrb[12].mxu0 %vm246_vm1, %v4892_v10  ;;  %v4350_v50 = vsel %vm5946_vm4, %v4345_v16, %v4349_v24 }
 0x12f   : > { %v4948_v38 = vcombine.low %v4350_v50, %v4364_v32 }
 0x130   : > { %5483 = vmatmul.mubr.msk.bf16.gmra.mrb[12].mxu1 %vm246_vm1, %v4892_v10 }
 0x131   : > { %5488 = vmatprep.mubr.msk.bf16.mxu1 %vm246_vm1, %v4945_v22 }
 0x138   : > { %5489 = vmatmul.mubr.msk.bf16.vlgmr.msra.gmra.mrb[8].mxu1 %vm246_vm1, %v4946_v4 }
 0x139   : > { %5492 = vmatprep.mubr.msk.bf16.mxu1 %vm246_vm1, %v4947_v5 }
 0x140   : > { %5493 = vmatmul.mubr.msk.bf16.gmra.mrb[12].mxu1 %vm246_vm1, %v4948_v38 }
 0x169   : > { %v5220_v23 = vpop.f32.mrb[0].mxu0 }
 0x16a   : > { %v1558_v15 = vpop.f32.mrb[1].mxu0  ;;  %v1605_v40 = vmul.f32 %v5220_v23, %v6736_v51 }
 0x16b   : > { %v5221_v7 = vpop.f32.mrb[2].mxu0  ;;  %v1603_v33 = vmul.f32 %v6736_v51, %v1558_v15 }
 0x16c   : > { %v1561_v27 = vpop.f32.mrb[3].mxu0  ;;  %v1606_v48 = vmul.f32 %v5221_v7, %v6736_v51  ;;  %v1619_v10 = vadd.f32 %v6742_v36, %v1605_v40 }
 0x16d   : > { %v1604_v6 = vmul.f32 %v6736_v51, %v1561_v27  ;;  %v1617_v29 = vadd.f32 %v6742_v36, %v1603_v33 }
 0x16e   : > { %v1620_v34 = vadd.f32 %v6742_v36, %v1606_v48  ;;  %v1627_v55 = vmax.f32 %v1619_v10, 0.0 }
 0x16f   : > { %v1618_v19 = vadd.f32 %v6742_v36, %v1604_v6  ;;  %v1625_v30 = vmax.f32 %v1617_v29, 0.0 }
 0x170   : > { %v1628_v57 = vmax.f32 %v1620_v34, 0.0 }
 0x171   : > { %v5224_v39 = vpop.f32.mrb[4].mxu0  ;;  %v1626_v25 = vmax.f32 %v1618_v19, 0.0 }
 0x172   : > { %v1574_v60 = vpop.f32.mrb[5].mxu0  ;;  %v1609_v41 = vmul.f32 %v5224_v39, %v6736_v51 }
 0x173   : > { %v5225_v61 = vpop.f32.mrb[6].mxu0  ;;  %v1607_v22 = vmul.f32 %v6736_v51, %v1574_v60 }
 0x174   : > { %v1577_v43 = vpop.f32.mrb[7].mxu0  ;;  %v1610_v63 = vmul.f32 %v5225_v61, %v6736_v51  ;;  %v1623_v31 = vadd.f32 %v6742_v36, %v1609_v41 }
 0x175   : > { %v1608_v21 = vmul.f32 %v6736_v51, %v1577_v43  ;;  %v1621_v3 = vadd.f32 %v6742_v36, %v1607_v22 }
 0x176   : > { %v1624_v44 = vadd.f32 %v6742_v36, %v1610_v63  ;;  %v1631_v46 = vmax.f32 %v1623_v31, 0.0 }
 0x177   : > { %v1622_v5 = vadd.f32 %v6742_v36, %v1608_v21  ;;  %v1629_v38 = vmax.f32 %v1621_v3, 0.0 }
 0x178   : > { %v1632_v7 = vmax.f32 %v1624_v44, 0.0 }
 0x179   : > { %v1630_v60 = vmax.f32 %v1622_v5, 0.0 }
 0x17b   : > { %v5310_v52 = vpop.f32.mrb[0].mxu1 }
 0x17c   : > { %v2732_v2 = vmul.f32 %v5310_v52, %v6736_v51  ;;  %v2691_v35 = vpop.f32.mrb[1].mxu1 }
 0x17d   : > { %v2730_v49 = vmul.f32 %v6736_v51, %v2691_v35  ;;  %v5311_v18 = vpop.f32.mrb[2].mxu1 }
 0x17e   : > { %v2740_v37 = vadd.f32 %v6742_v36, %v2732_v2  ;;  %v2733_v45 = vmul.f32 %v5311_v18, %v6736_v51  ;;  %v2694_v53 = vpop.f32.mrb[3].mxu1 }
 0x17f   : > { %v2738_v54 = vadd.f32 %v6742_v36, %v2730_v49  ;;  %v2731_v56 = vmul.f32 %v6736_v51, %v2694_v53 }
 0x180   : > { %v2748_v42 = vmax.f32 %v2740_v37, 0.0  ;;  %v2741_v0 = vadd.f32 %v6742_v36, %v2733_v45 }
 0x181   : > { %v2746_v13 = vmax.f32 %v2738_v54, 0.0  ;;  %v2739_v28 = vadd.f32 %v6742_v36, %v2731_v56 }
 0x182   : > { %v2756_v20 = vmax.f32 %v1627_v55, %v2748_v42  ;;  %v2749_v11 = vmax.f32 %v2741_v0, 0.0 }
 0x183   : > { %v2754_v14 = vmax.f32 %v1625_v30, %v2746_v13  ;;  %v2747_v9 = vmax.f32 %v2739_v28, 0.0  ;;  %v5314_v26 = vpop.f32.mrb[4].mxu1 }
 0x184   : > { %v2757_v1 = vmax.f32 %v1628_v57, %v2749_v11  ;;  %v2736_v58 = vmul.f32 %v5314_v26, %v6736_v51  ;;  %v2707_v47 = vpop.f32.mrb[5].mxu1 }
 0x185   : > { %v2755_v8 = vmax.f32 %v1626_v25, %v2747_v9  ;;  %v2734_v59 = vmul.f32 %v6736_v51, %v2707_v47  ;;  %v5315_v62 = vpop.f32.mrb[6].mxu1 }
 0x186   : > { %v2744_v12 = vadd.f32 %v6742_v36, %v2736_v58  ;;  %v2737_v4 = vmul.f32 %v5315_v62, %v6736_v51  ;;  %v2710_v24 = vpop.f32.mrb[7].mxu1 }
 0x187   : > { %v2742_v16 = vadd.f32 %v6742_v36, %v2734_v59  ;;  %v2735_v17 = vmul.f32 %v6736_v51, %v2710_v24 }
 0x188   : > { %v2752_v50 = vmax.f32 %v2744_v12, 0.0  ;;  %v2745_v32 = vadd.f32 %v6742_v36, %v2737_v4 }
 0x189   : > { %v2750_v23 = vmax.f32 %v2742_v16, 0.0  ;;  %v2743_v15 = vadd.f32 %v6742_v36, %v2735_v17 }
 0x18a   : > { %v2760_v27 = vmax.f32 %v1631_v46, %v2752_v50  ;;  %v2753_v39 = vmax.f32 %v2745_v32, 0.0 }
 0x18b   : > { %v2758_v61 = vmax.f32 %v1629_v38, %v2750_v23  ;;  %v2751_v43 = vmax.f32 %v2743_v15, 0.0 }
 0x18c   : > { %v2761_v40 = vmax.f32 %v1632_v7, %v2753_v39 }
 0x18d   : > { %v2759_v33 = vmax.f32 %v1630_v60, %v2751_v43 }
 0x1f9   : > { %v5400_v48 = vpop.f32.mrb[8].mxu0 }
 0x1fa   : > { %v3639_v6 = vmul.f32 %v5400_v48, %v6736_v51  ;;  %v3598_v52 = vpop.f32.mrb[9].mxu0 }
 0x1fb   : > { %v3637_v10 = vmul.f32 %v6736_v51, %v3598_v52  ;;  %v5401_v2 = vpop.f32.mrb[10].mxu0 }
 0x1fc   : > { %v3647_v35 = vadd.f32 %v6742_v36, %v3639_v6  ;;  %v3640_v29 = vmul.f32 %v5401_v2, %v6736_v51  ;;  %v3601_v49 = vpop.f32.mrb[11].mxu0 }
 0x1fd   : > { %v3645_v18 = vadd.f32 %v6742_v36, %v3637_v10  ;;  %v3638_v34 = vmul.f32 %v6736_v51, %v3601_v49 }
 0x1fe   : > { %v3655_v37 = vmax.f32 %v3647_v35, 0.0  ;;  %v3648_v45 = vadd.f32 %v6742_v36, %v3640_v29 }
 0x1ff   : > { %v3653_v53 = vmax.f32 %v3645_v18, 0.0  ;;  %v3646_v19 = vadd.f32 %v6742_v36, %v3638_v34 }
 0x200   : > { %v3663_v54 = vmax.f32 %v2756_v20, %v3655_v37  ;;  %v3656_v56 = vmax.f32 %v3648_v45, 0.0 }
 0x201   : > { %v3661_v55 = vmax.f32 %v2754_v14, %v3653_v53  ;;  %v3654_v41 = vmax.f32 %v3646_v19, 0.0  ;;  %v5404_v42 = vpop.f32.mrb[12].mxu0 }
 0x202   : > { %v3664_v0 = vmax.f32 %v2757_v1, %v3656_v56  ;;  %v3643_v30 = vmul.f32 %v5404_v42, %v6736_v51  ;;  %v3614_v22 = vpop.f32.mrb[13].mxu0 }
 0x203   : > { %v3662_v13 = vmax.f32 %v2755_v8, %v3654_v41  ;;  %v3641_v28 = vmul.f32 %v6736_v51, %v3614_v22  ;;  %v5405_v57 = vpop.f32.mrb[14].mxu0 }
 0x204   : > { %v3651_v63 = vadd.f32 %v6742_v36, %v3643_v30  ;;  %v3644_v11 = vmul.f32 %v5405_v57, %v6736_v51  ;;  %v3617_v25 = vpop.f32.mrb[15].mxu0 }
 0x205   : > { %v3649_v20 = vadd.f32 %v6742_v36, %v3641_v28  ;;  %v3642_v14 = vmul.f32 %v6736_v51, %v3617_v25 }
 0x206   : > { %v3659_v21 = vmax.f32 %v3651_v63, 0.0  ;;  %v3652_v9 = vadd.f32 %v6742_v36, %v3644_v11 }
 0x207   : > { %v3657_v26 = vmax.f32 %v3649_v20, 0.0  ;;  %v3650_v31 = vadd.f32 %v6742_v36, %v3642_v14 }
 0x208   : > { %v3667_v1 = vmax.f32 %v2760_v27, %v3659_v21  ;;  %v3660_v58 = vmax.f32 %v3652_v9, 0.0 }
 0x209   : > { %v3665_v47 = vmax.f32 %v2758_v61, %v3657_v26  ;;  %v3658_v3 = vmax.f32 %v3650_v31, 0.0 }
 0x20a   : > { %v3668_v8 = vmax.f32 %v2761_v40, %v3660_v58 }
 0x20b   : > { %v3666_v59 = vmax.f32 %v2759_v33, %v3658_v3  ;;  %v5490_v62 = vpop.f32.mrb[8].mxu1 }
 0x20c   : > { %v4464_v44 = vmul.f32 %v5490_v62, %v6736_v51  ;;  %v4423_v12 = vpop.f32.mrb[9].mxu1 }
 0x20d   : > { %v4462_v4 = vmul.f32 %v6736_v51, %v4423_v12  ;;  %v5491_v24 = vpop.f32.mrb[10].mxu1 }
 0x20e   : > { %v4472_v5 = vadd.f32 %v6742_v36, %v4464_v44  ;;  %v4465_v16 = vmul.f32 %v5491_v24, %v6736_v51  ;;  %v4426_v17 = vpop.f32.mrb[11].mxu1 }
 0x20f   : > { %v4470_v46 = vadd.f32 %v6742_v36, %v4462_v4  ;;  %v4463_v50 = vmul.f32 %v6736_v51, %v4426_v17 }
 0x210   : > { %v4480_v32 = vmax.f32 %v4472_v5, 0.0  ;;  %v4473_v38 = vadd.f32 %v6742_v36, %v4465_v16 }
 0x211   : > { %v4478_v23 = vmax.f32 %v4470_v46, 0.0  ;;  %v4471_v15 = vadd.f32 %v6742_v36, %v4463_v50 }
 0x212   : > { %v4488_v7 = vmax.f32 %v3663_v54, %v4480_v32  ;;  %v4481_v27 = vmax.f32 %v4473_v38, 0.0 }
 0x213   : > { %v4486_v39 = vmax.f32 %v3661_v55, %v4478_v23  ;;  %v4479_v60 = vmax.f32 %v4471_v15, 0.0  ;;  %v5494_v61 = vpop.f32.mrb[12].mxu1 }
 0x214   : > { %4497 = vst.msk [vmem:[%s6803_s11 + $0x10] sm:$0xff] %vm4494_vm5, %v4488_v7  ;;  %v4489_v43 = vmax.f32 %v3664_v0, %v4481_v27  ;;  %v4468_v40 = vmul.f32 %v5494_v61, %v6736_v51  ;;  %v4439_v33 = vpop.f32.mrb[13].mxu1 }
 0x215   : > { %4495 = vst.msk [vmem:[%s6803_s11] sm:$0xff] %vm4494_vm5, %v4486_v39  ;;  %v4487_v48 = vmax.f32 %v3662_v13, %v4479_v60  ;;  %v4466_v6 = vmul.f32 %v6736_v51, %v4439_v33  ;;  %v5495_v52 = vpop.f32.mrb[14].mxu1 }
 0x216   : > { %4498 = vst.msk [vmem:[%s6803_s11 + $0x18] sm:$0xff] %vm4494_vm5, %v4489_v43  ;;  %v4476_v10 = vadd.f32 %v6742_v36, %v4468_v40  ;;  %v4469_v2 = vmul.f32 %v5495_v52, %v6736_v51  ;;  %v4442_v35 = vpop.f32.mrb[15].mxu1 }
 0x217   : > { %4496 = vst.msk [vmem:[%s6803_s11 + $0x8] sm:$0xff] %vm4494_vm5, %v4487_v48  ;;  %v4474_v29 = vadd.f32 %v6742_v36, %v4466_v6  ;;  %v4467_v49 = vmul.f32 %v6736_v51, %v4442_v35 }
 0x218   : > { %v4484_v18 = vmax.f32 %v4476_v10, 0.0  ;;  %v4477_v34 = vadd.f32 %v6742_v36, %v4469_v2 }
 0x219   : > { %v4482_v37 = vmax.f32 %v4474_v29, 0.0  ;;  %v4475_v45 = vadd.f32 %v6742_v36, %v4467_v49 }
 0x21a   : > { %v4492_v53 = vmax.f32 %v3667_v1, %v4484_v18  ;;  %v4485_v19 = vmax.f32 %v4477_v34, 0.0 }
 0x21b   : > { %v4490_v54 = vmax.f32 %v3665_v47, %v4482_v37  ;;  %v4483_v56 = vmax.f32 %v4475_v45, 0.0 }
 0x21c   : > { %4501 = vst.msk [vmem:[%s6803_s11 + $0x30] sm:$0xff] %vm4494_vm5, %v4492_v53  ;;  %v4493_v55 = vmax.f32 %v3668_v8, %v4485_v19 }
 0x21d   : > { %4499 = vst.msk [vmem:[%s6803_s11 + $0x20] sm:$0xff] %vm4494_vm5, %v4490_v54  ;;  %v4491_v41 = vmax.f32 %v3666_v59, %v4483_v56 }
 0x21e   : > { %4502 = vst.msk [vmem:[%s6803_s11 + $0x38] sm:$0xff] %vm4494_vm5, %v4493_v55 }
 0x21f   : > { %4500 = vst.msk [vmem:[%s6803_s11 + $0x28] sm:$0xff] %vm4494_vm5, %v4491_v41 }
 0x220 PF: > { %s14_s15 = sadd.s32 1, %s5845_s15  }
 0x221   : > { %p11_p5 = scmp.ge.s32.totalorder %s14_s15, 4  }
 0x223   :  { %13 = sbr.rel (!%p11_p5) target bundleno = 1 (0x1), region = 81 }

</bundles_post_ra>
